<compile_context>
chip_gen: v5e
topology: v5e:2x2
jax: 0.10.0
libtpu: 0.0.40
codegen_flags: <defaults>
</compile_context>

<pallas_src>
import numpy as np
import jax
import jax.numpy as jnp
from jax.experimental import pallas as pl
from jax.experimental.pallas import tpu as pltpu


def _round_up(x, m):
    return ((x + m - 1) // m) * m


def _pick_col_tile(total, cap=4096):
    """Largest lane-aligned divisor of `total` that is <= cap."""
    if total <= cap:
        return total
    for tn in (4096, 2048, 1024, 512, 256, 128):
        if tn <= cap and total % tn == 0:
            return tn
    return total


# ----------------------------------------------------------------------------
# Kernel 1: hoisted input projection  gates_pre = x_flat @ W_in + b_in
# ----------------------------------------------------------------------------
def _input_proj_kernel(x_ref, w_ref, b_ref, out_ref):
    # x_ref: (tm, E) bf16; w_ref: (E, tn) bf16; b_ref: (1, tn) f32
    g = jnp.dot(x_ref[...], w_ref[...], preferred_element_type=jnp.float32)
    out_ref[...] = (g + b_ref[...]).astype(out_ref.dtype)


# ----------------------------------------------------------------------------
# Kernel 2: bidirectional masked recurrence over streamed gates_pre
# ----------------------------------------------------------------------------
def _bilstm_recurrence_kernel(len_ref, maxlen_ref, gates_ref, whh_ref,
                              hcat_ref, maxout_ref, h_sc, c_sc, m_sc):
    T = pl.num_programs(1)
    d = pl.program_id(0)          # 0 = forward, 1 = backward
    t = pl.program_id(1)
    H = whh_ref.shape[1]
    neg_inf = jnp.float32(-jnp.inf)

    @pl.when(t == 0)
    def _init():
        h_sc[...] = jnp.zeros(h_sc.shape, h_sc.dtype)
        c_sc[...] = jnp.zeros(c_sc.shape, c_sc.dtype)
        m_sc[...] = jnp.full(m_sc.shape, neg_inf, m_sc.dtype)

    max_len = maxlen_ref[0]
    # physical timestep: t for forward, T-1-t for backward
    t_phys = (1 - 2 * d) * t + d * (T - 1)

    # Skip all compute on timesteps that are padding for the entire batch.
    @pl.when(t_phys < max_len)
    def _step():
        g = gates_ref[...].astype(jnp.float32) + jnp.dot(
            h_sc[...].astype(jnp.bfloat16), whh_ref[0],
            preferred_element_type=jnp.float32)
        # sigmoid(x) = 0.5*(tanh(0.5*x)+1): one EUP push per gate instead of two.
        i = 0.5 * (jnp.tanh(0.5 * g[:, 0 * H:1 * H]) + 1.0)
        f = 0.5 * (jnp.tanh(0.5 * g[:, 1 * H:2 * H]) + 1.0)
        gg = jnp.tanh(g[:, 2 * H:3 * H])
        o = 0.5 * (jnp.tanh(0.5 * g[:, 3 * H:4 * H]) + 1.0)
        c_new = f * c_sc[...] + i * gg
        h_new = o * jnp.tanh(c_new)
        # packed-sequence semantics: state only advances on valid timesteps.
        valid = len_ref[...] > t_phys                      # (B, 1) bool
        h_sc[...] = jnp.where(valid, h_new, h_sc[...])
        c_sc[...] = jnp.where(valid, c_new, c_sc[...])
        m_sc[...] = jnp.maximum(m_sc[...], jnp.where(valid, h_new, neg_inf))

    @pl.when(t == T - 1)
    def _finish():
        # pad_packed_sequence pads with zeros up to max_len; torch.max therefore
        # also sees zeros for every sequence shorter than max_len.
        has_pad = len_ref[...] < max_len
        m = m_sc[...]
        hcat_ref[...] = h_sc[...]
        maxout_ref[...] = jnp.where(has_pad, jnp.maximum(m, 0.0), m)


# ----------------------------------------------------------------------------
# Wrapper
# ----------------------------------------------------------------------------
def _vmem_limit_bytes(*buffers):
    """Crude scoped-VMEM budget: double-buffered tiles + headroom, clamped to a
    range valid on v5e/v6e (128 MiB) and v7x (64 MiB physical)."""
    total = 0
    for shape, dtype in buffers:
        total += 2 * int(np.prod(shape)) * np.dtype(dtype).itemsize
    return int(min(max(total + (4 << 20), 16 << 20), 64 << 20))


def bilstm_pallas(token_ids, params):
    """Runs the BiLSTM kernels; returns (h_cat, maxpool), both (B, 2H) f32."""
    token_ids = jnp.squeeze(token_ids)       # mimics torch.squeeze (note: would
                                             # also squeeze a size-1 batch dim)
    B, T = token_ids.shape
    emb_mat = params["embedding"]
    E = emb_mat.shape[1]
    H = params["w_hh_f"].shape[1]
    assert H % 128 == 0, "H must be lane-aligned (multiple of 128)"

    # pad token id == 1 with trailing pads (as the torch module assumes)
    seq_lengths = (T - jnp.sum(token_ids == 1, axis=1)).astype(jnp.int32)   # (B,)
    max_len = jnp.max(seq_lengths).astype(jnp.int32)

    # frozen-embedding gather: plain-JAX glue; activations in bf16
    x = jnp.take(emb_mat, token_ids, axis=0).astype(jnp.bfloat16)           # (B,T,E)
    x = jnp.transpose(x, (1, 0, 2))                                         # (T,B,E)

    # pad batch to a multiple of 8 sublanes (padded rows get length 0)
    Bp = _round_up(B, 8)
    if Bp != B:
        x = jnp.pad(x, ((0, 0), (0, Bp - B), (0, 0)))
        seq_lengths = jnp.pad(seq_lengths, (0, Bp - B))

    # weights pre-transposed for right multiplication, bf16 operands
    w_in = jnp.concatenate([params["w_ih_f"].T, params["w_ih_b"].T],
                           axis=1).astype(jnp.bfloat16)                     # (E, 8H)
    b_in = jnp.concatenate(
        [params["b_ih_f"] + params["b_hh_f"],
         params["b_ih_b"] + params["b_hh_b"]]).reshape(1, 8 * H).astype(jnp.float32)
    whh = jnp.stack([params["w_hh_f"].T, params["w_hh_b"].T],
                    axis=0).astype(jnp.bfloat16)                            # (2,H,4H)
    # TODO(synk): at the module's real H=2048, additionally tile the 4H lane
    # dimension of whh (gate-interleaved per hidden chunk) so one W_hh tile
    # fits v7x VMEM.

    # ---- kernel 1: hoisted input projection over flattened (T*B, E) rows ----
    N = T * Bp
    x_flat = x.reshape(N, E)                  # row t*Bp+b == timestep t, batch b
    Gt = max(1, min(T, 256 // Bp)) if Bp <= 256 else 1
    tm = Gt * Bp                              # row tile = whole timesteps
    Np = _round_up(N, tm)
    if Np != N:
        x_flat = jnp.pad(x_flat, ((0, Np - N), (0, 0)))
    GC = 8 * H
    tn = _pick_col_tile(GC)
    n_i, n_j = Np // tm, GC // tn

    proj_limit = _vmem_limit_bytes(((tm, E), jnp.bfloat16),
                                   ((E, tn), jnp.bfloat16),
                                   ((1, tn), jnp.float32),
                                   ((tm, tn), jnp.bfloat16))
    gates_flat = pl.pallas_call(
        _input_proj_kernel,
        grid=(n_j, n_i),                      # cols outer: W_in tile DMA'd once
        in_specs=[pl.BlockSpec((tm, E), lambda j, i: (i, 0)),
                  pl.BlockSpec((E, tn), lambda j, i: (0, j)),
                  pl.BlockSpec((1, tn), lambda j, i: (0, j))],
        out_specs=pl.BlockSpec((tm, tn), lambda j, i: (i, j)),
        out_shape=jax.ShapeDtypeStruct((Np, GC), jnp.bfloat16),
        compiler_params=pltpu.CompilerParams(
            dimension_semantics=("parallel", "parallel"),
            vmem_limit_bytes=proj_limit),
    )(x_flat, w_in, b_in)

    # ---- kernel 2: bidirectional recurrence ----------------------------------
    rec_limit = _vmem_limit_bytes(((Bp, 1), jnp.int32),
                                  ((Bp, 4 * H), jnp.bfloat16),   # gates tile
                                  ((1, H, 4 * H), jnp.bfloat16), # W_hh^T
                                  ((Bp, H), jnp.float32),        # hcat block
                                  ((Bp, H), jnp.float32),        # maxout block
                                  ((Bp, H), jnp.float32),        # h scratch
                                  ((Bp, H), jnp.float32),        # c scratch
                                  ((Bp, H), jnp.float32))        # m scratch
    hcat, maxout = pl.pallas_call(
        _bilstm_recurrence_kernel,
        grid=(2, T),
        in_specs=[
            pl.BlockSpec((Bp, 1), lambda d, t: (0, 0)),                # lengths
            pl.BlockSpec(memory_space=pltpu.MemorySpace.SMEM),         # max_len
            # one timestep's (Bp, 4H) gate block; row-block index == timestep,
            # col-block index == direction (fwd cols 0:4H, bwd cols 4H:8H)
            pl.BlockSpec((Bp, 4 * H),
                         lambda d, t: ((1 - 2 * d) * t + d * (T - 1), d)),
            pl.BlockSpec((1, H, 4 * H), lambda d, t: (d, 0, 0)),       # W_hh^T
        ],
        out_specs=(pl.BlockSpec((Bp, H), lambda d, t: (0, d)),
                   pl.BlockSpec((Bp, H), lambda d, t: (0, d))),
        out_shape=(jax.ShapeDtypeStruct((Bp, 2 * H), jnp.float32),
                   jax.ShapeDtypeStruct((Bp, 2 * H), jnp.float32)),
        scratch_shapes=[pltpu.VMEM((Bp, H), jnp.float32)] * 3,
        compiler_params=pltpu.CompilerParams(
            dimension_semantics=("parallel", "arbitrary"),
            vmem_limit_bytes=rec_limit),
    )(seq_lengths.reshape(Bp, 1), max_len.reshape(1), gates_flat, whh)

    return hcat[:B], maxout[:B]


def bilstm_forward(token_ids, params, max_pooling=False):
    hcat, maxout = bilstm_pallas(token_ids, params)
    return maxout if max_pooling else hcat


# ----------------------------------------------------------------------------
# Pure numpy reference (PyTorch packed-BiLSTM semantics); embedding / weights
# rounded to bf16 to mirror the kernel's operand precision.
# ----------------------------------------------------------------------------
def _bf16_round(a):
    return np.asarray(jnp.asarray(np.asarray(a)).astype(jnp.bfloat16)
                      .astype(jnp.float32))


def bilstm_reference(token_ids, params, max_pooling=False):
    token_ids = np.asarray(jnp.squeeze(token_ids))
    B, T = token_ids.shape
    lengths = T - (token_ids == 1).sum(axis=1)
    emb = _bf16_round(params["embedding"])[token_ids]        # (B, T, E)
    H = params["w_hh_f"].shape[1]

    def sigmoid(z):
        return 1.0 / (1.0 + np.exp(-z))

    def run_dir(wih, whh, bih, bhh, reverse):
        wih, whh = _bf16_round(wih), _bf16_round(whh)
        b = np.asarray(bih) + np.asarray(bhh)
        h = np.zeros((B, H), np.float32)
        c = np.zeros((B, H), np.float32)
        outs = np.zeros((B, T, H), np.float32)
        order = range(T - 1, -1, -1) if reverse else range(T)
        for t in order:
            g = emb[:, t, :] @ wih.T + h @ whh.T + b
            i = sigmoid(g[:, :H]); f = sigmoid(g[:, H:2 * H])
            gg = np.tanh(g[:, 2 * H:3 * H]); o = sigmoid(g[:, 3 * H:])
            c_new = f * c + i * gg
            h_new = o * np.tanh(c_new)
            mask = (lengths > t)[:, None]
            h = np.where(mask, h_new, h)
            c = np.where(mask, c_new, c)
            outs[:, t, :] = np.where(mask, h_new, 0.0)
        return h, outs

    hf, of = run_dir(params["w_ih_f"], params["w_hh_f"],
                     params["b_ih_f"], params["b_hh_f"], False)
    hb, ob = run_dir(params["w_ih_b"], params["w_hh_b"],
                     params["b_ih_b"], params["b_hh_b"], True)
    if max_pooling:
        out = np.concatenate([of, ob], axis=2)[:, :int(lengths.max())]
        return out.max(axis=1)
    return np.concatenate([hf, hb], axis=1)


if __name__ == "__main__":
    key = jax.random.PRNGKey(0)
    V, E, T, B = 60, 300, 12, 8          # input_size=300 fixed by the module
    hidden_size = 256                    # module default is 4096; small demo size
    H = hidden_size // 2                 # 128: lane-aligned

    ks = jax.random.split(key, 10)
    scale = 0.1
    params = {
        "embedding": jax.random.normal(ks[0], (V, E), jnp.float32) * 0.5,
        "w_ih_f": jax.random.normal(ks[1], (4 * H, E), jnp.float32) * scale,
        "w_hh_f": jax.random.normal(ks[2], (4 * H, H), jnp.float32) * scale,
        "b_ih_f": jax.random.normal(ks[3], (4 * H,), jnp.float32) * scale,
        "b_hh_f": jax.random.normal(ks[4], (4 * H,), jnp.float32) * scale,
        "w_ih_b": jax.random.normal(ks[5], (4 * H, E), jnp.float32) * scale,
        "w_hh_b": jax.random.normal(ks[6], (4 * H, H), jnp.float32) * scale,
        "b_ih_b": jax.random.normal(ks[7], (4 * H,), jnp.float32) * scale,
        "b_hh_b": jax.random.normal(ks[8], (4 * H,), jnp.float32) * scale,
    }

    # token id 1 == padding (trailing pads, as the torch module assumes)
    lens = jnp.array([12, 7, 9, 12, 3, 10, 12, 5], dtype=jnp.int32)
    tok = jax.random.randint(ks[9], (B, T), 2, V, dtype=jnp.int32)
    tok = jnp.where(jnp.arange(T)[None, :] < lens[:, None], tok, 1)
    token_ids = tok[:, None, :]          # (B, 1, T); forward squeezes like torch

    hcat, maxout = jax.jit(bilstm_pallas)(token_ids, params)
    jax.block_until_ready((hcat, maxout))

    ref_h = bilstm_reference(token_ids, params, max_pooling=False)
    ref_m = bilstm_reference(token_ids, params, max_pooling=True)
    np.testing.assert_allclose(np.asarray(hcat), ref_h, rtol=1e-2, atol=1e-2)
    np.testing.assert_allclose(np.asarray(maxout), ref_m, rtol=1e-2, atol=1e-2)

    print("KERNEL_OK")
</pallas_src>

<mosaic_0001>
module attributes {stable_mosaic.version = 11 : i64} {
  func.func @_input_proj_kernel(%arg0: i32, %arg1: i32, %arg2: memref<96x300xbf16, #tpu.memory_space<vmem>>, %arg3: memref<300x1024xbf16, #tpu.memory_space<vmem>>, %arg4: memref<1x1024xf32, #tpu.memory_space<vmem>>, %arg5: memref<96x1024xbf16, #tpu.memory_space<vmem>>) attributes {dimension_semantics = [#tpu.dimension_semantics<parallel>, #tpu.dimension_semantics<parallel>], iteration_bounds = array<i64: 1, 1>, scalar_prefetch = 0 : i64, scratch_operands = 0 : i64, tpu.core_type = #tpu.core_type<tc>, window_params = [{transform_indices = @transform_0, window_bounds = array<i64: 96, 300>}, {transform_indices = @transform_1, window_bounds = array<i64: 300, 1024>}, {transform_indices = @transform_2, window_bounds = array<i64: 1, 1024>}, {transform_indices = @transform_3, window_bounds = array<i64: 96, 1024>}]} {
    %c0 = arith.constant 0 : index
    %c0_0 = arith.constant 0 : index
    %0 = vector.load %arg2[%c0, %c0_0] : memref<96x300xbf16, #tpu.memory_space<vmem>>, vector<96x300xbf16>
    %c0_1 = arith.constant 0 : index
    %c0_2 = arith.constant 0 : index
    %1 = vector.load %arg3[%c0_1, %c0_2] : memref<300x1024xbf16, #tpu.memory_space<vmem>>, vector<300x1024xbf16>
    %cst = arith.constant dense<0.000000e+00> : vector<96x1024xf32>
    %2 = tpu.matmul %0, %1, %cst {dimension_numbers = #tpu.dot_dimension_numbers<[1], [0], [0], [1], [0, 0, 1, 1], [], []>} : vector<96x300xbf16>, vector<300x1024xbf16>, vector<96x1024xf32> -> vector<96x1024xf32>
    %c0_3 = arith.constant 0 : index
    %c0_4 = arith.constant 0 : index
    %3 = vector.load %arg4[%c0_3, %c0_4] : memref<1x1024xf32, #tpu.memory_space<vmem>>, vector<1x1024xf32>
    %4 = vector.broadcast %3 : vector<1x1024xf32> to vector<96x1024xf32>
    %5 = arith.addf %2, %4 : vector<96x1024xf32>
    %6 = arith.truncf %5 : vector<96x1024xf32> to vector<96x1024xbf16>
    %c0_5 = arith.constant 0 : index
    %c0_6 = arith.constant 0 : index
    %7 = vector.load %arg5[%c0_5, %c0_6] : memref<96x1024xbf16, #tpu.memory_space<vmem>>, vector<96x1024xbf16>
    tpu.vector_store %arg5[%c0_5, %c0_6], %6 {strides = array<i32>} : memref<96x1024xbf16, #tpu.memory_space<vmem>>, vector<96x1024xbf16>,
    return
  }
  func.func @transform_0(%arg0: i32, %arg1: i32) -> (i32, i32) {
    %c0_i32 = arith.constant 0 : i32
    %c0_i32_0 = arith.constant 0 : i32
    return %arg1, %c0_i32 : i32, i32
  }
  func.func @transform_1(%arg0: i32, %arg1: i32) -> (i32, i32) {
    %c0_i32 = arith.constant 0 : i32
    %c0_i32_0 = arith.constant 0 : i32
    return %c0_i32, %arg0 : i32, i32
  }
  func.func @transform_2(%arg0: i32, %arg1: i32) -> (i32, i32) {
    %c0_i32 = arith.constant 0 : i32
    %c0_i32_0 = arith.constant 0 : i32
    return %c0_i32, %arg0 : i32, i32
  }
  func.func @transform_3(%arg0: i32, %arg1: i32) -> (i32, i32) {
    %c0_i32 = arith.constant 0 : i32
    return %arg1, %arg0 : i32, i32
  }
}

module attributes {stable_mosaic.version = 11 : i64} {
  func.func @_bilstm_recurrence_kernel(%arg0: i32, %arg1: i32, %arg2: memref<8x1xi32, #tpu.memory_space<vmem>>, %arg3: memref<1xi32, #tpu.memory_space<smem>>, %arg4: memref<8x512xbf16, #tpu.memory_space<vmem>>, %arg5: memref<1x128x512xbf16, #tpu.memory_space<vmem>>, %arg6: memref<8x128xf32, #tpu.memory_space<vmem>>, %arg7: memref<8x128xf32, #tpu.memory_space<vmem>>, %arg8: memref<8x128xf32, #tpu.memory_space<vmem>>, %arg9: memref<8x128xf32, #tpu.memory_space<vmem>>, %arg10: memref<8x128xf32, #tpu.memory_space<vmem>>) attributes {dimension_semantics = [#tpu.dimension_semantics<parallel>, #tpu.dimension_semantics<arbitrary>], iteration_bounds = array<i64: 2, 12>, scalar_prefetch = 0 : i64, scratch_operands = 3 : i64, tpu.core_type = #tpu.core_type<tc>, window_params = [{pipeline_mode = #tpu.pipeline_mode<synchronous>, transform_indices = @transform_0, window_bounds = array<i64: 8, 1>}, {transform_indices = @transform_1, window_bounds = array<i64: 1>}, {transform_indices = @transform_2, window_bounds = array<i64: 8, 512>}, {transform_indices = @transform_3, window_bounds = array<i64: 1, 128, 512>}, {transform_indices = @transform_4, window_bounds = array<i64: 8, 128>}, {transform_indices = @transform_5, window_bounds = array<i64: 8, 128>}]} {
    %c0_i32 = arith.constant 0 : i32
    %0 = arith.cmpi eq, %arg1, %c0_i32 : i32
    %1 = arith.extui %0 : i1 to i32
    %cst = arith.constant 0xFF800000 : f32
    %c0_i32_0 = arith.constant 0 : i32
    %2 = arith.cmpi ne, %1, %c0_i32_0 : i32
    scf.if %2 {
      %cst_5 = arith.constant 0.000000e+00 : f32
      %15 = vector.broadcast %cst_5 : f32 to vector<8x128xf32>
      %c0_6 = arith.constant 0 : index
      %c0_7 = arith.constant 0 : index
      %16 = vector.load %arg8[%c0_6, %c0_7] : memref<8x128xf32, #tpu.memory_space<vmem>>, vector<8x128xf32>
      tpu.vector_store %arg8[%c0_6, %c0_7], %15 {strides = array<i32>} : memref<8x128xf32, #tpu.memory_space<vmem>>, vector<8x128xf32>,
      %cst_8 = arith.constant 0.000000e+00 : f32
      %17 = vector.broadcast %cst_8 : f32 to vector<8x128xf32>
      %c0_9 = arith.constant 0 : index
      %c0_10 = arith.constant 0 : index
      %18 = vector.load %arg9[%c0_9, %c0_10] : memref<8x128xf32, #tpu.memory_space<vmem>>, vector<8x128xf32>
      tpu.vector_store %arg9[%c0_9, %c0_10], %17 {strides = array<i32>} : memref<8x128xf32, #tpu.memory_space<vmem>>, vector<8x128xf32>,
      %19 = vector.broadcast %cst : f32 to vector<8x128xf32>
      %c0_11 = arith.constant 0 : index
      %c0_12 = arith.constant 0 : index
      %20 = vector.load %arg10[%c0_11, %c0_12] : memref<8x128xf32, #tpu.memory_space<vmem>>, vector<8x128xf32>
      tpu.vector_store %arg10[%c0_11, %c0_12], %19 {strides = array<i32>} : memref<8x128xf32, #tpu.memory_space<vmem>>, vector<8x128xf32>,
    } else {
    }
    %c0 = arith.constant 0 : index
    %3 = memref.load %arg3[%c0] : memref<1xi32, #tpu.memory_space<smem>>
    %c2_i32 = arith.constant 2 : i32
    %4 = arith.muli %c2_i32, %arg0 : i32
    %c1_i32 = arith.constant 1 : i32
    %5 = arith.subi %c1_i32, %4 : i32
    %6 = arith.muli %5, %arg1 : i32
    %c11_i32 = arith.constant 11 : i32
    %7 = arith.muli %arg0, %c11_i32 : i32
    %8 = arith.addi %6, %7 : i32
    %9 = arith.cmpi slt, %8, %3 : i32
    %10 = arith.extui %9 : i1 to i32
    %cst_1 = arith.constant 0xFF800000 : f32
    %c0_i32_2 = arith.constant 0 : i32
    %11 = arith.cmpi ne, %10, %c0_i32_2 : i32
    scf.if %11 {
      %c0_5 = arith.constant 0 : index
      %c0_6 = arith.constant 0 : index
      %15 = vector.load %arg4[%c0_5, %c0_6] : memref<8x512xbf16, #tpu.memory_space<vmem>>, vector<8x512xbf16>
      %16 = arith.extf %15 : vector<8x512xbf16> to vector<8x512xf32>
      %c0_7 = arith.constant 0 : index
      %c0_8 = arith.constant 0 : index
      %17 = vector.load %arg8[%c0_7, %c0_8] : memref<8x128xf32, #tpu.memory_space<vmem>>, vector<8x128xf32>
      %18 = arith.truncf %17 : vector<8x128xf32> to vector<8x128xbf16>
      %c0_9 = arith.constant 0 : index
      %c0_10 = arith.constant 0 : index
      %c0_11 = arith.constant 0 : index
      %19 = vector.load %arg5[%c0_9, %c0_10, %c0_11] : memref<1x128x512xbf16, #tpu.memory_space<vmem>>, vector<1x128x512xbf16>
      %20 = vector.shape_cast %19 : vector<1x128x512xbf16> to vector<128x512xbf16>
      %cst_12 = arith.constant dense<0.000000e+00> : vector<8x512xf32>
      %21 = tpu.matmul %18, %20, %cst_12 {dimension_numbers = #tpu.dot_dimension_numbers<[1], [0], [0], [1], [0, 0, 1, 1], [], []>} : vector<8x128xbf16>, vector<128x512xbf16>, vector<8x512xf32> -> vector<8x512xf32>
      %22 = arith.addf %16, %21 : vector<8x512xf32>
      %23 = vector.extract_strided_slice %22 {offsets = [0, 0], sizes = [8, 128], strides = [1, 1]} : vector<8x512xf32> to vector<8x128xf32>
      %cst_13 = arith.constant 5.000000e-01 : f32
      %24 = vector.broadcast %cst_13 : f32 to vector<8x128xf32>
      %25 = arith.mulf %24, %23 : vector<8x128xf32>
      %26 = math.tanh %25 : vector<8x128xf32>
      %cst_14 = arith.constant 1.000000e+00 : f32
      %27 = vector.broadcast %cst_14 : f32 to vector<8x128xf32>
      %28 = arith.addf %26, %27 : vector<8x128xf32>
      %cst_15 = arith.constant 5.000000e-01 : f32
      %29 = vector.broadcast %cst_15 : f32 to vector<8x128xf32>
      %30 = arith.mulf %29, %28 : vector<8x128xf32>
      %31 = vector.extract_strided_slice %22 {offsets = [0, 128], sizes = [8, 128], strides = [1, 1]} : vector<8x512xf32> to vector<8x128xf32>
      %cst_16 = arith.constant 5.000000e-01 : f32
      %32 = vector.broadcast %cst_16 : f32 to vector<8x128xf32>
      %33 = arith.mulf %32, %31 : vector<8x128xf32>
      %34 = math.tanh %33 : vector<8x128xf32>
      %cst_17 = arith.constant 1.000000e+00 : f32
      %35 = vector.broadcast %cst_17 : f32 to vector<8x128xf32>
      %36 = arith.addf %34, %35 : vector<8x128xf32>
      %cst_18 = arith.constant 5.000000e-01 : f32
      %37 = vector.broadcast %cst_18 : f32 to vector<8x128xf32>
      %38 = arith.mulf %37, %36 : vector<8x128xf32>
      %39 = vector.extract_strided_slice %22 {offsets = [0, 256], sizes = [8, 128], strides = [1, 1]} : vector<8x512xf32> to vector<8x128xf32>
      %40 = math.tanh %39 : vector<8x128xf32>
      %41 = vector.extract_strided_slice %22 {offsets = [0, 384], sizes = [8, 128], strides = [1, 1]} : vector<8x512xf32> to vector<8x128xf32>
      %cst_19 = arith.constant 5.000000e-01 : f32
      %42 = vector.broadcast %cst_19 : f32 to vector<8x128xf32>
      %43 = arith.mulf %42, %41 : vector<8x128xf32>
      %44 = math.tanh %43 : vector<8x128xf32>
      %cst_20 = arith.constant 1.000000e+00 : f32
      %45 = vector.broadcast %cst_20 : f32 to vector<8x128xf32>
      %46 = arith.addf %44, %45 : vector<8x128xf32>
      %cst_21 = arith.constant 5.000000e-01 : f32
      %47 = vector.broadcast %cst_21 : f32 to vector<8x128xf32>
      %48 = arith.mulf %47, %46 : vector<8x128xf32>
      %c0_22 = arith.constant 0 : index
      %c0_23 = arith.constant 0 : index
      %49 = vector.load %arg9[%c0_22, %c0_23] : memref<8x128xf32, #tpu.memory_space<vmem>>, vector<8x128xf32>
      %50 = arith.mulf %38, %49 : vector<8x128xf32>
      %51 = arith.mulf %30, %40 : vector<8x128xf32>
      %52 = arith.addf %50, %51 : vector<8x128xf32>
      %53 = math.tanh %52 : vector<8x128xf32>
      %54 = arith.mulf %48, %53 : vector<8x128xf32>
      %c0_24 = arith.constant 0 : index
      %c0_25 = arith.constant 0 : index
      %55 = vector.load %arg2[%c0_24, %c0_25] : memref<8x1xi32, #tpu.memory_space<vmem>>, vector<8x1xi32>
      %56 = vector.broadcast %8 : i32 to vector<8x1xi32>
      %57 = arith.cmpi sgt, %55, %56 : vector<8x1xi32>
      %c0_26 = arith.constant 0 : index
      %c0_27 = arith.constant 0 : index
      %58 = vector.load %arg8[%c0_26, %c0_27] : memref<8x128xf32, #tpu.memory_space<vmem>>, vector<8x128xf32>
      %59 = vector.shape_cast %57 : vector<8x1xi1> to vector<8x1xi1>
      %60 = vector.broadcast %59 : vector<8x1xi1> to vector<8x128xi1>
      %61 = arith.select %60, %54, %58 : vector<8x128xi1>, vector<8x128xf32>
      %c0_28 = arith.constant 0 : index
      %c0_29 = arith.constant 0 : index
      %62 = vector.load %arg8[%c0_28, %c0_29] : memref<8x128xf32, #tpu.memory_space<vmem>>, vector<8x128xf32>
      tpu.vector_store %arg8[%c0_28, %c0_29], %61 {strides = array<i32>} : memref<8x128xf32, #tpu.memory_space<vmem>>, vector<8x128xf32>,
      %c0_30 = arith.constant 0 : index
      %c0_31 = arith.constant 0 : index
      %63 = vector.load %arg9[%c0_30, %c0_31] : memref<8x128xf32, #tpu.memory_space<vmem>>, vector<8x128xf32>
      %64 = vector.shape_cast %57 : vector<8x1xi1> to vector<8x1xi1>
      %65 = vector.broadcast %64 : vector<8x1xi1> to vector<8x128xi1>
      %66 = arith.select %65, %52, %63 : vector<8x128xi1>, vector<8x128xf32>
      %c0_32 = arith.constant 0 : index
      %c0_33 = arith.constant 0 : index
      %67 = vector.load %arg9[%c0_32, %c0_33] : memref<8x128xf32, #tpu.memory_space<vmem>>, vector<8x128xf32>
      tpu.vector_store %arg9[%c0_32, %c0_33], %66 {strides = array<i32>} : memref<8x128xf32, #tpu.memory_space<vmem>>, vector<8x128xf32>,
      %c0_34 = arith.constant 0 : index
      %c0_35 = arith.constant 0 : index
      %68 = vector.load %arg10[%c0_34, %c0_35] : memref<8x128xf32, #tpu.memory_space<vmem>>, vector<8x128xf32>
      %69 = vector.shape_cast %57 : vector<8x1xi1> to vector<8x1xi1>
      %70 = vector.broadcast %69 : vector<8x1xi1> to vector<8x128xi1>
      %71 = vector.broadcast %cst_1 : f32 to vector<8x128xf32>
      %72 = arith.select %70, %54, %71 : vector<8x128xi1>, vector<8x128xf32>
      %73 = arith.maximumf %68, %72 : vector<8x128xf32>
      %c0_36 = arith.constant 0 : index
      %c0_37 = arith.constant 0 : index
      %74 = vector.load %arg10[%c0_36, %c0_37] : memref<8x128xf32, #tpu.memory_space<vmem>>, vector<8x128xf32>
      tpu.vector_store %arg10[%c0_36, %c0_37], %73 {strides = array<i32>} : memref<8x128xf32, #tpu.memory_space<vmem>>, vector<8x128xf32>,
    } else {
    }
    %c11_i32_3 = arith.constant 11 : i32
    %12 = arith.cmpi eq, %arg1, %c11_i32_3 : i32
    %13 = arith.extui %12 : i1 to i32
    %c0_i32_4 = arith.constant 0 : i32
    %14 = arith.cmpi ne, %13, %c0_i32_4 : i32
    scf.if %14 {
      %c0_5 = arith.constant 0 : index
      %c0_6 = arith.constant 0 : index
      %15 = vector.load %arg2[%c0_5, %c0_6] : memref<8x1xi32, #tpu.memory_space<vmem>>, vector<8x1xi32>
      %16 = vector.broadcast %3 : i32 to vector<8x1xi32>
      %17 = arith.cmpi slt, %15, %16 : vector<8x1xi32>
      %c0_7 = arith.constant 0 : index
      %c0_8 = arith.constant 0 : index
      %18 = vector.load %arg10[%c0_7, %c0_8] : memref<8x128xf32, #tpu.memory_space<vmem>>, vector<8x128xf32>
      %c0_9 = arith.constant 0 : index
      %c0_10 = arith.constant 0 : index
      %19 = vector.load %arg8[%c0_9, %c0_10] : memref<8x128xf32, #tpu.memory_space<vmem>>, vector<8x128xf32>
      %c0_11 = arith.constant 0 : index
      %c0_12 = arith.constant 0 : index
      %20 = vector.load %arg6[%c0_11, %c0_12] : memref<8x128xf32, #tpu.memory_space<vmem>>, vector<8x128xf32>
      tpu.vector_store %arg6[%c0_11, %c0_12], %19 {strides = array<i32>} : memref<8x128xf32, #tpu.memory_space<vmem>>, vector<8x128xf32>,
      %cst_13 = arith.constant 0.000000e+00 : f32
      %21 = vector.broadcast %cst_13 : f32 to vector<8x128xf32>
      %22 = arith.maximumf %18, %21 : vector<8x128xf32>
      %23 = vector.shape_cast %17 : vector<8x1xi1> to vector<8x1xi1>
      %24 = vector.broadcast %23 : vector<8x1xi1> to vector<8x128xi1>
      %25 = arith.select %24, %22, %18 : vector<8x128xi1>, vector<8x128xf32>
      %c0_14 = arith.constant 0 : index
      %c0_15 = arith.constant 0 : index
      %26 = vector.load %arg7[%c0_14, %c0_15] : memref<8x128xf32, #tpu.memory_space<vmem>>, vector<8x128xf32>
      tpu.vector_store %arg7[%c0_14, %c0_15], %25 {strides = array<i32>} : memref<8x128xf32, #tpu.memory_space<vmem>>, vector<8x128xf32>,
    } else {
    }
    return
  }
  func.func @transform_0(%arg0: i32, %arg1: i32) -> (i32, i32) {
    %c0_i32 = arith.constant 0 : i32
    %c0_i32_0 = arith.constant 0 : i32
    %c0_i32_1 = arith.constant 0 : i32
    return %c0_i32, %c0_i32_0 : i32, i32
  }
  func.func @transform_1(%arg0: i32, %arg1: i32) -> i32 {
    %c0_i32 = arith.constant 0 : i32
    %c0_i32_0 = arith.constant 0 : i32
    return %c0_i32 : i32
  }
  func.func @transform_2(%arg0: i32, %arg1: i32) -> (i32, i32) {
    %c2_i32 = arith.constant 2 : i32
    %0 = arith.muli %c2_i32, %arg0 : i32
    %c1_i32 = arith.constant 1 : i32
    %1 = arith.subi %c1_i32, %0 : i32
    %2 = arith.muli %1, %arg1 : i32
    %c11_i32 = arith.constant 11 : i32
    %3 = arith.muli %arg0, %c11_i32 : i32
    %4 = arith.addi %2, %3 : i32
    %c0_i32 = arith.constant 0 : i32
    return %4, %arg0 : i32, i32
  }
  func.func @transform_3(%arg0: i32, %arg1: i32) -> (i32, i32, i32) {
    %c0_i32 = arith.constant 0 : i32
    %c0_i32_0 = arith.constant 0 : i32
    %c0_i32_1 = arith.constant 0 : i32
    return %arg0, %c0_i32, %c0_i32_0 : i32, i32, i32
  }
  func.func @transform_4(%arg0: i32, %arg1: i32) -> (i32, i32) {
    %c0_i32 = arith.constant 0 : i32
    %c0_i32_0 = arith.constant 0 : i32
    return %c0_i32, %arg0 : i32, i32
  }
  func.func @transform_5(%arg0: i32, %arg1: i32) -> (i32, i32) {
    %c0_i32 = arith.constant 0 : i32
    %c0_i32_0 = arith.constant 0 : i32
    return %c0_i32, %arg0 : i32, i32
  }
}

</mosaic_0001>

<bundles_post_ra>
// kernel: bilstm_pallas.3
= control target key start
LH: loop header
LB: loop body
LE: loop exit
PB: predicated region body
PF: predicated region fallthrough
CT: control target
= control target key end

     0   :  { %s1487_s0 = inlined_call_operand.vmem [shape: s32[8,1], index: 0, kind: input, shape index: {}]   ;;  %s1488_s1 = inlined_call_operand.<no memory space> [shape: s32[1], index: 1, kind: input, shape index: {}]   ;;  %s1489_s2 = inlined_call_operand.vmem [shape: bf16[96,1024], index: 2, kind: input, shape index: {}]   ;;  %s1490_s3 = inlined_call_operand.vmem [shape: bf16[2,128,512], index: 3, kind: input, shape index: {}]   ;;  %s1491_s4 = inlined_call_operand.hbm [shape: f32[8,256], index: 4, kind: output, shape index: {0}]   ;;  %s1492_s5 = inlined_call_operand.hbm [shape: f32[8,256], index: 5, kind: output, shape index: {1}]  }
   0x1   :  { %11 = sst [smem:[#allocation5]] %s1488_s1 }
   0x2   :  { %12 = vsyncpa [#allocation7], 0 }
   0x3   :  { %14 = vsyncpa [#allocation7 + $0x1], 0 }
   0x4   :  { %15 = vsyncpa [#allocation9], 0 }
   0x5   :  { %17 = vsyncpa [#allocation9 + $0x1], 0  ;;  %s1244_s20 = smov 0   ;;  %s1246_s21 = smov 0  }
   0x6   :  { %s1248_s22 = smov 0   ;;  %s1250_s23 = smov 0  }
   0x7   :  { %s1252_s24 = smov 0   ;;  %s1254_s25 = smov 0  }
   0x8   :  { %s1256_s26 = smov 0   ;;  %s1258_s27 = smov 0  }
   0x9 LB: > { %1496 = sst [smem:[#allocation12_spill]] %s1197_s25  ;;  %s801_s1 = sadd.s32 4294967295, %s1205_s27   ;;  %s1205_s27 = sphi %s1258_s27, %s23_s27   ;;  %s1201_s26 = sphi %s1256_s26, %s1507_s26   ;;  %s1197_s25 = sphi %s1254_s25, %s1506_s25   ;;  %s1193_s24 = sphi %s1252_s24, %s1505_s24   ;;  %s1189_s23 = sphi %s1250_s23, %s1504_s23   ;;  %s1185_s22 = sphi %s1248_s22, %s1510_s22   ;;  %s1181_s21 = sphi %s1246_s21, %s1509_s21   ;;  %s1177_s20 = sphi %s1244_s20, %s1508_s20  }
   0xa   : > { %1497 = sst [smem:[#allocation13_spill]] %s1201_s26  ;;  %s802_s28 = sadd.s32 4294967294, %s1205_s27  }
   0xb   : > { %s32_s29 = sadd.s32 1, %s1197_s25  ;;  %s35_s30 = sadd.s32 1, %s1201_s26 }
   0xc   : > { %p33_p0 = scmp.ge.s32.totalorder %s32_s29, 12  ;;  %p158_p1 = scmp.ne.s32.totalorder %s1185_s22, %s1181_s21 }
   0xd   : > { %p159_p2 = scmp.eq.s32.totalorder %s801_s1, 23  ;;  %p164_p4 = scmp.ne.s32.totalorder %s1181_s21, %s1177_s20 }
   0xe   : > { %s1512_s29 = smov (%p33_p0, %s32_s29), 0  ;;  %s1514_s30 = smov (!%p33_p0, %s35_s30), %s1201_s26 }
   0xf   : > { %1498 = sst [smem:[#allocation14_spill]] %s1512_s29  ;;  %p1293_p3 = por %p159_p2, %p158_p1 }
  0x10   : > { %p37_p5 = scmp.ge.s32.totalorder %s1514_s30, 2  ;;  %p165_p6 = scmp.eq.s32.totalorder %s802_s28, 23 }
  0x11   : > { %p807_p7 = scmp.ge.s32.totalorder %s1205_s27, 1  ;;  %p246_p8 = scmp.lt.s32.totalorder %s1205_s27, 25 }
  0x12   : > { %s1516_s30 = smov (%p37_p5, %s1514_s30), 0  ;;  %p1303_p9 = por %p165_p6, %p164_p4 }
  0x13   : > { %1500 = sst [smem:[#allocation15_spill]] %s1516_s30  ;;  %p247_p10 = pnand %p807_p7, %p246_p8 }
  0x14   : > { %s145_s8 = ssub.s32 %s1201_s26, %s1516_s30  ;;  %s148_s9 = sadd.s32 1, %s1185_s22 }
  0x15   : > { %p146_p11 = scmp.eq.s32.totalorder %s145_s8, 0  ;;  %250 = sbr.rel (%p247_p10) target bundleno = 408 (0x198), region = 36 }
  0x16   : > { %s1314_s11 = sand.u32 (!%p247_p10), 1, %s1181_s21   ;;  %s810_s12 = sshll.u32 (!%p247_p10), %s1193_s24, 1 }
  0x17   : > { %s1311_s10 = scalar_select %p146_p11, %s1185_s22, %s148_s9  }
  0x18   : > { %s808_s13 = sshll.u32 (!%p247_p10), %s1314_s11, 3  ;;  %s294_s14 = ssub.s32 (!%p247_p10), 1, %s810_s12 }
  0x19   : > { %1502 = sst [smem:[#allocation16_spill]] %s1311_s10  ;;  %s295_s15 = smul.u32 (!%p247_p10), %s1189_s23, %s294_s14 }
  0x1a   : > { %s811_s16 = sshll.u32 %s1193_s24, 2  ;;  %s296_s17 = smul.u32 11, %s1193_s24 }
  0x1b   : > { %p301_p12 = scmp.lt.s32.totalorder %s811_s16, 7  ;;  %p313_p13 = scmp.lt.s32.totalorder %s1193_s24, 1 }
  0x1c   : > { %s1321_s18 = sadd.s32 %s296_s17, %s295_s15  ;;  %s1337_s17 = scalar_lea.vmem [#allocation6], %s808_s13 }
  0x1d   : > { %p299_p0 = scmp.lt.s32.totalorder %s1321_s18, 11  ;;  %s1518_s16 = smov (!%p301_p12, %s811_s16), 7 }
  0x1e   : > { %s314_s1 = scalar_select %p313_p13, %s1193_s24, 1 }
  0x1f   : > { %s300_s19 = scalar_select %p299_p0, %s1321_s18, 11 }
  0x20   : > { %s954_s9 = sshll.u32 %s314_s1, 8  ;;  %s1339_s10 = scalar_lea.vmem [#allocation8], %s808_s13 }
  0x21   : > { %s812_s28 = sshll.u32 %s300_s19, 3  ;;  %s1330_s12 = scalar_lea.vmem %s1490_s3, %s954_s9 }
  0x22   : > { %s304_s8 = sadd.s32 %s812_s28, %s1518_s16  ;;  %p816_p1 = scmp.ne.s32.totalorder %s1189_s23, 0 }
  0x23   : > { %s813_s30 = sshll.u32 %s304_s8, 2 }
  0x24   : > { %s1335_s15 = scalar_lea.vmem %s1489_s2, %s813_s30  ;;  %321 = sbr.rel (%p816_p1) target bundleno = 45 (0x2d), region = 40 }
  0x29   : > { %v1207_v0 = vmov 0.0   ;;  %v1208_v1 = vmov -inf  }
  0x2a   : > { %322 = vst [vmem:[#allocation2] sm:$0xff] %v1207_v0 }
  0x2b   : > { %323 = vst [vmem:[#allocation3] sm:$0xff] %v1207_v0 }
  0x2c   : > { %324 = vst [vmem:[#allocation4] sm:$0xff] %v1208_v1 }
  0x2d PF: > { %s1342_s26 = sld [smem:[#allocation5]] }
  0x33   : > { %p818_p2 = scmp.ge.s32.totalorder %s1321_s18, %s1342_s26 }
  0x35   : > { %334 = sbr.rel (%p818_p2) target bundleno = 251 (0xfb), region = 44 }
  0x3a   : > { %v933_v2 = vld [vmem:[%s1330_s12 + $0xe0] sm:$0xf]  ;;  %v985_v3 = vld [vmem:[%s1330_s12 + $0xec] sm:$0xf0]  ;;  %v983_v4 = vld [vmem:[%s1330_s12 + $0xe4] sm:$0xf] }
  0x3b   : > { %v934_v5 = vor.u32 %v985_v3, %v933_v2  ;;  %v935_v6 = vld [vmem:[%s1330_s12 + $0xf0] sm:$0xf0]  ;;  %v941_v7 = vld [vmem:[%s1330_s12 + $0xe8] sm:$0xf]  ;;  %v986_v8 = vld [vmem:[%s1330_s12 + $0xf4] sm:$0xf0] }
  0x3c   : > { %v938_v9 = vor.u32 %v983_v4, %v935_v6  ;;  %v942_v10 = vor.u32 %v986_v8, %v941_v7  ;;  %v984_v11 = vld [vmem:[%s1330_s12 + $0xec] sm:$0xf]  ;;  %v943_v12 = vld [vmem:[%s1330_s12 + $0xf8] sm:$0xf0]  ;;  %v917_v13 = vld [vmem:[%s1330_s12 + $0xc0] sm:$0xf]  ;;  %v611_v8 = vstv %s1321_s18 }
  0x3d   : > { %535 = vmatpush.bf16.msra.mxu0 %v934_v5  ;;  %v946_v14 = vor.u32 %v984_v11, %v943_v12  ;;  %v981_v15 = vld [vmem:[%s1330_s12 + $0xcc] sm:$0xf0]  ;;  %v979_v16 = vld [vmem:[%s1330_s12 + $0xc4] sm:$0xf]  ;;  %v919_v17 = vld [vmem:[%s1330_s12 + $0xd0] sm:$0xf0] }
  0x3e   : > { %548 = vmatpush.bf16.msra.mxu1 %v938_v9  ;;  %561 = vmatpush.bf16.msra.mxu2 %v942_v10  ;;  %v918_v18 = vor.u32 %v981_v15, %v917_v13  ;;  %v922_v19 = vor.u32 %v979_v16, %v919_v17  ;;  %v925_v20 = vld [vmem:[%s1330_s12 + $0xc8] sm:$0xf]  ;;  %v982_v21 = vld [vmem:[%s1330_s12 + $0xd4] sm:$0xf0]  ;;  %v980_v22 = vld [vmem:[%s1330_s12 + $0xcc] sm:$0xf] }
  0x3f   : > { %574 = vmatpush.bf16.msra.mxu3 %v946_v14  ;;  %v926_v23 = vor.u32 %v982_v21, %v925_v20  ;;  %v927_v24 = vld [vmem:[%s1330_s12 + $0xd8] sm:$0xf0]  ;;  %v901_v25 = vld [vmem:[%s1330_s12 + $0xa0] sm:$0xf]  ;;  %v977_v26 = vld [vmem:[%s1330_s12 + $0xac] sm:$0xf0] }
  0x40   : > { %v930_v27 = vor.u32 %v980_v22, %v927_v24  ;;  %v975_v28 = vld [vmem:[%s1330_s12 + $0xa4] sm:$0xf]  ;;  %v903_v29 = vld [vmem:[%s1330_s12 + $0xb0] sm:$0xf0]  ;;  %v909_v30 = vld [vmem:[%s1330_s12 + $0xa8] sm:$0xf]  ;;  %v902_v31 = vor.u32 %v977_v26, %v901_v25 }
  0x41   : > { %536 = vmatpush.bf16.msra.mxu0 %v918_v18  ;;  %v978_v32 = vld [vmem:[%s1330_s12 + $0xb4] sm:$0xf0]  ;;  %v976_v33 = vld [vmem:[%s1330_s12 + $0xac] sm:$0xf]  ;;  %v911_v34 = vld [vmem:[%s1330_s12 + $0xb8] sm:$0xf0]  ;;  %v906_v35 = vor.u32 %v975_v28, %v903_v29 }
  0x42   : > { %549 = vmatpush.bf16.msra.mxu1 %v922_v19  ;;  %562 = vmatpush.bf16.msra.mxu2 %v926_v23  ;;  %v910_v36 = vor.u32 %v978_v32, %v909_v30  ;;  %v885_v37 = vld [vmem:[%s1330_s12 + $0x80] sm:$0xf]  ;;  %v973_v38 = vld [vmem:[%s1330_s12 + $0x8c] sm:$0xf0]  ;;  %v971_v39 = vld [vmem:[%s1330_s12 + $0x84] sm:$0xf]  ;;  %v914_v40 = vor.u32 %v976_v33, %v911_v34 }
  0x43   : > { %575 = vmatpush.bf16.msra.mxu3 %v930_v27  ;;  %v887_v41 = vld [vmem:[%s1330_s12 + $0x90] sm:$0xf0]  ;;  %v893_v42 = vld [vmem:[%s1330_s12 + $0x88] sm:$0xf]  ;;  %v974_v43 = vld [vmem:[%s1330_s12 + $0x94] sm:$0xf0]  ;;  %v886_v46 = vor.u32 %v973_v38, %v885_v37 }
  0x44   : > { %v972_v44 = vld [vmem:[%s1330_s12 + $0x8c] sm:$0xf]  ;;  %v895_v45 = vld [vmem:[%s1330_s12 + $0x98] sm:$0xf0]  ;;  %v890_v47 = vor.u32 %v971_v39, %v887_v41  ;;  %v894_v48 = vor.u32 %v974_v43, %v893_v42  ;;  %v869_v49 = vld [vmem:[%s1330_s12 + $0x60] sm:$0xf] }
  0x45   : > { %537 = vmatpush.bf16.msra.mxu0 %v902_v31  ;;  %v969_v50 = vld [vmem:[%s1330_s12 + $0x6c] sm:$0xf0]  ;;  %v967_v51 = vld [vmem:[%s1330_s12 + $0x64] sm:$0xf]  ;;  %v898_v52 = vor.u32 %v972_v44, %v895_v45  ;;  %v871_v53 = vld [vmem:[%s1330_s12 + $0x70] sm:$0xf0] }
  0x46   : > { %550 = vmatpush.bf16.msra.mxu1 %v906_v35  ;;  %563 = vmatpush.bf16.msra.mxu2 %v910_v36  ;;  %v877_v54 = vld [vmem:[%s1330_s12 + $0x68] sm:$0xf]  ;;  %v970_v55 = vld [vmem:[%s1330_s12 + $0x74] sm:$0xf0]  ;;  %v968_v56 = vld [vmem:[%s1330_s12 + $0x6c] sm:$0xf]  ;;  %v870_v58 = vor.u32 %v969_v50, %v869_v49  ;;  %v874_v59 = vor.u32 %v967_v51, %v871_v53 }
  0x47   : > { %576 = vmatpush.bf16.msra.mxu3 %v914_v40  ;;  %v879_v57 = vld [vmem:[%s1330_s12 + $0x78] sm:$0xf0]  ;;  %v878_v60 = vor.u32 %v970_v55, %v877_v54  ;;  %v853_v61 = vld [vmem:[%s1330_s12 + $0x40] sm:$0xf]  ;;  %v965_v62 = vld [vmem:[%s1330_s12 + $0x4c] sm:$0xf0] }
  0x48   : > { %v963_v63 = vld [vmem:[%s1330_s12 + $0x44] sm:$0xf]  ;;  %v882_v0 = vor.u32 %v968_v56, %v879_v57  ;;  %v855_v1 = vld [vmem:[%s1330_s12 + $0x50] sm:$0xf0]  ;;  %v861_v2 = vld [vmem:[%s1330_s12 + $0x48] sm:$0xf]  ;;  %v854_v6 = vor.u32 %v965_v62, %v853_v61 }
  0x49   : > { %538 = vmatpush.bf16.msra.mxu0 %v886_v46  ;;  %v966_v3 = vld [vmem:[%s1330_s12 + $0x54] sm:$0xf0]  ;;  %v964_v4 = vld [vmem:[%s1330_s12 + $0x4c] sm:$0xf]  ;;  %v863_v5 = vld [vmem:[%s1330_s12 + $0x58] sm:$0xf0]  ;;  %v858_v9 = vor.u32 %v963_v63, %v855_v1 }
  0x4a   : > { %551 = vmatpush.bf16.msra.mxu1 %v890_v47  ;;  %564 = vmatpush.bf16.msra.mxu2 %v894_v48  ;;  %v837_v7 = vld [vmem:[%s1330_s12 + $0x20] sm:$0xf]  ;;  %v862_v10 = vor.u32 %v966_v3, %v861_v2  ;;  %v961_v11 = vld [vmem:[%s1330_s12 + $0x2c] sm:$0xf0]  ;;  %v959_v12 = vld [vmem:[%s1330_s12 + $0x24] sm:$0xf]  ;;  %v866_v14 = vor.u32 %v964_v4, %v863_v5 }
  0x4b   : > { %577 = vmatpush.bf16.msra.mxu3 %v898_v52  ;;  %v839_v13 = vld [vmem:[%s1330_s12 + $0x30] sm:$0xf0]  ;;  %v845_v15 = vld [vmem:[%s1330_s12 + $0x28] sm:$0xf]  ;;  %v962_v16 = vld [vmem:[%s1330_s12 + $0x34] sm:$0xf0]  ;;  %v838_v21 = vor.u32 %v961_v11, %v837_v7 }
  0x4c   : > { %v610_v17 = vld [vmem:[%s1487_s0] sm:$0xff]  ;;  %v960_v18 = vld [vmem:[%s1330_s12 + $0x2c] sm:$0xf]  ;;  %v847_v19 = vld [vmem:[%s1330_s12 + $0x38] sm:$0xf0]  ;;  %v1209_v20 = vmov 0   ;;  %v842_v23 = vor.u32 %v959_v12, %v839_v13  ;;  %v846_v24 = vor.u32 %v962_v16, %v845_v15 }
  0x4d   : > { %539 = vmatpush.bf16.msra.mxu0 %v870_v58  ;;  %1067 = vset.pattern.permute.xlu0 %v1209_v20  ;;  %vm612_vm0 = vcmp.gt.s32.totalorder %v610_v17, %v611_v8  ;;  %v821_v25 = vld [vmem:[%s1330_s12] sm:$0xf]  ;;  %v957_v26 = vld [vmem:[%s1330_s12 + $0xc] sm:$0xf0]  ;;  %v955_v27 = vld [vmem:[%s1330_s12 + $0x4] sm:$0xf]  ;;  %v850_v28 = vor.u32 %v960_v18, %v847_v19 }
  0x4e   : > { %552 = vmatpush.bf16.msra.mxu1 %v874_v59  ;;  %565 = vmatpush.bf16.msra.mxu2 %v878_v60  ;;  %v613_v22 = vsel %vm612_vm0, 1, %v1209_v20  ;;  %v823_v29 = vld [vmem:[%s1330_s12 + $0x10] sm:$0xf0]  ;;  %v829_v30 = vld [vmem:[%s1330_s12 + $0x8] sm:$0xf]  ;;  %v822_v34 = vor.u32 %v957_v26, %v821_v25  ;;  %v1414_v35 = vld [vmem:[#allocation2] sm:$0xff] }
  0x4f   : > { %578 = vmatpush.bf16.msra.mxu3 %v882_v0  ;;  %v958_v31 = vld [vmem:[%s1330_s12 + $0x14] sm:$0xf0]  ;;  %615 = vperm.xlu0 %1067, %v613_v22   ;;  %v956_v32 = vld [vmem:[%s1330_s12 + $0xc] sm:$0xf]  ;;  %v831_v33 = vld [vmem:[%s1330_s12 + $0x18] sm:$0xf0]  ;;  %v826_v36 = vor.u32 %v955_v27, %v823_v29  ;;  %v342_v39 = vpack.c.bf16 %v1414_v35, %v1414_v35 }
  0x50   : > { %v830_v37 = vor.u32 %v958_v31, %v829_v30  ;;  %v834_v38 = vor.u32 %v956_v32, %v831_v33  ;;  %v335_v40 = vld [vmem:[%s1335_s15] sm:$0xff]  ;;  %v336_v46 = vld [vmem:[%s1335_s15 + $0x8] sm:$0xff] }
  0x51   : > { %540 = vmatpush.bf16.msra.mxu0 %v854_v6  ;;  %v337_v41 = vunpack.c.l.bf16 %v335_v40  ;;  %v338_v42 = vunpack.c.h.bf16 %v335_v40  ;;  %v339_v50 = vunpack.c.l.bf16 %v336_v46  ;;  %v340_v51 = vunpack.c.h.bf16 %v336_v46  ;;  %v604_v0 = vld [vmem:[#allocation3] sm:$0xff] }
  0x52   : > { %553 = vmatpush.bf16.msra.mxu1 %v858_v9  ;;  %566 = vmatpush.bf16.msra.mxu2 %v862_v10 }
  0x53   : > { %579 = vmatpush.bf16.msra.mxu3 %v866_v14  ;;  %v623_v14 = vld [vmem:[#allocation4] sm:$0xff] }
  0x55   : > { %541 = vmatpush.bf16.msra.mxu0 %v838_v21 }
  0x56   : > { %554 = vmatpush.bf16.msra.mxu1 %v842_v23  ;;  %567 = vmatpush.bf16.msra.mxu2 %v846_v24 }
  0x57   : > { %580 = vmatpush.bf16.msra.mxu3 %v850_v28 }
  0x59   : > { %542 = vmatpush.bf16.msra.mxu0 %v822_v34 }
  0x5a   : > { %555 = vmatpush.bf16.msra.mxu1 %v826_v36  ;;  %568 = vmatpush.bf16.msra.mxu2 %v830_v37 }
  0x5b   : > { %581 = vmatpush.bf16.msra.mxu3 %v834_v38 }
  0x5c   : > { %543 = vmatmul.bf16.vlgmr.msra.gmra.mxu0 %v342_v39 }
  0x5d   : > { %556 = vmatmul.bf16.vlgmr.msra.gmra.mxu1 %v342_v39  ;;  %569 = vmatmul.bf16.vlgmr.msra.gmra.mxu2 %v342_v39 }
  0x5e   : > { %582 = vmatmul.bf16.vlgmr.msra.gmra.mxu3 %v342_v39 }
  0xc1   : > { %v616_v3 = vpop.permute.xlu0 %615 }
  0xc2   : > { %vm617_vm1 = vcmp.eq.s32.totalorder %v616_v3, 1 }
  0xd9   : > { %v544_v43 = vpop.f32.mrf.mxu0 }
  0xda   : > { %v587_v44 = vadd.f32 %v544_v43, %v337_v41  ;;  %v557_v45 = vpop.f32.mrf.mxu1 }
  0xdb   : > { %v588_v47 = vadd.f32 %v557_v45, %v338_v42 }
  0xdc   : > { %v591_v48 = vmul.f32 0.5, %v587_v44 }
  0xdd   : > { %v595_v49 = vmul.f32 0.5, %v588_v47 }
  0xde   : > { %1068 = vtanh.f32 %v591_v48 }
  0xdf   : > { %1070 = vtanh.f32 %v595_v49 }
  0xe0   : > { %v570_v52 = vpop.f32.mrf.mxu2 }
  0xe1   : > { %v589_v53 = vadd.f32 %v570_v52, %v339_v50  ;;  %v583_v54 = vpop.f32.mrf.mxu3  ;;  %v546_v55 = vpop.f32.mrf.mxu0 }
  0xe2   : > { %v590_v56 = vadd.f32 %v583_v54, %v340_v51  ;;  %v559_v57 = vpop.f32.mrf.mxu1 }
  0xe3   : > { %1072 = vtanh.f32 %v589_v53 }
  0xe4   : > { %v1069_v58 = vpop.eup %1068  ;;  %v600_v59 = vmul.f32 0.5, %v590_v56 }
  0xe5   : > { %v1071_v60 = vpop.eup %1070  ;;  %v593_v61 = vadd.f32 1.0, %v1069_v58 }
  0xe6   : > { %v597_v62 = vadd.f32 1.0, %v1071_v60  ;;  %1074 = vtanh.f32 %v600_v59 }
  0xe7   : > { %v594_v63 = vmul.f32 0.5, %v593_v61 }
  0xe8   : > { %v598_v1 = vmul.f32 0.5, %v597_v62  ;;  %v572_v2 = vpop.f32.mrf.mxu2 }
  0xe9   : > { %v1073_v4 = vpop.eup %1072  ;;  %v585_v5 = vpop.f32.mrf.mxu3 }
  0xea   : > { %v605_v6 = vmul.f32 %v604_v0, %v598_v1  ;;  %v606_v7 = vmul.f32 %v1073_v4, %v594_v63 }
  0xec   : > { %v1075_v8 = vpop.eup %1074  ;;  %v607_v9 = vadd.f32 %v606_v7, %v605_v6 }
  0xed   : > { %v602_v10 = vadd.f32 1.0, %v1075_v8 }
  0xee   : > { %1076 = vtanh.f32 %v607_v9  ;;  %v621_v11 = vsel %vm617_vm1, %v607_v9, %v604_v0 }
  0xef   : > { %622 = vst [vmem:[#allocation3] sm:$0xff] %v621_v11  ;;  %v603_v12 = vmul.f32 0.5, %v602_v10 }
  0xf4   : > { %v1077_v13 = vpop.eup %1076 }
  0xf5   : > { %v609_v15 = vmul.f32 %v1077_v13, %v603_v12 }
  0xf7   : > { %v618_v16 = vsel %vm617_vm1, %v609_v15, %v1414_v35  ;;  %v624_v17 = vsel %vm617_vm1, %v609_v15, -inf }
  0xf8   : > { %619 = vst [vmem:[#allocation2] sm:$0xff] %v618_v16  ;;  %v625_v18 = vmax.f32 %v623_v14, %v624_v17 }
  0xfa   : > { %626 = vst [vmem:[#allocation4] sm:$0xff] %v625_v18 }
  0xfb PF: > { %p947_p4 = scmp.ne.s32.totalorder %s1189_s23, 11 }
  0xfd   : > { %630 = sbr.rel (%p947_p4) target bundleno = 379 (0x17b), region = 48 }
 0x102   : > { %v631_v19 = vld [vmem:[%s1487_s0] sm:$0xff]  ;;  %v632_v20 = vstv %s1342_s26  ;;  %v1210_v21 = vmov 0   ;;  %v634_v24 = vld [vmem:[#allocation4] sm:$0xff] }
 0x103   : > { %1078 = vset.pattern.permute.xlu0 %v1210_v21  ;;  %vm633_vm2 = vcmp.lt.s32.totalorder %v631_v19, %v632_v20  ;;  %v635_v23 = vld [vmem:[#allocation2] sm:$0xff]  ;;  %v637_v25 = vmax.f32 %v634_v24, 0.0 }
 0x104   : > { %v638_v22 = vsel %vm633_vm2, 1, %v1210_v21  ;;  %636 = vst [vmem:[%s1337_s17] sm:$0xff] %v635_v23 }
 0x105   : > { %640 = vperm.xlu0 %1078, %v638_v22  }
 0x177   : > { %v641_v26 = vpop.permute.xlu0 %640 }
 0x178   : > { %vm642_vm3 = vcmp.eq.s32.totalorder %v641_v26, 1 }
 0x179   : > { %v643_v27 = vsel %vm642_vm3, %v637_v25, %v634_v24 }
 0x17a   : > { %644 = vst [vmem:[%s1339_s10] sm:$0xff] %v643_v27 }
 0x17b PF: > { %s950_s23 = sshll.u32 %s1193_s24, 3  ;;  %s663_s1 = sshll.u32 %s1337_s17, 4  ;;  %s664_s1 = int_to_ptr.vmem [resolvable:$true] %s663_s1 }
 0x17c   : > { %s661_s19 = scalar_lea.hbm %s1491_s4, %s950_s23  ;;  %s646_s8 = scalar_lea.sflag [#allocation7], %s1314_s11 }
 0x17d   : > { %s665_s28 = sshll.u32 %s661_s19, 4  ;;  %s1099_s24 = scalar_lea.hbm %s1491_s4, 16  ;;  %s666_s28 = int_to_ptr.hbm [resolvable:$true] %s665_s28 }
 0x17e   : > { %s1093_s9 = sshra.s32 %s666_s28, 4  ;;  %s1094_s9 = int_to_ptr.hbm [resolvable:$true] %s1093_s9 }
 0x17f   : > { %s1095_s12 = scalar_lea.hbm %s1094_s9, 8  ;;  %p1100_p8 = scmp.lt.s32.totalorder %s1094_s9, %s1491_s4 }
 0x180   : > { %p1096_p5 = scmp.ne.s32.totalorder %s1094_s9, %s1095_s12  ;;  %p1101_p10 = scmp.lt.s32.totalorder %s1099_s24, %s1095_s12 }
 0x182   : > { %p1097_p6 = pnand %p1096_p5, %p1293_p3  ;;  %p1102_p11 = por %p1101_p10, %p1100_p8 }
 0x184   : > { %p1098_p7 = pneg %p1097_p6 }
 0x186   : > { %p1103_p12 = pnand %p1102_p11, %p1098_p7 }
 0x188   : > { %1106 = shalt.err (!%p1103_p12)
}
 0x189   : > { %987 = dma.vmem_to_hbm [thread:$0]  (%p1293_p3), %s664_s1, 128, %s666_s28, %s646_s8  }
 0x18a   : > { %s675_s30 = scalar_lea.hbm %s1492_s5, %s950_s23  ;;  %s677_s13 = sshll.u32 %s1339_s10, 4  ;;  %s678_s13 = int_to_ptr.vmem [resolvable:$true] %s677_s13 }
 0x18b   : > { %s679_s16 = sshll.u32 %s675_s30, 4  ;;  %s651_s18 = scalar_lea.sflag [#allocation9], %s1314_s11  ;;  %s680_s16 = int_to_ptr.hbm [resolvable:$true] %s679_s16 }
 0x18c   : > { %s1121_s19 = sshra.s32 %s680_s16, 4  ;;  %s1127_s1 = scalar_lea.hbm %s1492_s5, 16  ;;  %s1122_s19 = int_to_ptr.hbm [resolvable:$true] %s1121_s19 }
 0x18d   : > { %s1123_s9 = scalar_lea.hbm %s1122_s19, 8  ;;  %p1128_p2 = scmp.lt.s32.totalorder %s1122_s19, %s1492_s5 }
 0x18e   : > { %p1124_p13 = scmp.ne.s32.totalorder %s1122_s19, %s1123_s9  ;;  %p1129_p4 = scmp.lt.s32.totalorder %s1127_s1, %s1123_s9 }
 0x190   : > { %p1125_p0 = pnand %p1124_p13, %p1293_p3  ;;  %p1130_p5 = por %p1129_p4, %p1128_p2 }
 0x192   : > { %p1126_p1 = pneg %p1125_p0 }
 0x194   : > { %p1131_p6 = pnand %p1130_p5, %p1126_p1 }
 0x196   : > { %1134 = shalt.err (!%p1131_p6)
}
 0x197   : > { %988 = dma.vmem_to_hbm [thread:$0]  (%p1293_p3), %s678_s13, 128, %s680_s16, %s651_s18  }
 0x198 PF: > { %p998_p7 = scmp.ge.s32.totalorder %s1205_s27, 2  ;;  %s691_s10 = sand.u32 1, %s1177_s20  }
 0x199   : > { %s692_s11 = scalar_lea.sflag [#allocation7], %s691_s10 }
 0x19a   : > { %p992_p8 = pnand %p998_p7, %p1303_p9 }
 0x19c   : > { %p993_p10 = pneg %p992_p8 }
 0x19e   : > { %1168 = dma.done.wait (%p993_p10), %s692_s11, 128  }
 0x19f   : > { %1170 = vsyncadd (%p993_p10), %s692_s11, 4294967168  ;;  %s702_s23 = scalar_lea.sflag [#allocation9], %s691_s10 }
 0x1a0   : > { %1172 = dma.done.wait (%p993_p10), %s702_s23, 128  }
 0x1a1   : > { %1174 = vsyncadd (%p993_p10), %s702_s23, 4294967168  ;;  %s23_s27 = sadd.s32 1, %s1205_s27   ;;  %s1503_s6 = sld [smem:[#allocation16_spill]] }
 0x1a2   : > { %p20_p11 = scmp.ge.s32.totalorder %s23_s27, 26   ;;  %s1504_s23 = sld [smem:[#allocation12_spill]] }
 0x1a3   : > { %s1505_s24 = sld [smem:[#allocation13_spill]]  ;;  %s1508_s20 = smov %s1181_s21 }
 0x1a4   : > { %s1506_s25 = sld [smem:[#allocation14_spill]]  ;;  %s1509_s21 = smov %s1185_s22 }
 0x1a5   : > { %s1507_s26 = sld [smem:[#allocation15_spill]]  ;;  %22 = sbr.rel (!%p20_p11) target bundleno = 9 (0x9), region = 103 }
 0x1a7   : > { %s1510_s22 = smov %s1503_s6 }
 0x1aa   :  { %708 = vsyncpa [#allocation7], 1 }
 0x1ab   :  { %710 = vsyncpa [#allocation7 + $0x1], 1 }
 0x1ac   :  { %711 = vsyncpa [#allocation9], 1 }
 0x1ad   :  { %713 = vsyncpa [#allocation9 + $0x1], 1 }

// kernel: bilstm_pallas.2
= control target key start
LH: loop header
LB: loop body
LE: loop exit
PB: predicated region body
PF: predicated region fallthrough
CT: control target
= control target key end

     0   :  { %vm1070_vm0 = vcmask 1045504   ;;  %vm1051_vm1 = vcmask 359424   ;;  %s4796_s1 = inlined_call_operand.vmem [shape: bf16[300,1024], index: 1, kind: input, shape index: {}]   ;;  %s4797_s0 = inlined_call_operand.vmem [shape: bf16[96,300], index: 0, kind: input, shape index: {}]   ;;  %s4798_s2 = inlined_call_operand.vmem [shape: f32[1,1024], index: 2, kind: input, shape index: {}]   ;;  %s4799_s3 = inlined_call_operand.vmem [shape: bf16[96,1024], index: 3, kind: output, shape index: {}]  }
   0x1   :  { %v2429_v0 = vld [vmem:[%s4796_s1 + $0x1c0] sm:$0xf]  ;;  %v2933_v5 = vld [vmem:[%s4796_s1 + $0x1c4] sm:$0xf]  ;;  %v2141_v40 = vld [vmem:[%s4797_s0 + $0x8] sm:$0xf] }
   0x2   :  { %v2937_v1 = vld [vmem:[%s4796_s1 + $0x1dc] sm:$0xf0]  ;;  %v2431_v6 = vld [vmem:[%s4796_s1 + $0x1e0] sm:$0xf0]  ;;  %v2861_v42 = vld [vmem:[%s4797_s0 + $0x10] sm:$0xf0] }
   0x3   :  { %v2685_v2 = vld [vmem:[%s4796_s1 + $0x3c0] sm:$0xf]  ;;  %v2430_v3 = vor.u32 %v2937_v1, %v2429_v0  ;;  %v2434_v8 = vor.u32 %v2933_v5, %v2431_v6  ;;  %v2925_v18 = vld [vmem:[%s4796_s1 + $0x184] sm:$0xf]  ;;  %v3156_v51 = vor.u32 %v2861_v42, %v2141_v40 }
   0x4   :  { %v3001_v4 = vld [vmem:[%s4796_s1 + $0x3dc] sm:$0xf0]  ;;  %v2399_v19 = vld [vmem:[%s4796_s1 + $0x1a0] sm:$0xf0] }
   0x5   :  { %v2686_v7 = vor.u32 %v3001_v4, %v2685_v2  ;;  %v2781_v9 = vld [vmem:[%s4796_s1 + $0x480] sm:$0xf]  ;;  %1095 = vmatpush.bf16.msra.mxu0 %v2430_v3  ;;  %1212 = vmatpush.bf16.msra.mxu3 %v2434_v8  ;;  %v2402_v22 = vor.u32 %v2925_v18, %v2399_v19  ;;  %v2917_v30 = vld [vmem:[%s4796_s1 + $0x144] sm:$0xf] }
   0x6   :  { %v3025_v10 = vld [vmem:[%s4796_s1 + $0x49c] sm:$0x30]  ;;  %v2367_v31 = vld [vmem:[%s4796_s1 + $0x160] sm:$0xf0] }
   0x7   :  { %v2397_v11 = vld [vmem:[%s4796_s1 + $0x180] sm:$0xf]  ;;  %v2782_v12 = vor.u32 %v3025_v10, %v2781_v9  ;;  %1134 = vmatpush.bf16.msra.mxu1 %v2686_v7  ;;  %v2370_v34 = vor.u32 %v2917_v30, %v2367_v31  ;;  %v2909_v43 = vld [vmem:[%s4796_s1 + $0x104] sm:$0xf] }
   0x8   :  { %v2929_v13 = vld [vmem:[%s4796_s1 + $0x19c] sm:$0xf0]  ;;  %v2335_v44 = vld [vmem:[%s4796_s1 + $0x120] sm:$0xf0] }
   0x9   :  { %v2653_v14 = vld [vmem:[%s4796_s1 + $0x380] sm:$0xf]  ;;  %v2398_v16 = vor.u32 %v2929_v13, %v2397_v11  ;;  %v1072_v21 = vsel %vm1070_vm0, %v2782_v12, 0  ;;  %1213 = vmatpush.bf16.msra.mxu3 %v2402_v22  ;;  %v2338_v47 = vor.u32 %v2909_v43, %v2335_v44  ;;  %v2901_v53 = vld [vmem:[%s4796_s1 + $0xc4] sm:$0xf] }
   0xa   :  { %v2993_v15 = vld [vmem:[%s4796_s1 + $0x39c] sm:$0xf0]  ;;  %1178 = vmatpush.bf16.msra.mxu2 %v1072_v21  ;;  %v2303_v54 = vld [vmem:[%s4796_s1 + $0xe0] sm:$0xf0]  ;;  %v2864_v21 = vld [vmem:[%s4797_s0 + $0x28] sm:$0xf0] }
   0xb   :  { %v2654_v17 = vor.u32 %v2993_v15, %v2653_v14  ;;  %v2749_v20 = vld [vmem:[%s4796_s1 + $0x440] sm:$0xf]  ;;  %1096 = vmatpush.bf16.msra.mxu0 %v2398_v16  ;;  %v2306_v57 = vor.u32 %v2901_v53, %v2303_v54  ;;  %v2893_v62 = vld [vmem:[%s4796_s1 + $0x84] sm:$0xf] }
   0xc   :  { %v3017_v23 = vld [vmem:[%s4796_s1 + $0x45c] sm:$0xf0]  ;;  %v2271_v63 = vld [vmem:[%s4796_s1 + $0xa0] sm:$0xf0] }
   0xd   :  { %v2365_v24 = vld [vmem:[%s4796_s1 + $0x140] sm:$0xf]  ;;  %v2750_v25 = vor.u32 %v3017_v23, %v2749_v20  ;;  %1135 = vmatpush.bf16.msra.mxu1 %v2654_v17  ;;  %1214 = vmatpush.bf16.msra.mxu3 %v2370_v34  ;;  %v2274_v4 = vor.u32 %v2893_v62, %v2271_v63  ;;  %v2885_v7 = vld [vmem:[%s4796_s1 + $0x44] sm:$0xf]  ;;  %v2938_v34 = vld [vmem:[%s4796_s1 + $0x1e4] sm:$0xf0] }
   0xe   :  { %v2921_v26 = vld [vmem:[%s4796_s1 + $0x15c] sm:$0xf0]  ;;  %v2239_v8 = vld [vmem:[%s4796_s1 + $0x60] sm:$0xf0] }
   0xf   :  { %v2621_v27 = vld [vmem:[%s4796_s1 + $0x340] sm:$0xf]  ;;  %v2366_v29 = vor.u32 %v2921_v26, %v2365_v24  ;;  %1179 = vmatpush.bf16.msra.mxu2 %v2750_v25  ;;  %v2997_v9 = vld [vmem:[%s4796_s1 + $0x3c4] sm:$0xf]  ;;  %v2242_v19 = vor.u32 %v2885_v7, %v2239_v8  ;;  %v2693_v26 = vld [vmem:[%s4796_s1 + $0x3c8] sm:$0xf] }
  0x10   :  { %v2985_v28 = vld [vmem:[%s4796_s1 + $0x35c] sm:$0xf0]  ;;  %v2687_v10 = vld [vmem:[%s4796_s1 + $0x3e0] sm:$0xf0]  ;;  %v2914_v7 = vld [vmem:[%s4796_s1 + $0x124] sm:$0xf0] }
  0x11   :  { %v2717_v32 = vld [vmem:[%s4796_s1 + $0x400] sm:$0xf]  ;;  %v2622_v33 = vor.u32 %v2985_v28, %v2621_v27  ;;  %1097 = vmatpush.bf16.msra.mxu0 %v2366_v29  ;;  %1215 = vmatpush.bf16.msra.mxu3 %v2338_v47  ;;  %v2690_v13 = vor.u32 %v2997_v9, %v2687_v10  ;;  %v2989_v17 = vld [vmem:[%s4796_s1 + $0x384] sm:$0xf]  ;;  %v3002_v28 = vld [vmem:[%s4796_s1 + $0x3e4] sm:$0xf0] }
  0x12   :  { %v3009_v35 = vld [vmem:[%s4796_s1 + $0x41c] sm:$0xf0]  ;;  %v2877_v22 = vld [vmem:[%s4796_s1 + $0x4] sm:$0xf]  ;;  %v2694_v40 = vor.u32 %v3002_v28, %v2693_v26  ;;  %v2994_v47 = vld [vmem:[%s4796_s1 + $0x3a4] sm:$0xf0] }
  0x13   :  { %v2333_v36 = vld [vmem:[%s4796_s1 + $0x100] sm:$0xf]  ;;  %v2718_v41 = vor.u32 %v3009_v35, %v2717_v32  ;;  %1136 = vmatpush.bf16.msra.mxu1 %v2622_v33  ;;  %v2655_v23 = vld [vmem:[%s4796_s1 + $0x3a0] sm:$0xf0]  ;;  %v2860_v32 = vld [vmem:[%s4797_s0 + $0x8] sm:$0xf0] }
  0x14   :  { %v2913_v37 = vld [vmem:[%s4796_s1 + $0x11c] sm:$0xf0]  ;;  %v2207_v24 = vld [vmem:[%s4796_s1 + $0x20] sm:$0xf0]  ;;  %v2658_v27 = vor.u32 %v2989_v17, %v2655_v23  ;;  %v2437_v33 = vld [vmem:[%s4796_s1 + $0x1c8] sm:$0xf] }
  0x15   :  { %v2589_v38 = vld [vmem:[%s4796_s1 + $0x300] sm:$0xf]  ;;  %v2334_v45 = vor.u32 %v2913_v37, %v2333_v36  ;;  %1180 = vmatpush.bf16.msra.mxu2 %v2718_v41  ;;  %1216 = vmatpush.bf16.msra.mxu3 %v2306_v57  ;;  %v3021_v29 = vld [vmem:[%s4796_s1 + $0x484] sm:$0xf]  ;;  %v2210_v36 = vor.u32 %v2877_v22, %v2207_v24  ;;  %v2986_v57 = vld [vmem:[%s4796_s1 + $0x364] sm:$0xf0] }
  0x16   :  { %v2977_v39 = vld [vmem:[%s4796_s1 + $0x31c] sm:$0xf0]  ;;  %v2783_v30 = vld [vmem:[%s4796_s1 + $0x4a0] sm:$0x30]  ;;  %v2165_v9 = vld [vmem:[%s4797_s0 + $0x38] sm:$0xf] }
  0x17   :  { %v2590_v46 = vor.u32 %v2977_v39, %v2589_v38  ;;  %v2301_v48 = vld [vmem:[%s4796_s1 + $0xc0] sm:$0xf]  ;;  %1098 = vmatpush.bf16.msra.mxu0 %v2334_v45  ;;  %v2859_v37 = vld [vmem:[%s4797_s0 + $0x4] sm:$0xf]  ;;  %v2135_v38 = vld [vmem:[%s4797_s0 + $0xc] sm:$0xf0]  ;;  %v2786_v41 = vor.u32 %v3021_v29, %v2783_v30  ;;  %v2438_v45 = vor.u32 %v2938_v34, %v2437_v33 }
  0x18   :  { %v2905_v49 = vld [vmem:[%s4796_s1 + $0xdc] sm:$0xf0]  ;;  %2811 = vmatmul.msk.bf16.vlgmr.msra.gmra.mxu2 %vm1051_vm1, %v3156_v51  ;;  %v2981_v42 = vld [vmem:[%s4796_s1 + $0x344] sm:$0xf]  ;;  %v2970_v23 = vld [vmem:[%s4796_s1 + $0x2e4] sm:$0xf0] }
  0x19   :  { %v2557_v50 = vld [vmem:[%s4796_s1 + $0x2c0] sm:$0xf]  ;;  %v2302_v55 = vor.u32 %v2905_v49, %v2301_v48  ;;  %1137 = vmatpush.bf16.msra.mxu1 %v2590_v46  ;;  %1217 = vmatpush.bf16.msra.mxu3 %v2274_v4  ;;  %v2623_v43 = vld [vmem:[%s4796_s1 + $0x360] sm:$0xf0]  ;;  %v2661_v46 = vld [vmem:[%s4796_s1 + $0x388] sm:$0xf]  ;;  %v3287_v48 = vor.u32 %v2859_v37, %v2135_v38 }
  0x1a   :  { %v2969_v52 = vld [vmem:[%s4796_s1 + $0x2dc] sm:$0xf0]  ;;  %1251 = vmatpush.bf16.msrb.mxu2 %v2690_v13  ;;  %v2405_v49 = vld [vmem:[%s4796_s1 + $0x188] sm:$0xf]  ;;  %v1075_v53 = vsel %vm1070_vm0, %v2786_v41, 0  ;;  %v2662_v54 = vor.u32 %v2994_v47, %v2661_v46 }
  0x1b   :  { %v2558_v56 = vor.u32 %v2969_v52, %v2557_v50  ;;  %v2269_v58 = vld [vmem:[%s4796_s1 + $0x80] sm:$0xf]  ;;  %1099 = vmatpush.bf16.msra.mxu0 %v2302_v55  ;;  %v2930_v50 = vld [vmem:[%s4796_s1 + $0x1a4] sm:$0xf0]  ;;  %v2626_v52 = vor.u32 %v2981_v42, %v2623_v43  ;;  %v2973_v62 = vld [vmem:[%s4796_s1 + $0x304] sm:$0xf] }
  0x1c   :  { %v2897_v59 = vld [vmem:[%s4796_s1 + $0x9c] sm:$0xf0]  ;;  %v2629_v55 = vld [vmem:[%s4796_s1 + $0x348] sm:$0xf]  ;;  %v2867_v10 = vld [vmem:[%s4797_s0 + $0x40] sm:$0xf0] }
  0x1d   :  { %v2525_v60 = vld [vmem:[%s4796_s1 + $0x280] sm:$0xf]  ;;  %v2270_v0 = vor.u32 %v2897_v59, %v2269_v58  ;;  %1138 = vmatpush.bf16.msra.mxu1 %v2558_v56  ;;  %1218 = vmatpush.bf16.msra.mxu3 %v2242_v19  ;;  %v2406_v56 = vor.u32 %v2930_v50, %v2405_v49  ;;  %v2373_v58 = vld [vmem:[%s4796_s1 + $0x148] sm:$0xf]  ;;  %v2863_v13 = vld [vmem:[%s4797_s0 + $0x20] sm:$0xf0] }
  0x1e   :  { %v2961_v61 = vld [vmem:[%s4796_s1 + $0x29c] sm:$0xf0]  ;;  %1252 = vmatpush.bf16.msrb.mxu2 %v2658_v27  ;;  %v2922_v59 = vld [vmem:[%s4796_s1 + $0x164] sm:$0xf0]  ;;  %v2965_v19 = vld [vmem:[%s4796_s1 + $0x2c4] sm:$0xf] }
  0x1f   :  { %v2237_v1 = vld [vmem:[%s4796_s1 + $0x40] sm:$0xf]  ;;  %v2526_v3 = vor.u32 %v2961_v61, %v2525_v60  ;;  %1100 = vmatpush.bf16.msra.mxu0 %v2270_v0  ;;  %v3013_v60 = vld [vmem:[%s4796_s1 + $0x444] sm:$0xf]  ;;  %v2597_v4 = vld [vmem:[%s4796_s1 + $0x308] sm:$0xf] }
  0x20   :  { %v2889_v2 = vld [vmem:[%s4796_s1 + $0x5c] sm:$0xf0]  ;;  %v2751_v61 = vld [vmem:[%s4796_s1 + $0x460] sm:$0xf0]  ;;  %v2309_v24 = vld [vmem:[%s4796_s1 + $0xc8] sm:$0xf] }
  0x21   :  { %v2493_v5 = vld [vmem:[%s4796_s1 + $0x240] sm:$0xf]  ;;  %v2238_v14 = vor.u32 %v2889_v2, %v2237_v1  ;;  %1139 = vmatpush.bf16.msra.mxu1 %v2526_v3  ;;  %1219 = vmatpush.bf16.msra.mxu3 %v2210_v36  ;;  %v2754_v63 = vor.u32 %v3013_v60, %v2751_v61  ;;  %v2591_v0 = vld [vmem:[%s4796_s1 + $0x320] sm:$0xf0]  ;;  %v2630_v1 = vor.u32 %v2986_v57, %v2629_v55  ;;  %v2533_v30 = vld [vmem:[%s4796_s1 + $0x288] sm:$0xf] }
  0x22   :  { %v2953_v6 = vld [vmem:[%s4796_s1 + $0x25c] sm:$0xf0]  ;;  %1253 = vmatpush.bf16.msrb.mxu2 %v2626_v52  ;;  %v2594_v2 = vor.u32 %v2973_v62, %v2591_v0  ;;  %v2374_v3 = vor.u32 %v2922_v59, %v2373_v58  ;;  %v2957_v28 = vld [vmem:[%s4796_s1 + $0x284] sm:$0xf]  ;;  %v2177_v34 = vld [vmem:[%s4797_s0 + $0x50] sm:$0xf] }
  0x23   :  { %v2205_v11 = vld [vmem:[%s4796_s1] sm:$0xf]  ;;  %v2494_v18 = vor.u32 %v2953_v6, %v2493_v5  ;;  %1101 = vmatpush.bf16.msra.mxu0 %v2238_v14  ;;  %v2978_v5 = vld [vmem:[%s4796_s1 + $0x324] sm:$0xf0]  ;;  %v2862_v14 = vld [vmem:[%s4797_s0 + $0x1c] sm:$0xf] }
  0x24   :  { %v2881_v12 = vld [vmem:[%s4796_s1 + $0x1c] sm:$0xf0]  ;;  %v2341_v6 = vld [vmem:[%s4796_s1 + $0x108] sm:$0xf]  ;;  %v2598_v8 = vor.u32 %v2978_v5, %v2597_v4  ;;  %v2527_v29 = vld [vmem:[%s4796_s1 + $0x2a0] sm:$0xf0] }
  0x25   :  { %v2461_v15 = vld [vmem:[%s4796_s1 + $0x200] sm:$0xf]  ;;  %v2206_v31 = vor.u32 %v2881_v12, %v2205_v11  ;;  %1140 = vmatpush.bf16.msra.mxu1 %v2494_v18  ;;  %1368 = vmatpush.bf16.msrb.mxu3 %v2694_v40  ;;  %v2342_v11 = vor.u32 %v2914_v7, %v2341_v6  ;;  %v2145_v12 = vld [vmem:[%s4797_s0 + $0x18] sm:$0xf]  ;;  %v2157_v36 = vld [vmem:[%s4797_s0 + $0x30] sm:$0xf] }
  0x26   :  { %v2945_v16 = vld [vmem:[%s4796_s1 + $0x21c] sm:$0xf0]  ;;  %1254 = vmatpush.bf16.msrb.mxu2 %v2594_v2  ;;  %v3357_v17 = vor.u32 %v2863_v13, %v2145_v12  ;;  %v2866_v37 = vld [vmem:[%s4797_s0 + $0x38] sm:$0xf0]  ;;  %v2865_v38 = vld [vmem:[%s4797_s0 + $0x34] sm:$0xf] }
  0x27   :  { %v2153_v20 = vld [vmem:[%s4797_s0 + $0x20] sm:$0xf]  ;;  %v2462_v35 = vor.u32 %v2945_v16, %v2461_v15  ;;  %1102 = vmatpush.bf16.msra.mxu0 %v2206_v31  ;;  %v2147_v15 = vld [vmem:[%s4797_s0 + $0x24] sm:$0xf0]  ;;  %v3355_v16 = vor.u32 %v2867_v10, %v2165_v9  ;;  %v2530_v31 = vor.u32 %v2957_v28, %v2527_v29  ;;  %v3416_v42 = vor.u32 %v2866_v37, %v2157_v36  ;;  %v3005_v47 = vld [vmem:[%s4796_s1 + $0x404] sm:$0xf] }
  0x28   :  { %v2133_v25 = vld [vmem:[%s4797_s0] sm:$0xf]  ;;  %v3271_v39 = vor.u32 %v2864_v21, %v2153_v20  ;;  %v3359_v18 = vor.u32 %v2862_v14, %v2147_v15  ;;  %v2559_v20 = vld [vmem:[%s4796_s1 + $0x2e0] sm:$0xf0]  ;;  %v2565_v21 = vld [vmem:[%s4796_s1 + $0x2c8] sm:$0xf] }
  0x29   :  { %v3279_v44 = vor.u32 %v2860_v32, %v2133_v25  ;;  %1141 = vmatpush.bf16.msra.mxu1 %v2462_v35  ;;  %1369 = vmatpush.bf16.msrb.mxu3 %v2662_v54  ;;  %v2562_v22 = vor.u32 %v2965_v19, %v2559_v20  ;;  %v2906_v25 = vld [vmem:[%s4796_s1 + $0xe4] sm:$0xf0]  ;;  %v2566_v26 = vor.u32 %v2970_v23, %v2565_v21  ;;  %v2870_v35 = vld [vmem:[%s4797_s0 + $0x58] sm:$0xf0]  ;;  %v2159_v40 = vld [vmem:[%s4797_s0 + $0x3c] sm:$0xf0] }
  0x2a   :  { %2812 = vmatmul.msk.bf16.gmra.mxu2 %vm1051_vm1, %v3271_v39  ;;  %v2310_v27 = vor.u32 %v2906_v25, %v2309_v24  ;;  %v2962_v32 = vld [vmem:[%s4796_s1 + $0x2a4] sm:$0xf0]  ;;  %v3414_v41 = vor.u32 %v2870_v35, %v2177_v34  ;;  %v3418_v43 = vor.u32 %v2865_v38, %v2159_v40  ;;  %v2719_v50 = vld [vmem:[%s4796_s1 + $0x420] sm:$0xf0]  ;;  %v2873_v2 = vld [vmem:[%s4797_s0 + $0x70] sm:$0xf0] }
  0x2b   :  { %1103 = vmatmul.bf16.vlgmr.msra.gmra.mxu0 %v3279_v44  ;;  %1220 = vmatmul.bf16.vlgmr.msra.gmra.mxu3 %v3279_v44  ;;  %v2534_v33 = vor.u32 %v2962_v32, %v2533_v30  ;;  %v2898_v46 = vld [vmem:[%s4796_s1 + $0xa4] sm:$0xf0]  ;;  %v2949_v52 = vld [vmem:[%s4796_s1 + $0x244] sm:$0xf]  ;;  %v2722_v54 = vor.u32 %v3005_v47, %v2719_v50  ;;  %v2869_v4 = vld [vmem:[%s4797_s0 + $0x50] sm:$0xf0] }
  0x2c   :  { %1142 = vmatmul.bf16.vlgmr.msra.gmra.mxu1 %v3287_v48  ;;  %1295 = vmatpush.bf16.msrb.mxu0 %v1075_v53  ;;  %v2495_v53 = vld [vmem:[%s4796_s1 + $0x260] sm:$0xf0]  ;;  %v2954_v57 = vld [vmem:[%s4796_s1 + $0x264] sm:$0xf0]  ;;  %v2868_v5 = vld [vmem:[%s4797_s0 + $0x4c] sm:$0xf] }
  0x2d   :  { %1329 = vmatpush.bf16.msrb.mxu1 %v2438_v45  ;;  %1370 = vmatpush.bf16.msrb.mxu3 %v2630_v1  ;;  %v2277_v45 = vld [vmem:[%s4796_s1 + $0x88] sm:$0xf]  ;;  %v2498_v55 = vor.u32 %v2949_v52, %v2495_v53  ;;  %v2941_v58 = vld [vmem:[%s4796_s1 + $0x204] sm:$0xf]  ;;  %v2171_v6 = vld [vmem:[%s4797_s0 + $0x54] sm:$0xf0] }
  0x2e   :  { %1255 = vmatpush.bf16.msrb.mxu2 %v2562_v22  ;;  %v2278_v49 = vor.u32 %v2898_v46, %v2277_v45  ;;  %v2463_v60 = vld [vmem:[%s4796_s1 + $0x220] sm:$0xf0]  ;;  %v2245_v61 = vld [vmem:[%s4796_s1 + $0x48] sm:$0xf]  ;;  %v3483_v9 = vor.u32 %v2868_v5, %v2171_v6  ;;  %v2201_v19 = vld [vmem:[%s4797_s0 + $0x80] sm:$0xf] }
  0x2f   :  { %v2890_v62 = vld [vmem:[%s4796_s1 + $0x64] sm:$0xf0]  ;;  %v2876_v20 = vld [vmem:[%s4797_s0 + $0x88] sm:$0xf0]  ;;  %v2181_v21 = vld [vmem:[%s4797_s0 + $0x60] sm:$0xf] }
  0x30   :  { %1296 = vmatpush.bf16.msrb.mxu0 %v2754_v63  ;;  %v2466_v63 = vor.u32 %v2941_v58, %v2463_v60  ;;  %v2246_v0 = vor.u32 %v2890_v62, %v2245_v61  ;;  %v2189_v1 = vld [vmem:[%s4797_s0 + $0x68] sm:$0xf]  ;;  %v2872_v22 = vld [vmem:[%s4797_s0 + $0x68] sm:$0xf0]  ;;  %v2871_v23 = vld [vmem:[%s4797_s0 + $0x64] sm:$0xf]  ;;  %v3520_v25 = vor.u32 %v2876_v20, %v2201_v19 }
  0x31   :  { %1330 = vmatpush.bf16.msrb.mxu1 %v2406_v56  ;;  %1371 = vmatpush.bf16.msrb.mxu3 %v2598_v8  ;;  %v2501_v56 = vld [vmem:[%s4796_s1 + $0x248] sm:$0xf]  ;;  %v3479_v7 = vor.u32 %v2873_v2, %v2189_v1  ;;  %v2183_v24 = vld [vmem:[%s4797_s0 + $0x6c] sm:$0xf0]  ;;  %v3022_v30 = vld [vmem:[%s4796_s1 + $0x48c] sm:$0xf] }
  0x32   :  { %1256 = vmatpush.bf16.msrb.mxu2 %v2530_v31  ;;  %v2502_v59 = vor.u32 %v2954_v57, %v2501_v56  ;;  %v2469_v10 = vld [vmem:[%s4796_s1 + $0x208] sm:$0xf]  ;;  %v2791_v32 = vld [vmem:[%s4796_s1 + $0x4a8] sm:$0x30]  ;;  %v2193_v47 = vld [vmem:[%s4797_s0 + $0x78] sm:$0xf] }
  0x33   :  { %v2213_v12 = vld [vmem:[%s4796_s1 + $0x8] sm:$0xf]  ;;  %v2439_v34 = vld [vmem:[%s4796_s1 + $0x1e8] sm:$0xf0]  ;;  %v2794_v35 = vor.u32 %v3022_v30, %v2791_v32  ;;  %v2874_v50 = vld [vmem:[%s4797_s0 + $0x7c] sm:$0xf] }
  0x34   :  { %1297 = vmatpush.bf16.msrb.mxu0 %v2722_v54  ;;  %v2882_v14 = vld [vmem:[%s4796_s1 + $0x24] sm:$0xf0]  ;;  %v2998_v37 = vld [vmem:[%s4796_s1 + $0x3cc] sm:$0xf] }
  0x35   :  { %1331 = vmatpush.bf16.msrb.mxu1 %v2374_v3  ;;  %1372 = vmatpush.bf16.msrb.mxu3 %v2566_v26  ;;  %v2169_v3 = vld [vmem:[%s4797_s0 + $0x48] sm:$0xf]  ;;  %v2214_v15 = vor.u32 %v2882_v14, %v2213_v12  ;;  %v3522_v26 = vor.u32 %v2872_v22, %v2181_v21  ;;  %v2695_v38 = vld [vmem:[%s4796_s1 + $0x3e8] sm:$0xf0]  ;;  %v1081_v46 = vsel %vm1070_vm0, %v2794_v35, 0 }
  0x36   :  { %1257 = vmatpush.bf16.msrb.mxu2 %v2498_v55  ;;  %v3481_v8 = vor.u32 %v2869_v4, %v2169_v3  ;;  %v2789_v28 = vld [vmem:[%s4796_s1 + $0x488] sm:$0xf]  ;;  %v2698_v45 = vor.u32 %v2998_v37, %v2695_v38  ;;  %v2926_v55 = vld [vmem:[%s4796_s1 + $0x18c] sm:$0xf] }
  0x37   :  { %v3026_v29 = vld [vmem:[%s4796_s1 + $0x4a4] sm:$0x30]  ;;  %v2407_v56 = vld [vmem:[%s4796_s1 + $0x1a8] sm:$0xf0] }
  0x38   :  { %v2790_v31 = vor.u32 %v3026_v29, %v2789_v28  ;;  %v2195_v52 = vld [vmem:[%s4797_s0 + $0x84] sm:$0xf0]  ;;  %v2410_v57 = vor.u32 %v2926_v55, %v2407_v56  ;;  %v2990_v58 = vld [vmem:[%s4796_s1 + $0x38c] sm:$0xf] }
  0x39   :  { %1332 = vmatpush.bf16.msrb.mxu1 %v2342_v11  ;;  %1373 = vmatpush.bf16.msrb.mxu3 %v2534_v33  ;;  %v2946_v11 = vld [vmem:[%s4796_s1 + $0x224] sm:$0xf0]  ;;  %v2934_v33 = vld [vmem:[%s4796_s1 + $0x1cc] sm:$0xf]  ;;  %v3571_v54 = vor.u32 %v2874_v50, %v2195_v52 }
  0x3a   :  { %2813 = vmatmul.msk.bf16.gmra.mxu2 %vm1051_vm1, %v3355_v16  ;;  %v2470_v13 = vor.u32 %v2946_v11, %v2469_v10  ;;  %v2442_v36 = vor.u32 %v2934_v33, %v2439_v34  ;;  %v1078_v40 = vsel %vm1070_vm0, %v2790_v31, 0  ;;  %v2918_v61 = vld [vmem:[%s4796_s1 + $0x14c] sm:$0xf]  ;;  %v2757_v3 = vld [vmem:[%s4796_s1 + $0x448] sm:$0xf]  ;;  %v3650_v31 = vld [vmem:[%s4798_s2] sm:$0xff] }
  0x3b   :  { %1108 = vmatmul.bf16.gmra.mxu0 %v3357_v17  ;;  %1225 = vmatmul.bf16.gmra.mxu3 %v3357_v17  ;;  %v2375_v62 = vld [vmem:[%s4796_s1 + $0x168] sm:$0xf0]  ;;  %v3018_v4 = vld [vmem:[%s4796_s1 + $0x464] sm:$0xf0]  ;;  %v3653_v33 = vperm.slane %v3650_v31, 0 }
  0x3c   :  { %1147 = vmatmul.bf16.gmra.mxu1 %v3359_v18  ;;  %1258 = vmatpush.bf16.msrb.mxu2 %v2466_v63  ;;  %v2982_v63 = vld [vmem:[%s4796_s1 + $0x34c] sm:$0xf]  ;;  %v2758_v6 = vor.u32 %v3018_v4, %v2757_v3  ;;  %v3010_v50 = vld [vmem:[%s4796_s1 + $0x424] sm:$0xf0] }
  0x3d   :  { %1333 = vmatpush.bf16.msrb.mxu1 %v2310_v27  ;;  %1374 = vmatpush.bf16.msrb.mxu3 %v2502_v59  ;;  %v3524_v27 = vor.u32 %v2871_v23, %v2183_v24  ;;  %v2663_v59 = vld [vmem:[%s4796_s1 + $0x3a8] sm:$0xf0] }
  0x3e   :  { %1446 = vmatpush.bf16.msra.mxu0 %v2442_v36  ;;  %v2666_v60 = vor.u32 %v2990_v58, %v2663_v59  ;;  %v2631_v1 = vld [vmem:[%s4796_s1 + $0x368] sm:$0xf0] }
  0x3f   :  { %v2634_v2 = vor.u32 %v2982_v63, %v2631_v1  ;;  %v3014_v5 = vld [vmem:[%s4796_s1 + $0x44c] sm:$0xf] }
  0x40   :  { %1412 = vmatpush.bf16.msra.mxu2 %v1078_v40  ;;  %v2759_v10 = vld [vmem:[%s4796_s1 + $0x468] sm:$0xf0] }
  0x41   :  { %1334 = vmatpush.bf16.msrb.mxu1 %v2278_v49  ;;  %1375 = vmatpush.bf16.msrb.mxu3 %v2470_v13  ;;  %v2875_v49 = vld [vmem:[%s4797_s0 + $0x80] sm:$0xf0]  ;;  %v2762_v11 = vor.u32 %v3014_v5, %v2759_v10  ;;  %v2910_v12 = vld [vmem:[%s4796_s1 + $0x10c] sm:$0xf] }
  0x42   :  { %v3569_v53 = vor.u32 %v2875_v49, %v2193_v47  ;;  %1447 = vmatpush.bf16.msra.mxu0 %v2410_v57  ;;  %v2343_v13 = vld [vmem:[%s4796_s1 + $0x128] sm:$0xf0]  ;;  %v2725_v47 = vld [vmem:[%s4796_s1 + $0x408] sm:$0xf] }
  0x43   :  { %v2974_v14 = vld [vmem:[%s4796_s1 + $0x30c] sm:$0xf]  ;;  %v2726_v57 = vor.u32 %v3010_v50, %v2725_v47 }
  0x44   :  { %1413 = vmatpush.bf16.msra.mxu2 %v2758_v6  ;;  %v2599_v19 = vld [vmem:[%s4796_s1 + $0x328] sm:$0xf0] }
  0x45   :  { %1335 = vmatpush.bf16.msrb.mxu1 %v2246_v0  ;;  %1529 = vmatpush.bf16.msra.mxu3 %v1081_v46  ;;  %v2378_v0 = vor.u32 %v2918_v61, %v2375_v62  ;;  %v2602_v20 = vor.u32 %v2974_v14, %v2599_v19  ;;  %v2902_v22 = vld [vmem:[%s4796_s1 + $0xcc] sm:$0xf] }
  0x46   :  { %v2311_v23 = vld [vmem:[%s4796_s1 + $0xe8] sm:$0xf0] }
  0x47   :  { %1448 = vmatpush.bf16.msra.mxu0 %v2378_v0  ;;  %v2314_v24 = vor.u32 %v2902_v22, %v2311_v23  ;;  %v2966_v28 = vld [vmem:[%s4796_s1 + $0x2cc] sm:$0xf] }
  0x48   :  { %v2567_v29 = vld [vmem:[%s4796_s1 + $0x2e8] sm:$0xf0]  ;;  %1414 = vmatpush.bf16.msra.mxu2 %v2726_v57 }
  0x49   :  { %1336 = vmatpush.bf16.msrb.mxu1 %v2214_v15  ;;  %1530 = vmatpush.bf16.msra.mxu3 %v2762_v11  ;;  %v2346_v15 = vor.u32 %v2910_v12, %v2343_v13  ;;  %v2570_v30 = vor.u32 %v2966_v28, %v2567_v29  ;;  %v2279_v46 = vld [vmem:[%s4796_s1 + $0xa8] sm:$0xf0] }
  0x4a   :  { %2814 = vmatmul.msk.bf16.gmra.mxu2 %vm1051_vm1, %v3414_v41  ;;  %v2958_v52 = vld [vmem:[%s4796_s1 + $0x28c] sm:$0xf] }
  0x4b   :  { %1113 = vmatmul.bf16.gmra.mxu0 %v3416_v42  ;;  %1230 = vmatmul.bf16.gmra.mxu3 %v3416_v42  ;;  %v2535_v55 = vld [vmem:[%s4796_s1 + $0x2a8] sm:$0xf0] }
  0x4c   :  { %1152 = vmatmul.bf16.gmra.mxu1 %v3418_v43  ;;  %1449 = vmatpush.bf16.msra.mxu0 %v2346_v15  ;;  %v2538_v58 = vor.u32 %v2958_v52, %v2535_v55  ;;  %v3006_v59 = vld [vmem:[%s4796_s1 + $0x40c] sm:$0xf] }
  0x4d   :  { %1485 = vmatpush.bf16.msra.mxu1 %v2698_v45  ;;  %v2894_v45 = vld [vmem:[%s4796_s1 + $0x8c] sm:$0xf] }
  0x4e   :  { %v2282_v49 = vor.u32 %v2894_v45, %v2279_v46  ;;  %v2886_v4 = vld [vmem:[%s4796_s1 + $0x4c] sm:$0xf] }
  0x4f   :  { %v2247_v5 = vld [vmem:[%s4796_s1 + $0x68] sm:$0xf0] }
  0x50   :  { %1450 = vmatpush.bf16.msra.mxu0 %v2314_v24  ;;  %v2250_v6 = vor.u32 %v2886_v4, %v2247_v5  ;;  %v2950_v12 = vld [vmem:[%s4796_s1 + $0x24c] sm:$0xf] }
  0x51   :  { %1486 = vmatpush.bf16.msra.mxu1 %v2666_v60  ;;  %v2727_v60 = vld [vmem:[%s4796_s1 + $0x428] sm:$0xf0] }
  0x52   :  { %v2730_v62 = vor.u32 %v3006_v59, %v2727_v60  ;;  %v2503_v13 = vld [vmem:[%s4796_s1 + $0x268] sm:$0xf0]  ;;  %v2445_v59 = vld [vmem:[%s4796_s1 + $0x1d0] sm:$0xf] }
  0x53   :  { %v2506_v19 = vor.u32 %v2950_v12, %v2503_v13  ;;  %v2471_v45 = vld [vmem:[%s4796_s1 + $0x228] sm:$0xf0]  ;;  %v2939_v60 = vld [vmem:[%s4796_s1 + $0x1ec] sm:$0xf0] }
  0x54   :  { %1451 = vmatpush.bf16.msra.mxu0 %v2282_v49  ;;  %1531 = vmatpush.bf16.msra.mxu3 %v2730_v62  ;;  %v2446_v62 = vor.u32 %v2939_v60, %v2445_v59  ;;  %v3027_v12 = vld [vmem:[%s4796_s1 + $0x4ac] sm:$0x30] }
  0x55   :  { %1487 = vmatpush.bf16.msra.mxu1 %v2634_v2  ;;  %v2995_v59 = vld [vmem:[%s4796_s1 + $0x3ac] sm:$0xf0] }
  0x58   :  { %1452 = vmatpush.bf16.msra.mxu0 %v2250_v6 }
  0x59   :  { %1488 = vmatpush.bf16.msra.mxu1 %v2602_v20 }
  0x5a   :  { %2815 = vmatmul.msk.bf16.gmra.mxu2 %vm1051_vm1, %v3479_v7 }
  0x5b   :  { %1118 = vmatmul.bf16.gmra.mxu0 %v3481_v8  ;;  %1235 = vmatmul.bf16.gmra.mxu3 %v3481_v8 }
  0x5c   :  { %1157 = vmatmul.bf16.gmra.mxu1 %v3483_v9 }
  0x5d   :  { %1489 = vmatpush.bf16.msra.mxu1 %v2570_v30 }
  0x61   :  { %1490 = vmatpush.bf16.msra.mxu1 %v2538_v58 }
  0x65   :  { %1491 = vmatpush.bf16.msra.mxu1 %v2506_v19 }
  0x6a   :  { %2816 = vmatmul.msk.bf16.gmra.mxu2 %vm1051_vm1, %v3520_v25 }
  0x6b   :  { %1123 = vmatmul.bf16.gmra.mxu0 %v3522_v26  ;;  %1240 = vmatmul.bf16.gmra.mxu3 %v3522_v26 }
  0x6c   :  { %1162 = vmatmul.bf16.gmra.mxu1 %v3524_v27 }
  0x7a   :  { %1259 = vmatmul.bf16.vlgmr.msrb.gmra.mxu2 %v3287_v48 }
  0x7b   :  { %1128 = vmatmul.bf16.gmra.mxu0 %v3569_v53  ;;  %1245 = vmatmul.bf16.gmra.mxu3 %v3569_v53 }
  0x7c   :  { %1167 = vmatmul.bf16.gmra.mxu1 %v3571_v54  ;;  %1563 = vmatpush.bf16.msrb.mxu2 %v2446_v62 }
  0x8a   :  { %1264 = vmatmul.bf16.gmra.mxu2 %v3359_v18 }
  0x8b   :  { %2817 = vmatmul.msk.bf16.vlgmr.msrb.gmra.mxu0 %vm1051_vm1, %v3156_v51  ;;  %1376 = vmatmul.bf16.vlgmr.msrb.gmra.mxu3 %v3287_v48 }
  0x8c   :  { %1337 = vmatmul.bf16.vlgmr.msrb.gmra.mxu1 %v3279_v44 }
  0x9a   :  { %1269 = vmatmul.bf16.gmra.mxu2 %v3418_v43 }
  0x9b   :  { %2818 = vmatmul.msk.bf16.gmra.mxu0 %vm1051_vm1, %v3271_v39  ;;  %1381 = vmatmul.bf16.gmra.mxu3 %v3359_v18  ;;  %v1182_v21 = vpop.f32.mrf.mxu2 }
  0x9c   :  { %1342 = vmatmul.bf16.gmra.mxu1 %v3357_v17 }
  0xa3   :  { %v1184_v32 = vpop.f32.mrf.mxu2 }
  0xa8   :  { %v1104_v34 = vpop.f32.mrf.mxu0 }
  0xa9   :  { %v1105_v35 = vadd.f32 %v1104_v34, %v3653_v33  ;;  %v1143_v36 = vpop.f32.mrf.mxu1 }
  0xaa   :  { %1274 = vmatmul.bf16.gmra.mxu2 %v3483_v9 }
  0xab   :  { %v1144_v37 = vadd.f32 %v1143_v36, %v1105_v35  ;;  %2819 = vmatmul.msk.bf16.gmra.mxu0 %vm1051_vm1, %v3355_v16  ;;  %1386 = vmatmul.bf16.gmra.mxu3 %v3418_v43  ;;  %v2878_v35 = vld [vmem:[%s4796_s1 + $0xc] sm:$0xf] }
  0xac   :  { %1347 = vmatmul.bf16.gmra.mxu1 %v3416_v42  ;;  %v2215_v36 = vld [vmem:[%s4796_s1 + $0x28] sm:$0xf0] }
  0xad   :  { %v3661_v38 = vadd.f32 %v1182_v21, %v1144_v37  ;;  %v1187_v40 = vpop.f32.mrf.mxu2  ;;  %v2942_v37 = vld [vmem:[%s4796_s1 + $0x20c] sm:$0xf] }
  0xae   :  { %v3681_v56 = vpop.f32.mrf.mxu3  ;;  %v2474_v47 = vor.u32 %v2942_v37, %v2471_v45  ;;  %v2415_v45 = vld [vmem:[%s4796_s1 + $0x1b0] sm:$0xf0] }
  0xb0   :  { %v1106_v61 = vpop.f32.mrf.mxu0  ;;  %1492 = vmatpush.bf16.msra.mxu1 %v2474_v47 }
  0xb1   :  { %v1107_v63 = vadd.f32 %v1106_v61, %v3653_v33  ;;  %v1145_v0 = vpop.f32.mrf.mxu1  ;;  %v2935_v61 = vld [vmem:[%s4796_s1 + $0x1d4] sm:$0xf] }
  0xb3   :  { %v1146_v1 = vadd.f32 %v1145_v0, %v1107_v63  ;;  %v2447_v63 = vld [vmem:[%s4796_s1 + $0x1f0] sm:$0xf0]  ;;  %v2701_v0 = vld [vmem:[%s4796_s1 + $0x3d0] sm:$0xf] }
  0xb4   :  { %v2450_v4 = vor.u32 %v2935_v61, %v2447_v63 }
  0xb5   :  { %v3690_v2 = vadd.f32 %v1184_v32, %v1146_v1  ;;  %v1189_v3 = vpop.f32.mrf.mxu2  ;;  %v3003_v1 = vld [vmem:[%s4796_s1 + $0x3ec] sm:$0xf0] }
  0xb6   :  { %v3698_v10 = vpop.f32.mrf.mxu3  ;;  %v2702_v5 = vor.u32 %v3003_v1, %v2701_v0  ;;  %1680 = vmatpush.bf16.msrb.mxu3 %v2450_v4 }
  0xb8   :  { %v1109_v11 = vpop.f32.mrf.mxu0 }
  0xb9   :  { %v1110_v14 = vadd.f32 %v1109_v11, %v3653_v33  ;;  %v1148_v15 = vpop.f32.mrf.mxu1  ;;  %v2797_v11 = vld [vmem:[%s4796_s1 + $0x490] sm:$0xf] }
  0xba   :  { %1279 = vmatmul.bf16.gmra.mxu2 %v3524_v27 }
  0xbb   :  { %v1149_v20 = vadd.f32 %v1148_v15, %v1110_v14  ;;  %2820 = vmatmul.msk.bf16.gmra.mxu0 %vm1051_vm1, %v3414_v41  ;;  %1391 = vmatmul.bf16.gmra.mxu3 %v3483_v9  ;;  %v2798_v15 = vor.u32 %v3027_v12, %v2797_v11  ;;  %v2919_v11 = vld [vmem:[%s4796_s1 + $0x154] sm:$0xf] }
  0xbc   :  { %1352 = vmatmul.bf16.gmra.mxu1 %v3481_v8 }
  0xbd   :  { %v3712_v21 = vadd.f32 %v1187_v40, %v1149_v20  ;;  %v1192_v22 = vpop.f32.mrf.mxu2  ;;  %v2218_v40 = vor.u32 %v2878_v35, %v2215_v36  ;;  %v1084_v20 = vsel %vm1070_vm0, %v2798_v15, 0  ;;  %v2931_v35 = vld [vmem:[%s4796_s1 + $0x1ac] sm:$0xf0]  ;;  %v2927_v36 = vld [vmem:[%s4796_s1 + $0x194] sm:$0xf] }
  0xbe   :  { %v3714_v23 = vpop.f32.mrf.mxu3  ;;  %1646 = vmatpush.bf16.msrb.mxu1 %v1084_v20  ;;  %v2418_v47 = vor.u32 %v2927_v36, %v2415_v45  ;;  %v2637_v15 = vld [vmem:[%s4796_s1 + $0x350] sm:$0xf] }
  0xbf   :  { %1453 = vmatpush.bf16.msra.mxu0 %v2218_v40 }
  0xc0   :  { %v1111_v24 = vpop.f32.mrf.mxu0  ;;  %1681 = vmatpush.bf16.msrb.mxu3 %v2418_v47  ;;  %v2349_v47 = vld [vmem:[%s4796_s1 + $0x110] sm:$0xf] }
  0xc1   :  { %v1112_v28 = vadd.f32 %v1111_v24, %v3653_v33  ;;  %v1150_v29 = vpop.f32.mrf.mxu1 }
  0xc3   :  { %v1151_v30 = vadd.f32 %v1150_v29, %v1112_v28  ;;  %1602 = vmatpush.bf16.msrb.mxu0 %v2702_v5  ;;  %v2381_v5 = vld [vmem:[%s4796_s1 + $0x150] sm:$0xf] }
  0xc5   :  { %v3717_v32 = vadd.f32 %v1189_v3, %v1151_v30  ;;  %v1194_v34 = vpop.f32.mrf.mxu2  ;;  %v2413_v30 = vld [vmem:[%s4796_s1 + $0x190] sm:$0xf] }
  0xc6   :  { %v3731_v46 = vpop.f32.mrf.mxu3  ;;  %v2414_v40 = vor.u32 %v2931_v35, %v2413_v30 }
  0xc8   :  { %v1114_v49 = vpop.f32.mrf.mxu0  ;;  %1564 = vmatpush.bf16.msrb.mxu2 %v2414_v40 }
  0xc9   :  { %v1115_v50 = vadd.f32 %v1114_v49, %v3653_v33  ;;  %v1153_v52 = vpop.f32.mrf.mxu1 }
  0xca   :  { %1284 = vmatmul.bf16.gmra.mxu2 %v3571_v54 }
  0xcb   :  { %v1154_v55 = vadd.f32 %v1153_v52, %v1115_v50  ;;  %2821 = vmatmul.msk.bf16.gmra.mxu0 %vm1051_vm1, %v3479_v7  ;;  %1396 = vmatmul.bf16.gmra.mxu3 %v3524_v27 }
  0xcc   :  { %1357 = vmatmul.bf16.gmra.mxu1 %v3522_v26 }
  0xcd   :  { %v3739_v57 = vadd.f32 %v1192_v22, %v1154_v55  ;;  %v1197_v58 = vpop.f32.mrf.mxu2  ;;  %v2669_v55 = vld [vmem:[%s4796_s1 + $0x390] sm:$0xf] }
  0xce   :  { %v3759_v3 = vpop.f32.mrf.mxu3  ;;  %v2670_v60 = vor.u32 %v2995_v59, %v2669_v55  ;;  %v2765_v55 = vld [vmem:[%s4796_s1 + $0x450] sm:$0xf] }
  0xd0   :  { %v1116_v6 = vpop.f32.mrf.mxu0  ;;  %1603 = vmatpush.bf16.msrb.mxu0 %v2670_v60 }
  0xd1   :  { %v1117_v13 = vadd.f32 %v1116_v6, %v3653_v33  ;;  %v1155_v14 = vpop.f32.mrf.mxu1  ;;  %v2923_v6 = vld [vmem:[%s4796_s1 + $0x16c] sm:$0xf0] }
  0xd3   :  { %v1156_v19 = vadd.f32 %v1155_v14, %v1117_v13  ;;  %v2382_v13 = vor.u32 %v2923_v6, %v2381_v5  ;;  %v2383_v14 = vld [vmem:[%s4796_s1 + $0x170] sm:$0xf0] }
  0xd5   :  { %v3769_v22 = vadd.f32 %v1194_v34, %v1156_v19  ;;  %v1199_v24 = vpop.f32.mrf.mxu2  ;;  %v2987_v19 = vld [vmem:[%s4796_s1 + $0x36c] sm:$0xf0]  ;;  %1565 = vmatpush.bf16.msrb.mxu2 %v2382_v13 }
  0xd6   :  { %v3771_v28 = vpop.f32.mrf.mxu3  ;;  %v2638_v35 = vor.u32 %v2987_v19, %v2637_v15  ;;  %v2979_v15 = vld [vmem:[%s4796_s1 + $0x32c] sm:$0xf0] }
  0xd8   :  { %v1119_v29 = vpop.f32.mrf.mxu0  ;;  %1604 = vmatpush.bf16.msrb.mxu0 %v2638_v35 }
  0xd9   :  { %v1120_v37 = vadd.f32 %v1119_v29, %v3653_v33  ;;  %v1158_v34 = vpop.f32.mrf.mxu1 }
  0xda   :  { %2823 = vmatmul.msk.bf16.vlgmr.msra.gmra.mxu2 %vm1051_vm1, %v3156_v51 }
  0xdb   :  { %v1159_v49 = vadd.f32 %v1158_v34, %v1120_v37  ;;  %2822 = vmatmul.msk.bf16.gmra.mxu0 %vm1051_vm1, %v3520_v25  ;;  %1401 = vmatmul.bf16.gmra.mxu3 %v3571_v54 }
  0xdc   :  { %1362 = vmatmul.bf16.gmra.mxu1 %v3569_v53 }
  0xdd   :  { %v3792_v50 = vadd.f32 %v1197_v58, %v1159_v49  ;;  %v1202_v52 = vpop.f32.mrf.mxu2  ;;  %v2915_v49 = vld [vmem:[%s4796_s1 + $0x12c] sm:$0xf0] }
  0xde   :  { %v3800_v61 = vpop.f32.mrf.mxu3  ;;  %v2350_v60 = vor.u32 %v2915_v49, %v2349_v47  ;;  %v2907_v47 = vld [vmem:[%s4796_s1 + $0xec] sm:$0xf0]  ;;  %v2903_v49 = vld [vmem:[%s4796_s1 + $0xd4] sm:$0xf] }
  0xe0   :  { %v1121_v62 = vpop.f32.mrf.mxu0  ;;  %1566 = vmatpush.bf16.msrb.mxu2 %v2350_v60  ;;  %v2971_v60 = vld [vmem:[%s4796_s1 + $0x2ec] sm:$0xf0] }
  0xe1   :  { %v1122_v63 = vadd.f32 %v1121_v62, %v3653_v33  ;;  %v1160_v0 = vpop.f32.mrf.mxu1  ;;  %v3019_v62 = vld [vmem:[%s4796_s1 + $0x46c] sm:$0xf0] }
  0xe3   :  { %v1161_v58 = vadd.f32 %v1160_v0, %v1122_v63  ;;  %v2911_v63 = vld [vmem:[%s4796_s1 + $0x114] sm:$0xf] }
  0xe4   :  { %v2351_v0 = vld [vmem:[%s4796_s1 + $0x130] sm:$0xf0] }
  0xe5   :  { %v3803_v1 = vadd.f32 %v1199_v24, %v1161_v58  ;;  %v1204_v4 = vpop.f32.mrf.mxu2  ;;  %v2386_v24 = vor.u32 %v2919_v11, %v2383_v14  ;;  %v2766_v58 = vor.u32 %v3019_v62, %v2765_v55  ;;  %v2354_v5 = vor.u32 %v2911_v63, %v2351_v0  ;;  %v2605_v14 = vld [vmem:[%s4796_s1 + $0x310] sm:$0xf] }
  0xe6   :  { %v3814_v12 = vpop.f32.mrf.mxu3  ;;  %v2606_v19 = vor.u32 %v2979_v15, %v2605_v14 }
  0xe7   :  { %1682 = vmatpush.bf16.msrb.mxu3 %v2386_v24  ;;  %1647 = vmatpush.bf16.msrb.mxu1 %v2766_v58  ;;  %v3895_v58 = vperm.slane %v3650_v31, 1 }
  0xe8   :  { %v1124_v20 = vpop.f32.mrf.mxu0  ;;  %1605 = vmatpush.bf16.msrb.mxu0 %v2606_v19 }
  0xe9   :  { %v1125_v29 = vadd.f32 %v1124_v20, %v3653_v33  ;;  %v1163_v30 = vpop.f32.mrf.mxu1  ;;  %v1222_v15 = vadd.f32 %v3681_v56, %v3895_v58  ;;  %v2895_v56 = vld [vmem:[%s4796_s1 + $0x94] sm:$0xf] }
  0xea   :  { %2824 = vmatmul.msk.bf16.gmra.mxu2 %vm1051_vm1, %v3271_v39 }
  0xeb   :  { %v1164_v36 = vadd.f32 %v1163_v30, %v1125_v29  ;;  %1454 = vmatmul.bf16.vlgmr.msra.gmra.mxu0 %v3279_v44  ;;  %2829 = vmatmul.msk.bf16.vlgmr.msra.gmra.mxu3 %vm1051_vm1, %v3156_v51 }
  0xec   :  { %1493 = vmatmul.bf16.vlgmr.msra.gmra.mxu1 %v3287_v48  ;;  %1683 = vmatpush.bf16.msrb.mxu3 %v2354_v5 }
  0xed   :  { %v3832_v37 = vadd.f32 %v1202_v52, %v1164_v36  ;;  %v1207_v34 = vpop.f32.mrf.mxu2 }
  0xee   :  { %v3834_v40 = vpop.f32.mrf.mxu3 }
  0xf0   :  { %v1126_v45 = vpop.f32.mrf.mxu0 }
  0xf1   :  { %v1127_v52 = vadd.f32 %v1126_v45, %v3653_v33  ;;  %v1165_v59 = vpop.f32.mrf.mxu1  ;;  %v2317_v45 = vld [vmem:[%s4796_s1 + $0xd0] sm:$0xf] }
  0xf3   :  { %v1166_v6 = vadd.f32 %v1165_v59, %v1127_v52  ;;  %v2318_v52 = vor.u32 %v2907_v47, %v2317_v45  ;;  %v2573_v59 = vld [vmem:[%s4796_s1 + $0x2d0] sm:$0xf] }
  0xf4   :  { %v2574_v0 = vor.u32 %v2971_v60, %v2573_v59  ;;  %v2899_v47 = vld [vmem:[%s4796_s1 + $0xac] sm:$0xf0] }
  0xf5   :  { %v3855_v11 = vadd.f32 %v1204_v4, %v1166_v6  ;;  %v1209_v13 = vpop.f32.mrf.mxu2  ;;  %1567 = vmatpush.bf16.msrb.mxu2 %v2318_v52  ;;  %v2287_v52 = vld [vmem:[%s4796_s1 + $0xb0] sm:$0xf0] }
  0xf6   :  { %v3863_v20 = vpop.f32.mrf.mxu3  ;;  %1606 = vmatpush.bf16.msrb.mxu0 %v2574_v0  ;;  %v2963_v0 = vld [vmem:[%s4796_s1 + $0x2ac] sm:$0xf0] }
  0xf8   :  { %v1129_v24 = vpop.f32.mrf.mxu0 }
  0xf9   :  { %v1130_v29 = vadd.f32 %v1129_v24, %v3653_v33  ;;  %v1168_v30 = vpop.f32.mrf.mxu1 }
  0xfa   :  { %2825 = vmatmul.msk.bf16.gmra.mxu2 %vm1051_vm1, %v3355_v16 }
  0xfb   :  { %v1169_v4 = vadd.f32 %v1168_v30, %v1130_v29  ;;  %1459 = vmatmul.bf16.gmra.mxu0 %v3357_v17  ;;  %2830 = vmatmul.msk.bf16.gmra.mxu3 %vm1051_vm1, %v3271_v39 }
  0xfc   :  { %1498 = vmatmul.bf16.gmra.mxu1 %v3359_v18 }
  0xfd   :  { %v3872_v35 = vadd.f32 %v1207_v34, %v1169_v4  ;;  %v1260_v36 = vpop.f32.mrf.mxu2  ;;  %v2319_v34 = vld [vmem:[%s4796_s1 + $0xf0] sm:$0xf0]  ;;  %v3905_v4 = vperm.slane %v3650_v31, 2 }
  0xfe   :  { %v3883_v55 = vpop.f32.mrf.mxu3  ;;  %v2322_v63 = vor.u32 %v2903_v49, %v2319_v34  ;;  %v1261_v29 = vadd.f32 %v1260_v36, %v1222_v15  ;;  %v2290_v34 = vor.u32 %v2895_v56, %v2287_v52  ;;  %v2221_v52 = vld [vmem:[%s4796_s1 + $0x10] sm:$0xf] }
 0x100   :  { %v1131_v62 = vpop.f32.mrf.mxu0  ;;  %1684 = vmatpush.bf16.msrb.mxu3 %v2322_v63 }
 0x101   :  { %v1132_v5 = vadd.f32 %v1131_v62, %v3653_v33  ;;  %v1170_v6 = vpop.f32.mrf.mxu1  ;;  %v2285_v33 = vld [vmem:[%s4796_s1 + $0x90] sm:$0xf]  ;;  %v1224_v62 = vadd.f32 %v3698_v10, %v3895_v58 }
 0x102   :  { %v2286_v49 = vor.u32 %v2899_v47, %v2285_v33  ;;  %v2253_v33 = vld [vmem:[%s4796_s1 + $0x50] sm:$0xf] }
 0x103   :  { %v1171_v14 = vadd.f32 %v1170_v6, %v1132_v5 }
 0x104   :  { %1568 = vmatpush.bf16.msrb.mxu2 %v2286_v49  ;;  %1685 = vmatpush.bf16.msrb.mxu3 %v2290_v34  ;;  %v2883_v34 = vld [vmem:[%s4796_s1 + $0x2c] sm:$0xf0] }
 0x105   :  { %v3900_v19 = vadd.f32 %v1209_v13, %v1171_v14  ;;  %v1262_v24 = vpop.f32.mrf.mxu2 }
 0x106   :  { %v3902_v30 = vpop.f32.mrf.mxu3  ;;  %v1263_v6 = vadd.f32 %v1262_v24, %v1224_v62  ;;  %v2222_v62 = vor.u32 %v2883_v34, %v2221_v52 }
 0x108   :  { %v1299_v45 = vpop.f32.mrf.mxu0 }
 0x109   :  { %v1300_v13 = vadd.f32 %v1299_v45, %v1261_v29  ;;  %v1338_v36 = vpop.f32.mrf.mxu1  ;;  %v2733_v29 = vld [vmem:[%s4796_s1 + $0x410] sm:$0xf] }
 0x10a   :  { %2826 = vmatmul.msk.bf16.gmra.mxu2 %vm1051_vm1, %v3414_v41  ;;  %v1339_v60 = vadd.f32 %v1338_v36, %v3905_v4  ;;  %v3011_v45 = vld [vmem:[%s4796_s1 + $0x42c] sm:$0xf0] }
 0x10b   :  { %v2031_v59 = vpack.c.bf16 %v1300_v13, %v3661_v38  ;;  %1464 = vmatmul.bf16.gmra.mxu0 %v3416_v42  ;;  %2831 = vmatmul.msk.bf16.gmra.mxu3 %vm1051_vm1, %v3355_v16  ;;  %v2541_v38 = vld [vmem:[%s4796_s1 + $0x290] sm:$0xf]  ;;  %v2734_v24 = vor.u32 %v3011_v45, %v2733_v29 }
 0x10c   :  { %1503 = vmatmul.bf16.gmra.mxu1 %v3418_v43  ;;  %v2542_v5 = vor.u32 %v2963_v0, %v2541_v38  ;;  %v2891_v13 = vld [vmem:[%s4796_s1 + $0x6c] sm:$0xf0]  ;;  %v2887_v38 = vld [vmem:[%s4796_s1 + $0x54] sm:$0xf] }
 0x10d   :  { %2079 = vst [vmem:[%s4799_s3] sm:$0xff] %v2031_v59  ;;  %v1265_v63 = vpop.f32.mrf.mxu2  ;;  %v2254_v36 = vor.u32 %v2891_v13, %v2253_v33  ;;  %1648 = vmatpush.bf16.msrb.mxu1 %v2734_v24  ;;  %v1227_v59 = vadd.f32 %v3714_v23, %v3895_v58  ;;  %v2255_v0 = vld [vmem:[%s4796_s1 + $0x70] sm:$0xf0]  ;;  %v2509_v23 = vld [vmem:[%s4796_s1 + $0x250] sm:$0xf]  ;;  %v1229_v13 = vadd.f32 %v3731_v46, %v3895_v58 }
 0x10e   :  { %v1377_v14 = vpop.f32.mrf.mxu3  ;;  %1607 = vmatpush.bf16.msrb.mxu0 %v2542_v5 }
 0x10f   :  { %v3938_v15 = vadd.f32 %v1377_v14, %v1339_v60  ;;  %1569 = vmatpush.bf16.msrb.mxu2 %v2254_v36  ;;  %v1266_v5 = vadd.f32 %v1265_v63, %v1227_v59  ;;  %v2258_v14 = vor.u32 %v2887_v38, %v2255_v0  ;;  %v2879_v59 = vld [vmem:[%s4796_s1 + $0x14] sm:$0xf] }
 0x110   :  { %v1301_v10 = vpop.f32.mrf.mxu0 }
 0x111   :  { %v1302_v47 = vadd.f32 %v1301_v10, %v1263_v6  ;;  %v1340_v56 = vpop.f32.mrf.mxu1  ;;  %v2955_v10 = vld [vmem:[%s4796_s1 + $0x26c] sm:$0xf0]  ;;  %1686 = vmatpush.bf16.msrb.mxu3 %v2258_v14 }
 0x112   :  { %v2510_v33 = vor.u32 %v2955_v10, %v2509_v23 }
 0x113   :  { %v2035_v49 = vpack.c.bf16 %v1302_v47, %v3690_v2  ;;  %v1341_v2 = vadd.f32 %v1340_v56, %v3905_v4  ;;  %1570 = vmatpush.bf16.msrb.mxu2 %v2222_v62  ;;  %v2223_v62 = vld [vmem:[%s4796_s1 + $0x30] sm:$0xf0] }
 0x114   :  { %1608 = vmatpush.bf16.msrb.mxu0 %v2510_v33  ;;  %v2226_v38 = vor.u32 %v2879_v59, %v2223_v62  ;;  %v3004_v62 = vld [vmem:[%s4796_s1 + $0x3f4] sm:$0xf0] }
 0x115   :  { %2083 = vst [vmem:[%s4799_s3 + $0x20] sm:$0xff] %v2035_v49  ;;  %v1267_v60 = vpop.f32.mrf.mxu2 }
 0x116   :  { %v1379_v6 = vpop.f32.mrf.mxu3  ;;  %v1268_v49 = vadd.f32 %v1267_v60, %v1229_v13  ;;  %1687 = vmatpush.bf16.msrb.mxu3 %v2226_v38  ;;  %v1232_v60 = vadd.f32 %v3759_v3, %v3895_v58  ;;  %v1234_v13 = vadd.f32 %v3771_v28, %v3895_v58 }
 0x117   :  { %v3977_v29 = vadd.f32 %v1379_v6, %v1341_v2  ;;  %v2947_v6 = vld [vmem:[%s4796_s1 + $0x22c] sm:$0xf0] }
 0x118   :  { %v1304_v45 = vpop.f32.mrf.mxu0 }
 0x119   :  { %v1305_v47 = vadd.f32 %v1304_v45, %v1266_v5  ;;  %v1343_v56 = vpop.f32.mrf.mxu1  ;;  %v2477_v5 = vld [vmem:[%s4796_s1 + $0x210] sm:$0xf] }
 0x11a   :  { %2827 = vmatmul.msk.bf16.gmra.mxu2 %vm1051_vm1, %v3479_v7  ;;  %v1344_v24 = vadd.f32 %v1343_v56, %v3905_v4 }
 0x11b   :  { %v2039_v63 = vpack.c.bf16 %v1305_v47, %v3712_v21  ;;  %1469 = vmatmul.bf16.gmra.mxu0 %v3481_v8  ;;  %2832 = vmatmul.msk.bf16.gmra.mxu3 %vm1051_vm1, %v3414_v41 }
 0x11c   :  { %1508 = vmatmul.bf16.gmra.mxu1 %v3483_v9 }
 0x11d   :  { %2087 = vst [vmem:[%s4799_s3 + $0x40] sm:$0xff] %v2039_v63  ;;  %v1270_v36 = vpop.f32.mrf.mxu2 }
 0x11e   :  { %v1382_v52 = vpop.f32.mrf.mxu3  ;;  %v1271_v10 = vadd.f32 %v1270_v36, %v1232_v60 }
 0x11f   :  { %v3992_v21 = vadd.f32 %v1382_v52, %v1344_v24  ;;  %v2709_v52 = vld [vmem:[%s4796_s1 + $0x3d8] sm:$0xf] }
 0x120   :  { %v1306_v34 = vpop.f32.mrf.mxu0  ;;  %v2710_v60 = vor.u32 %v3004_v62, %v2709_v52  ;;  %v2677_v52 = vld [vmem:[%s4796_s1 + $0x398] sm:$0xf] }
 0x121   :  { %v1307_v2 = vadd.f32 %v1306_v34, %v1268_v49  ;;  %v1345_v46 = vpop.f32.mrf.mxu1  ;;  %v2703_v49 = vld [vmem:[%s4796_s1 + $0x3f0] sm:$0xf0] }
 0x122   :  { %v1346_v14 = vadd.f32 %v1345_v46, %v3905_v4  ;;  %v2799_v46 = vld [vmem:[%s4796_s1 + $0x4b0] sm:$0x30]  ;;  %1836 = vmatpush.bf16.msra.mxu3 %v2710_v60 }
 0x123   :  { %v2043_v0 = vpack.c.bf16 %v1307_v2, %v3717_v32  ;;  %v2478_v32 = vor.u32 %v2947_v6, %v2477_v5  ;;  %v3023_v2 = vld [vmem:[%s4796_s1 + $0x494] sm:$0xf]  ;;  %v2940_v6 = vld [vmem:[%s4796_s1 + $0x1f4] sm:$0xf0] }
 0x124   :  { %v2802_v5 = vor.u32 %v3023_v2, %v2799_v46 }
 0x125   :  { %2091 = vst [vmem:[%s4799_s3 + $0x60] sm:$0xff] %v2043_v0  ;;  %v1272_v23 = vpop.f32.mrf.mxu2  ;;  %1609 = vmatpush.bf16.msrb.mxu0 %v2478_v32 }
 0x126   :  { %v1384_v45 = vpop.f32.mrf.mxu3  ;;  %v1273_v34 = vadd.f32 %v1272_v23, %v1234_v13  ;;  %v2453_v23 = vld [vmem:[%s4796_s1 + $0x1d8] sm:$0xf] }
 0x127   :  { %v4013_v33 = vadd.f32 %v1384_v45, %v1346_v14  ;;  %v1087_v45 = vsel %vm1070_vm0, %v2802_v5, 0  ;;  %v2932_v5 = vld [vmem:[%s4796_s1 + $0x1b4] sm:$0xf0] }
 0x128   :  { %v1309_v3 = vpop.f32.mrf.mxu0 }
 0x129   :  { %v1310_v47 = vadd.f32 %v1309_v3, %v1271_v10  ;;  %v1348_v56 = vpop.f32.mrf.mxu1  ;;  %v2454_v10 = vor.u32 %v2940_v6, %v2453_v23  ;;  %1763 = vmatpush.bf16.msra.mxu0 %v1087_v45 }
 0x12a   :  { %2828 = vmatmul.msk.bf16.gmra.mxu2 %vm1051_vm1, %v3520_v25  ;;  %v1349_v24 = vadd.f32 %v1348_v56, %v3905_v4 }
 0x12b   :  { %v2047_v63 = vpack.c.bf16 %v1310_v47, %v3739_v57  ;;  %1474 = vmatmul.bf16.gmra.mxu0 %v3522_v26  ;;  %2833 = vmatmul.msk.bf16.gmra.mxu3 %vm1051_vm1, %v3479_v7  ;;  %v2999_v57 = vld [vmem:[%s4796_s1 + $0x3d4] sm:$0xf]  ;;  %v1237_v47 = vadd.f32 %v3800_v61, %v3895_v58 }
 0x12c   :  { %1513 = vmatmul.bf16.gmra.mxu1 %v3524_v27  ;;  %v2706_v28 = vor.u32 %v2999_v57, %v2703_v49  ;;  %v2671_v61 = vld [vmem:[%s4796_s1 + $0x3b0] sm:$0xf0] }
 0x12d   :  { %2095 = vst [vmem:[%s4799_s3 + $0x80] sm:$0xff] %v2047_v63  ;;  %v1275_v36 = vpop.f32.mrf.mxu2  ;;  %1797 = vmatpush.bf16.msra.mxu1 %v2454_v10 }
 0x12e   :  { %v1387_v59 = vpop.f32.mrf.mxu3  ;;  %1719 = vmatpush.bf16.msra.mxu2 %v2706_v28 }
 0x12f   :  { %v4046_v38 = vadd.f32 %v1387_v59, %v1349_v24  ;;  %v1276_v24 = vadd.f32 %v1275_v36, %v1237_v47  ;;  %v2996_v36 = vld [vmem:[%s4796_s1 + $0x3b4] sm:$0xf0]  ;;  %v1242_v47 = vadd.f32 %v3834_v40, %v3895_v58 }
 0x130   :  { %v1311_v0 = vpop.f32.mrf.mxu0  ;;  %v2678_v62 = vor.u32 %v2996_v36, %v2677_v52  ;;  %v2924_v36 = vld [vmem:[%s4796_s1 + $0x174] sm:$0xf0] }
 0x131   :  { %v1312_v14 = vadd.f32 %v1311_v0, %v1273_v34  ;;  %v1350_v32 = vpop.f32.mrf.mxu1  ;;  %v1239_v0 = vadd.f32 %v3814_v12, %v3895_v58 }
 0x132   :  { %v1351_v63 = vadd.f32 %v1350_v32, %v3905_v4  ;;  %1837 = vmatpush.bf16.msra.mxu3 %v2678_v62 }
 0x133   :  { %v2051_v3 = vpack.c.bf16 %v1312_v14, %v3769_v22  ;;  %v2991_v22 = vld [vmem:[%s4796_s1 + $0x394] sm:$0xf] }
 0x134   :  { %v2674_v28 = vor.u32 %v2991_v22, %v2671_v61  ;;  %v2988_v61 = vld [vmem:[%s4796_s1 + $0x374] sm:$0xf0] }
 0x135   :  { %2099 = vst [vmem:[%s4799_s3 + $0xa0] sm:$0xff] %v2051_v3  ;;  %v1277_v56 = vpop.f32.mrf.mxu2 }
 0x136   :  { %v1389_v13 = vpop.f32.mrf.mxu3  ;;  %1720 = vmatpush.bf16.msra.mxu2 %v2674_v28  ;;  %v1278_v23 = vadd.f32 %v1277_v56, %v1239_v0  ;;  %v2389_v28 = vld [vmem:[%s4796_s1 + $0x158] sm:$0xf] }
 0x137   :  { %v4062_v57 = vadd.f32 %v1389_v13, %v1351_v63  ;;  %v2639_v13 = vld [vmem:[%s4796_s1 + $0x370] sm:$0xf0] }
 0x138   :  { %v1314_v49 = vpop.f32.mrf.mxu0 }
 0x139   :  { %v1315_v34 = vadd.f32 %v1314_v49, %v1276_v24  ;;  %v1353_v59 = vpop.f32.mrf.mxu1  ;;  %v2983_v24 = vld [vmem:[%s4796_s1 + $0x354] sm:$0xf] }
 0x13a   :  { %1571 = vmatmul.bf16.vlgmr.msrb.gmra.mxu2 %v3279_v44  ;;  %v1354_v46 = vadd.f32 %v1353_v59, %v3905_v4  ;;  %v2642_v22 = vor.u32 %v2983_v24, %v2639_v13  ;;  %v2607_v24 = vld [vmem:[%s4796_s1 + $0x330] sm:$0xf0]  ;;  %v1247_v13 = vadd.f32 %v3883_v55, %v3895_v58  ;;  %v2916_v55 = vld [vmem:[%s4796_s1 + $0x134] sm:$0xf0] }
 0x13b   :  { %v2055_v2 = vpack.c.bf16 %v1315_v34, %v3792_v50  ;;  %1479 = vmatmul.bf16.gmra.mxu0 %v3569_v53  ;;  %2834 = vmatmul.msk.bf16.gmra.mxu3 %vm1051_vm1, %v3520_v25  ;;  %v2421_v50 = vld [vmem:[%s4796_s1 + $0x198] sm:$0xf] }
 0x13c   :  { %1518 = vmatmul.bf16.gmra.mxu1 %v3571_v54  ;;  %v2422_v14 = vor.u32 %v2932_v5, %v2421_v50  ;;  %1721 = vmatpush.bf16.msra.mxu2 %v2642_v22  ;;  %v1244_v50 = vadd.f32 %v3863_v20, %v3895_v58 }
 0x13d   :  { %2103 = vst [vmem:[%s4799_s3 + $0xc0] sm:$0xff] %v2055_v2  ;;  %v1280_v60 = vpop.f32.mrf.mxu2 }
 0x13e   :  { %v1392_v6 = vpop.f32.mrf.mxu3  ;;  %1798 = vmatpush.bf16.msra.mxu1 %v2422_v14  ;;  %v1281_v40 = vadd.f32 %v1280_v60, %v1242_v47 }
 0x13f   :  { %v4094_v32 = vadd.f32 %v1392_v6, %v1354_v46  ;;  %v2390_v46 = vor.u32 %v2924_v36, %v2389_v28 }
 0x140   :  { %v1316_v12 = vpop.f32.mrf.mxu0 }
 0x141   :  { %v1317_v10 = vadd.f32 %v1316_v12, %v1278_v23  ;;  %v1355_v45 = vpop.f32.mrf.mxu1  ;;  %v2767_v23 = vld [vmem:[%s4796_s1 + $0x470] sm:$0xf0] }
 0x142   :  { %v1356_v56 = vadd.f32 %v1355_v45, %v3905_v4  ;;  %1799 = vmatpush.bf16.msra.mxu1 %v2390_v46 }
 0x143   :  { %v2059_v3 = vpack.c.bf16 %v1317_v10, %v3803_v1  ;;  %v2645_v1 = vld [vmem:[%s4796_s1 + $0x358] sm:$0xf] }
 0x144   :  { %v2646_v59 = vor.u32 %v2988_v61, %v2645_v1  ;;  %v2357_v61 = vld [vmem:[%s4796_s1 + $0x118] sm:$0xf] }
 0x145   :  { %2107 = vst [vmem:[%s4799_s3 + $0xe0] sm:$0xff] %v2059_v3  ;;  %v1282_v63 = vpop.f32.mrf.mxu2  ;;  %v2358_v28 = vor.u32 %v2916_v55, %v2357_v61 }
 0x146   :  { %v1394_v49 = vpop.f32.mrf.mxu3  ;;  %1838 = vmatpush.bf16.msra.mxu3 %v2646_v59  ;;  %v1283_v6 = vadd.f32 %v1282_v63, %v1244_v50  ;;  %v2613_v63 = vld [vmem:[%s4796_s1 + $0x318] sm:$0xf]  ;;  %v1249_v50 = vadd.f32 %v3902_v30, %v3895_v58 }
 0x147   :  { %v4115_v52 = vadd.f32 %v1394_v49, %v1356_v56  ;;  %v2975_v56 = vld [vmem:[%s4796_s1 + $0x314] sm:$0xf]  ;;  %1800 = vmatpush.bf16.msra.mxu1 %v2358_v28  ;;  %v2972_v30 = vld [vmem:[%s4796_s1 + $0x2f4] sm:$0xf0] }
 0x148   :  { %v1319_v34 = vpop.f32.mrf.mxu0  ;;  %v2610_v1 = vor.u32 %v2975_v56, %v2607_v24  ;;  %v2325_v24 = vld [vmem:[%s4796_s1 + $0xd8] sm:$0xf] }
 0x149   :  { %v1320_v62 = vadd.f32 %v1319_v34, %v1281_v40  ;;  %v1358_v2 = vpop.f32.mrf.mxu1  ;;  %v2980_v40 = vld [vmem:[%s4796_s1 + $0x334] sm:$0xf0] }
 0x14a   :  { %1576 = vmatmul.bf16.gmra.mxu2 %v3357_v17  ;;  %v1359_v60 = vadd.f32 %v1358_v2, %v3905_v4  ;;  %v2614_v22 = vor.u32 %v2980_v40, %v2613_v63  ;;  %v2908_v63 = vld [vmem:[%s4796_s1 + $0xf4] sm:$0xf0] }
 0x14b   :  { %v2063_v0 = vpack.c.bf16 %v1320_v62, %v3832_v37  ;;  %1610 = vmatmul.bf16.vlgmr.msrb.gmra.mxu0 %v3287_v48  ;;  %1688 = vmatmul.bf16.vlgmr.msrb.gmra.mxu3 %v3279_v44  ;;  %v3015_v37 = vld [vmem:[%s4796_s1 + $0x454] sm:$0xf] }
 0x14c   :  { %2835 = vmatmul.msk.bf16.vlgmr.msrb.gmra.mxu1 %vm1051_vm1, %v3156_v51  ;;  %v2770_v12 = vor.u32 %v3015_v37, %v2767_v23  ;;  %1722 = vmatpush.bf16.msra.mxu2 %v2610_v1  ;;  %v2575_v37 = vld [vmem:[%s4796_s1 + $0x2f0] sm:$0xf0]  ;;  %v2581_v23 = vld [vmem:[%s4796_s1 + $0x2d8] sm:$0xf]  ;;  %v2326_v1 = vor.u32 %v2908_v63, %v2325_v24 }
 0x14d   :  { %2111 = vst [vmem:[%s4799_s3 + $0x100] sm:$0xff] %v2063_v0  ;;  %v1285_v5 = vpop.f32.mrf.mxu2  ;;  %1839 = vmatpush.bf16.msra.mxu3 %v2614_v22 }
 0x14e   :  { %v1397_v14 = vpop.f32.mrf.mxu3  ;;  %1764 = vmatpush.bf16.msra.mxu0 %v2770_v12  ;;  %v1286_v34 = vadd.f32 %v1285_v5, %v1247_v13  ;;  %1801 = vmatpush.bf16.msra.mxu1 %v2326_v1 }
 0x14f   :  { %v4141_v10 = vadd.f32 %v1397_v14, %v1359_v60 }
 0x150   :  { %v1321_v45 = vpop.f32.mrf.mxu0 }
 0x151   :  { %v1322_v20 = vadd.f32 %v1321_v45, %v1283_v6  ;;  %v1360_v3 = vpop.f32.mrf.mxu1 }
 0x152   :  { %v1361_v49 = vadd.f32 %v1360_v3, %v3905_v4 }
 0x153   :  { %v2067_v47 = vpack.c.bf16 %v1322_v20, %v3855_v11  ;;  %v2582_v20 = vor.u32 %v2972_v30, %v2581_v23  ;;  %v2735_v23 = vld [vmem:[%s4796_s1 + $0x430] sm:$0xf0] }
 0x155   :  { %2115 = vst [vmem:[%s4799_s3 + $0x120] sm:$0xff] %v2067_v47  ;;  %v1287_v11 = vpop.f32.mrf.mxu2  ;;  %1840 = vmatpush.bf16.msra.mxu3 %v2582_v20  ;;  %v2511_v20 = vld [vmem:[%s4796_s1 + $0x270] sm:$0xf0] }
 0x156   :  { %v1399_v59 = vpop.f32.mrf.mxu3  ;;  %v1288_v6 = vadd.f32 %v1287_v11, %v1249_v50  ;;  %v4207_v11 = vperm.slane %v3650_v31, 3  ;;  %v2959_v31 = vld [vmem:[%s4796_s1 + $0x294] sm:$0xf] }
 0x157   :  { %v4168_v36 = vadd.f32 %v1399_v59, %v1361_v49  ;;  %v2549_v59 = vld [vmem:[%s4796_s1 + $0x298] sm:$0xf]  ;;  %v3007_v50 = vld [vmem:[%s4796_s1 + $0x414] sm:$0xf] }
 0x158   :  { %v1324_v62 = vpop.f32.mrf.mxu0  ;;  %v2738_v30 = vor.u32 %v3007_v50, %v2735_v23 }
 0x159   :  { %v1325_v2 = vadd.f32 %v1324_v62, %v1286_v34  ;;  %v1363_v46 = vpop.f32.mrf.mxu1 }
 0x15a   :  { %1581 = vmatmul.bf16.gmra.mxu2 %v3416_v42  ;;  %v1364_v60 = vadd.f32 %v1363_v46, %v3905_v4  ;;  %1765 = vmatpush.bf16.msra.mxu0 %v2738_v30  ;;  %v2485_v30 = vld [vmem:[%s4796_s1 + $0x218] sm:$0xf] }
 0x15b   :  { %v2071_v0 = vpack.c.bf16 %v1325_v2, %v3872_v35  ;;  %1615 = vmatmul.bf16.gmra.mxu0 %v3359_v18  ;;  %1693 = vmatmul.bf16.gmra.mxu3 %v3357_v17  ;;  %v2967_v35 = vld [vmem:[%s4796_s1 + $0x2d4] sm:$0xf]  ;;  %v2964_v2 = vld [vmem:[%s4796_s1 + $0x2b4] sm:$0xf0] }
 0x15c   :  { %2836 = vmatmul.msk.bf16.gmra.mxu1 %vm1051_vm1, %v3271_v39  ;;  %v2578_v58 = vor.u32 %v2967_v35, %v2575_v37  ;;  %v2550_v46 = vor.u32 %v2964_v2, %v2549_v59 }
 0x15d   :  { %2119 = vst [vmem:[%s4799_s3 + $0x140] sm:$0xff] %v2071_v0  ;;  %v1416_v5 = vpop.f32.mrf.mxu2  ;;  %v2293_v0 = vld [vmem:[%s4796_s1 + $0x98] sm:$0xf] }
 0x15e   :  { %v1402_v14 = vpop.f32.mrf.mxu3  ;;  %1723 = vmatpush.bf16.msra.mxu2 %v2578_v58  ;;  %1841 = vmatpush.bf16.msra.mxu3 %v2550_v46 }
 0x15f   :  { %v4194_v12 = vadd.f32 %v1402_v14, %v1364_v60  ;;  %v2900_v60 = vld [vmem:[%s4796_s1 + $0xb4] sm:$0xf0] }
 0x160   :  { %v1326_v45 = vpop.f32.mrf.mxu0  ;;  %v2294_v37 = vor.u32 %v2900_v60, %v2293_v0 }
 0x161   :  { %v1327_v3 = vadd.f32 %v1326_v45, %v1288_v6  ;;  %v1365_v47 = vpop.f32.mrf.mxu1  ;;  %v1417_v6 = vadd.f32 %v1416_v5, %v3938_v15  ;;  %v2951_v45 = vld [vmem:[%s4796_s1 + $0x254] sm:$0xf] }
 0x162   :  { %v1366_v40 = vadd.f32 %v1365_v47, %v3905_v4  ;;  %v2543_v4 = vld [vmem:[%s4796_s1 + $0x2b0] sm:$0xf0]  ;;  %1802 = vmatpush.bf16.msra.mxu1 %v2294_v37  ;;  %v2514_v47 = vor.u32 %v2951_v45, %v2511_v20  ;;  %v2948_v45 = vld [vmem:[%s4796_s1 + $0x234] sm:$0xf0] }
 0x163   :  { %v2075_v56 = vpack.c.bf16 %v1327_v3, %v3900_v19  ;;  %v2546_v62 = vor.u32 %v2959_v31, %v2543_v4  ;;  %v2943_v15 = vld [vmem:[%s4796_s1 + $0x214] sm:$0xf] }
 0x164   :  { %v2479_v5 = vld [vmem:[%s4796_s1 + $0x230] sm:$0xf0] }
 0x165   :  { %2123 = vst [vmem:[%s4799_s3 + $0x160] sm:$0xff] %v2075_v56  ;;  %v1418_v13 = vpop.f32.mrf.mxu2  ;;  %1724 = vmatpush.bf16.msra.mxu2 %v2546_v62  ;;  %v2482_v1 = vor.u32 %v2943_v15, %v2479_v5 }
 0x166   :  { %v1404_v19 = vpop.f32.mrf.mxu3 }
 0x167   :  { %v4210_v49 = vadd.f32 %v1404_v19, %v1366_v40  ;;  %v2517_v19 = vld [vmem:[%s4796_s1 + $0x258] sm:$0xf] }
 0x168   :  { %v1455_v22 = vpop.f32.mrf.mxu0 }
 0x169   :  { %v1456_v61 = vadd.f32 %v1455_v22, %v4207_v11  ;;  %v1494_v55 = vpop.f32.mrf.mxu1  ;;  %1725 = vmatpush.bf16.msra.mxu2 %v2514_v47  ;;  %v2956_v22 = vld [vmem:[%s4796_s1 + $0x274] sm:$0xf0] }
 0x16a   :  { %1586 = vmatmul.bf16.gmra.mxu2 %v3481_v8  ;;  %v2884_v47 = vld [vmem:[%s4796_s1 + $0x34] sm:$0xf0] }
 0x16b   :  { %1620 = vmatmul.bf16.gmra.mxu0 %v3418_v43  ;;  %v1495_v34 = vadd.f32 %v1494_v55, %v1456_v61  ;;  %1698 = vmatmul.bf16.gmra.mxu3 %v3416_v42  ;;  %v2518_v55 = vor.u32 %v2956_v22, %v2517_v19 }
 0x16c   :  { %2837 = vmatmul.msk.bf16.gmra.mxu1 %vm1051_vm1, %v3355_v16 }
 0x16d   :  { %v1421_v28 = vpop.f32.mrf.mxu2  ;;  %1726 = vmatpush.bf16.msra.mxu2 %v2482_v1  ;;  %1842 = vmatpush.bf16.msra.mxu3 %v2518_v55  ;;  %v3028_v55 = vld [vmem:[%s4796_s1 + $0x4b4] sm:$0x30] }
 0x16e   :  { %v1533_v35 = vpop.f32.mrf.mxu3 }
 0x16f   :  { %v1534_v14 = vadd.f32 %v1533_v35, %v1495_v34  ;;  %v1419_v34 = vadd.f32 %v1418_v13, %v3977_v29  ;;  %v2261_v29 = vld [vmem:[%s4796_s1 + $0x58] sm:$0xf]  ;;  %v1422_v35 = vadd.f32 %v1421_v28, %v3992_v21  ;;  %v2486_v21 = vor.u32 %v2948_v45, %v2485_v30 }
 0x170   :  { %v1457_v58 = vpop.f32.mrf.mxu0  ;;  %v2892_v13 = vld [vmem:[%s4796_s1 + $0x74] sm:$0xf0] }
 0x171   :  { %v1496_v3 = vpop.f32.mrf.mxu1  ;;  %v2032_v56 = vpack.c.bf16 %v1534_v14, %v1417_v6  ;;  %v1458_v24 = vadd.f32 %v1457_v58, %v4207_v11  ;;  %v2262_v60 = vor.u32 %v2892_v13, %v2261_v29  ;;  %1843 = vmatpush.bf16.msra.mxu3 %v2486_v21 }
 0x173   :  { %2080 = vst [vmem:[%s4799_s3 + $0x8] sm:$0xff] %v2032_v56  ;;  %v1497_v40 = vadd.f32 %v1496_v3, %v1458_v24  ;;  %1803 = vmatpush.bf16.msra.mxu1 %v2262_v60  ;;  %v2229_v3 = vld [vmem:[%s4796_s1 + $0x18] sm:$0xf] }
 0x174   :  { %v2230_v24 = vor.u32 %v2884_v47, %v2229_v3 }
 0x175   :  { %v1423_v63 = vpop.f32.mrf.mxu2 }
 0x176   :  { %v1535_v61 = vpop.f32.mrf.mxu3  ;;  %v1424_v15 = vadd.f32 %v1423_v63, %v4013_v33  ;;  %v2805_v63 = vld [vmem:[%s4796_s1 + $0x498] sm:$0xf] }
 0x177   :  { %v1536_v31 = vadd.f32 %v1535_v61, %v1497_v40  ;;  %1804 = vmatpush.bf16.msra.mxu1 %v2230_v24 }
 0x178   :  { %v1460_v4 = vpop.f32.mrf.mxu0 }
 0x179   :  { %v1461_v59 = vadd.f32 %v1460_v4, %v4207_v11  ;;  %v1499_v62 = vpop.f32.mrf.mxu1  ;;  %v2036_v2 = vpack.c.bf16 %v1536_v31, %v1419_v34  ;;  %v3024_v34 = vld [vmem:[%s4796_s1 + $0x49c] sm:$0xf]  ;;  %v2806_v4 = vor.u32 %v3028_v55, %v2805_v63 }
 0x17a   :  { %1591 = vmatmul.bf16.gmra.mxu2 %v3522_v26 }
 0x17b   :  { %1625 = vmatmul.bf16.gmra.mxu0 %v3483_v9  ;;  %2084 = vst [vmem:[%s4799_s3 + $0x28] sm:$0xff] %v2036_v2  ;;  %v1500_v46 = vadd.f32 %v1499_v62, %v1461_v59  ;;  %1703 = vmatmul.bf16.gmra.mxu3 %v3481_v8  ;;  %v2807_v59 = vld [vmem:[%s4796_s1 + $0x4b8] sm:$0x30] }
 0x17c   :  { %2838 = vmatmul.msk.bf16.gmra.mxu1 %vm1051_vm1, %v3414_v41  ;;  %v2936_v62 = vld [vmem:[%s4796_s1 + $0x1dc] sm:$0xf]  ;;  %v2810_v60 = vor.u32 %v3024_v34, %v2807_v59 }
 0x17d   :  { %v1426_v0 = vpop.f32.mrf.mxu2  ;;  %v2455_v2 = vld [vmem:[%s4796_s1 + $0x1f8] sm:$0xf0] }
 0x17e   :  { %v1538_v50 = vpop.f32.mrf.mxu3 }
 0x17f   :  { %v1539_v37 = vadd.f32 %v1538_v50, %v1500_v46  ;;  %v1427_v46 = vadd.f32 %v1426_v0, %v4046_v38  ;;  %v2458_v50 = vor.u32 %v2936_v62, %v2455_v2  ;;  %v3000_v38 = vld [vmem:[%s4796_s1 + $0x3dc] sm:$0xf] }
 0x180   :  { %v1462_v23 = vpop.f32.mrf.mxu0  ;;  %v2711_v0 = vld [vmem:[%s4796_s1 + $0x3f8] sm:$0xf0] }
 0x181   :  { %v1501_v6 = vpop.f32.mrf.mxu1  ;;  %v2040_v14 = vpack.c.bf16 %v1539_v37, %v1422_v35  ;;  %v1463_v58 = vadd.f32 %v1462_v23, %v4207_v11  ;;  %v1090_v37 = vsel %vm1070_vm0, %v2806_v4, 0  ;;  %1914 = vmatpush.bf16.msrb.mxu0 %v2458_v50  ;;  %v2714_v30 = vor.u32 %v3000_v38, %v2711_v0  ;;  %v2647_v38 = vld [vmem:[%s4796_s1 + $0x378] sm:$0xf0] }
 0x182   :  { %1880 = vmatpush.bf16.msrb.mxu2 %v1090_v37 }
 0x183   :  { %2088 = vst [vmem:[%s4799_s3 + $0x48] sm:$0xff] %v2040_v14  ;;  %v1502_v28 = vadd.f32 %v1501_v6, %v1463_v58  ;;  %v1093_v14 = vsel %vm1070_vm0, %v2810_v60, 0  ;;  %1953 = vmatpush.bf16.msrb.mxu1 %v2714_v30  ;;  %v2773_v30 = vld [vmem:[%s4796_s1 + $0x458] sm:$0xf] }
 0x184   :  { %1997 = vmatpush.bf16.msrb.mxu3 %v1093_v14 }
 0x185   :  { %v1428_v20 = vpop.f32.mrf.mxu2 }
 0x186   :  { %v1540_v56 = vpop.f32.mrf.mxu3 }
 0x187   :  { %v1541_v5 = vadd.f32 %v1540_v56, %v1502_v28  ;;  %v1429_v28 = vadd.f32 %v1428_v20, %v4062_v57  ;;  %v2928_v57 = vld [vmem:[%s4796_s1 + $0x19c] sm:$0xf] }
 0x188   :  { %v1465_v1 = vpop.f32.mrf.mxu0  ;;  %v2423_v20 = vld [vmem:[%s4796_s1 + $0x1b8] sm:$0xf0] }
 0x189   :  { %v1466_v40 = vadd.f32 %v1465_v1, %v4207_v11  ;;  %v1504_v19 = vpop.f32.mrf.mxu1  ;;  %v2044_v22 = vpack.c.bf16 %v1541_v5, %v1424_v15 }
 0x18a   :  { %1596 = vmatmul.bf16.gmra.mxu2 %v3569_v53 }
 0x18b   :  { %1630 = vmatmul.bf16.gmra.mxu0 %v3524_v27  ;;  %2092 = vst [vmem:[%s4799_s3 + $0x68] sm:$0xff] %v2044_v22  ;;  %v1505_v61 = vadd.f32 %v1504_v19, %v1466_v40  ;;  %1708 = vmatmul.bf16.gmra.mxu3 %v3522_v26  ;;  %v2426_v40 = vor.u32 %v2928_v57, %v2423_v20  ;;  %v2992_v19 = vld [vmem:[%s4796_s1 + $0x39c] sm:$0xf] }
 0x18c   :  { %2839 = vmatmul.msk.bf16.gmra.mxu1 %vm1051_vm1, %v3479_v7  ;;  %v2679_v22 = vld [vmem:[%s4796_s1 + $0x3b8] sm:$0xf0] }
 0x18d   :  { %v1431_v33 = vpop.f32.mrf.mxu2  ;;  %1915 = vmatpush.bf16.msrb.mxu0 %v2426_v40  ;;  %v2682_v63 = vor.u32 %v2992_v19, %v2679_v22  ;;  %v2912_v19 = vld [vmem:[%s4796_s1 + $0x11c] sm:$0xf] }
 0x18e   :  { %v1543_v31 = vpop.f32.mrf.mxu3  ;;  %v1432_v55 = vadd.f32 %v1431_v33, %v4094_v32  ;;  %v2391_v32 = vld [vmem:[%s4796_s1 + $0x178] sm:$0xf0] }
 0x18f   :  { %v1544_v29 = vadd.f32 %v1543_v31, %v1505_v61  ;;  %1954 = vmatpush.bf16.msrb.mxu1 %v2682_v63  ;;  %v2359_v22 = vld [vmem:[%s4796_s1 + $0x138] sm:$0xf0] }
 0x190   :  { %v1467_v13 = vpop.f32.mrf.mxu0  ;;  %v2976_v63 = vld [vmem:[%s4796_s1 + $0x31c] sm:$0xf] }
 0x191   :  { %v1506_v35 = vpop.f32.mrf.mxu1  ;;  %v2048_v23 = vpack.c.bf16 %v1544_v29, %v1427_v46  ;;  %v1468_v6 = vadd.f32 %v1467_v13, %v4207_v11  ;;  %v2920_v29 = vld [vmem:[%s4796_s1 + $0x15c] sm:$0xf] }
 0x192   :  { %v2394_v13 = vor.u32 %v2920_v29, %v2391_v32 }
 0x193   :  { %2096 = vst [vmem:[%s4799_s3 + $0x88] sm:$0xff] %v2048_v23  ;;  %v1507_v45 = vadd.f32 %v1506_v35, %v1468_v6 }
 0x194   :  { %1916 = vmatpush.bf16.msrb.mxu0 %v2394_v13  ;;  %v2327_v13 = vld [vmem:[%s4796_s1 + $0xf8] sm:$0xf0] }
 0x195   :  { %v1433_v58 = vpop.f32.mrf.mxu2 }
 0x196   :  { %v1545_v21 = vpop.f32.mrf.mxu3  ;;  %v1434_v60 = vadd.f32 %v1433_v58, %v4115_v52  ;;  %v2984_v52 = vld [vmem:[%s4796_s1 + $0x35c] sm:$0xf] }
 0x197   :  { %v1546_v3 = vadd.f32 %v1545_v21, %v1507_v45  ;;  %v2650_v58 = vor.u32 %v2984_v52, %v2647_v38  ;;  %v3020_v45 = vld [vmem:[%s4796_s1 + $0x474] sm:$0xf0]  ;;  %v3016_v21 = vld [vmem:[%s4796_s1 + $0x45c] sm:$0xf]  ;;  %v4443_v52 = vld [vmem:[%s4798_s2] sm:$0xff] }
 0x198   :  { %v1470_v47 = vpop.f32.mrf.mxu0  ;;  %v4446_v38 = vperm.slane %v4443_v52, 4 }
 0x199   :  { %v1471_v56 = vadd.f32 %v1470_v47, %v4207_v11  ;;  %v1509_v24 = vpop.f32.mrf.mxu1  ;;  %v2052_v15 = vpack.c.bf16 %v1546_v3, %v1429_v28  ;;  %1955 = vmatpush.bf16.msrb.mxu1 %v2650_v58  ;;  %v2774_v3 = vor.u32 %v3020_v45, %v2773_v30  ;;  %v2775_v47 = vld [vmem:[%s4796_s1 + $0x478] sm:$0xf0] }
 0x19a   :  { %1727 = vmatmul.bf16.vlgmr.msra.gmra.mxu2 %v3287_v48 }
 0x19b   :  { %1635 = vmatmul.bf16.gmra.mxu0 %v3571_v54  ;;  %2100 = vst [vmem:[%s4799_s3 + $0xa8] sm:$0xff] %v2052_v15  ;;  %v1510_v5 = vadd.f32 %v1509_v24, %v1471_v56  ;;  %1713 = vmatmul.bf16.gmra.mxu3 %v3569_v53 }
 0x19c   :  { %2840 = vmatmul.msk.bf16.gmra.mxu1 %vm1051_vm1, %v3520_v25  ;;  %1881 = vmatpush.bf16.msrb.mxu2 %v2774_v3 }
 0x19d   :  { %v1436_v1 = vpop.f32.mrf.mxu2 }
 0x19e   :  { %v1548_v61 = vpop.f32.mrf.mxu3  ;;  %v1437_v56 = vadd.f32 %v1436_v1, %v4141_v10  ;;  %v2362_v10 = vor.u32 %v2912_v19, %v2359_v22 }
 0x19f   :  { %v1549_v34 = vadd.f32 %v1548_v61, %v1510_v5  ;;  %v2778_v5 = vor.u32 %v3016_v21, %v2775_v47 }
 0x1a0   :  { %v1472_v31 = vpop.f32.mrf.mxu0  ;;  %1917 = vmatpush.bf16.msrb.mxu0 %v2362_v10  ;;  %v2741_v10 = vld [vmem:[%s4796_s1 + $0x418] sm:$0xf] }
 0x1a1   :  { %v1511_v4 = vpop.f32.mrf.mxu1  ;;  %v2056_v59 = vpack.c.bf16 %v1549_v34, %v1432_v55  ;;  %v1473_v62 = vadd.f32 %v1472_v31, %v4207_v11  ;;  %1998 = vmatpush.bf16.msrb.mxu3 %v2778_v5  ;;  %v2615_v55 = vld [vmem:[%s4796_s1 + $0x338] sm:$0xf0] }
 0x1a2   :  { %v2618_v31 = vor.u32 %v2976_v63, %v2615_v55 }
 0x1a3   :  { %2104 = vst [vmem:[%s4799_s3 + $0xc8] sm:$0xff] %v2056_v59  ;;  %v1512_v46 = vadd.f32 %v1511_v4, %v1473_v62 }
 0x1a4   :  { %1956 = vmatpush.bf16.msrb.mxu1 %v2618_v31  ;;  %v3008_v31 = vld [vmem:[%s4796_s1 + $0x41c] sm:$0xf] }
 0x1a5   :  { %v1438_v2 = vpop.f32.mrf.mxu2 }
 0x1a6   :  { %v1550_v33 = vpop.f32.mrf.mxu3  ;;  %v1439_v4 = vadd.f32 %v1438_v2, %v4168_v36  ;;  %v2904_v2 = vld [vmem:[%s4796_s1 + $0xdc] sm:$0xf] }
 0x1a7   :  { %v1551_v50 = vadd.f32 %v1550_v33, %v1512_v46 }
 0x1a8   :  { %v1475_v35 = vpop.f32.mrf.mxu0 }
 0x1a9   :  { %v1476_v37 = vadd.f32 %v1475_v35, %v4207_v11  ;;  %v1514_v23 = vpop.f32.mrf.mxu1  ;;  %v2060_v6 = vpack.c.bf16 %v1551_v50, %v1434_v60  ;;  %v2330_v50 = vor.u32 %v2904_v2, %v2327_v13  ;;  %v2888_v13 = vld [vmem:[%s4796_s1 + $0x5c] sm:$0xf] }
 0x1aa   :  { %1732 = vmatmul.bf16.gmra.mxu2 %v3359_v18 }
 0x1ab   :  { %2841 = vmatmul.msk.bf16.vlgmr.msra.gmra.mxu0 %vm1051_vm1, %v3156_v51  ;;  %2108 = vst [vmem:[%s4799_s3 + $0xe8] sm:$0xff] %v2060_v6  ;;  %v1515_v14 = vadd.f32 %v1514_v23, %v1476_v37  ;;  %1844 = vmatmul.bf16.vlgmr.msra.gmra.mxu3 %v3287_v48  ;;  %v2968_v6 = vld [vmem:[%s4796_s1 + $0x2dc] sm:$0xf] }
 0x1ac   :  { %1805 = vmatmul.bf16.vlgmr.msra.gmra.mxu1 %v3279_v44  ;;  %1918 = vmatpush.bf16.msrb.mxu0 %v2330_v50 }
 0x1ad   :  { %v1441_v0 = vpop.f32.mrf.mxu2 }
 0x1ae   :  { %v1553_v28 = vpop.f32.mrf.mxu3  ;;  %v1442_v35 = vadd.f32 %v1441_v0, %v4194_v12 }
 0x1af   :  { %v1554_v24 = vadd.f32 %v1553_v28, %v1515_v14  ;;  %v2583_v14 = vld [vmem:[%s4796_s1 + $0x2f8] sm:$0xf0] }
 0x1b0   :  { %v1477_v15 = vpop.f32.mrf.mxu0  ;;  %v2586_v12 = vor.u32 %v2968_v6, %v2583_v14  ;;  %v2519_v6 = vld [vmem:[%s4796_s1 + $0x278] sm:$0xf0] }
 0x1b1   :  { %v1516_v57 = vpop.f32.mrf.mxu1  ;;  %v2064_v20 = vpack.c.bf16 %v1554_v24, %v1437_v56  ;;  %v1478_v40 = vadd.f32 %v1477_v15, %v4207_v11 }
 0x1b2   :  { %1957 = vmatpush.bf16.msrb.mxu1 %v2586_v12 }
 0x1b3   :  { %2112 = vst [vmem:[%s4799_s3 + $0x108] sm:$0xff] %v2064_v20  ;;  %v1517_v61 = vadd.f32 %v1516_v57, %v1478_v40  ;;  %v2896_v20 = vld [vmem:[%s4796_s1 + $0x9c] sm:$0xf] }
 0x1b5   :  { %v1443_v1 = vpop.f32.mrf.mxu2 }
 0x1b6   :  { %v1555_v34 = vpop.f32.mrf.mxu3  ;;  %v1444_v47 = vadd.f32 %v1443_v1, %v4210_v49  ;;  %v2295_v49 = vld [vmem:[%s4796_s1 + $0xb8] sm:$0xf0]  ;;  %v3012_v1 = vld [vmem:[%s4796_s1 + $0x434] sm:$0xf0] }
 0x1b7   :  { %v1556_v59 = vadd.f32 %v1555_v34, %v1517_v61  ;;  %v2298_v40 = vor.u32 %v2896_v20, %v2295_v49  ;;  %v2960_v61 = vld [vmem:[%s4796_s1 + $0x29c] sm:$0xf]  ;;  %v2742_v55 = vor.u32 %v3012_v1, %v2741_v10 }
 0x1b8   :  { %v1480_v62 = vpop.f32.mrf.mxu0  ;;  %v2551_v34 = vld [vmem:[%s4796_s1 + $0x2b8] sm:$0xf0] }
 0x1b9   :  { %v1481_v46 = vadd.f32 %v1480_v62, %v4207_v11  ;;  %v1519_v29 = vpop.f32.mrf.mxu1  ;;  %v2068_v32 = vpack.c.bf16 %v1556_v59, %v1439_v4  ;;  %1919 = vmatpush.bf16.msrb.mxu0 %v2298_v40  ;;  %v2743_v4 = vld [vmem:[%s4796_s1 + $0x438] sm:$0xf0]  ;;  %v2554_v62 = vor.u32 %v2960_v61, %v2551_v34  ;;  %1882 = vmatpush.bf16.msrb.mxu2 %v2742_v55 }
 0x1ba   :  { %1737 = vmatmul.bf16.gmra.mxu2 %v3418_v43  ;;  %v2944_v49 = vld [vmem:[%s4796_s1 + $0x21c] sm:$0xf] }
 0x1bb   :  { %2842 = vmatmul.msk.bf16.gmra.mxu0 %vm1051_vm1, %v3271_v39  ;;  %2116 = vst [vmem:[%s4799_s3 + $0x128] sm:$0xff] %v2068_v32  ;;  %v1520_v33 = vadd.f32 %v1519_v29, %v1481_v46  ;;  %1849 = vmatmul.bf16.gmra.mxu3 %v3359_v18  ;;  %v2746_v46 = vor.u32 %v3008_v31, %v2743_v4  ;;  %v2487_v40 = vld [vmem:[%s4796_s1 + $0x238] sm:$0xf0] }
 0x1bc   :  { %1810 = vmatmul.bf16.gmra.mxu1 %v3357_v17 }
 0x1bd   :  { %v1572_v36 = vpop.f32.mrf.mxu2  ;;  %1958 = vmatpush.bf16.msrb.mxu1 %v2554_v62  ;;  %1999 = vmatpush.bf16.msrb.mxu3 %v2746_v46 }
 0x1be   :  { %v1558_v60 = vpop.f32.mrf.mxu3  ;;  %v1573_v45 = vadd.f32 %v1572_v36, %v4446_v38 }
 0x1bf   :  { %v1559_v37 = vadd.f32 %v1558_v60, %v1520_v33  ;;  %v2263_v60 = vld [vmem:[%s4796_s1 + $0x78] sm:$0xf0] }
 0x1c0   :  { %v1482_v23 = vpop.f32.mrf.mxu0 }
 0x1c1   :  { %v1521_v58 = vpop.f32.mrf.mxu1  ;;  %v2072_v0 = vpack.c.bf16 %v1559_v37, %v1442_v35  ;;  %v1483_v30 = vadd.f32 %v1482_v23, %v4207_v11  ;;  %v2266_v35 = vor.u32 %v2888_v13, %v2263_v60  ;;  %v2952_v23 = vld [vmem:[%s4796_s1 + $0x25c] sm:$0xf] }
 0x1c2   :  { %v2522_v12 = vor.u32 %v2952_v23, %v2519_v6 }
 0x1c3   :  { %2120 = vst [vmem:[%s4799_s3 + $0x148] sm:$0xff] %v2072_v0  ;;  %v1522_v28 = vadd.f32 %v1521_v58, %v1483_v30  ;;  %1920 = vmatpush.bf16.msrb.mxu0 %v2266_v35 }
 0x1c4   :  { %1959 = vmatpush.bf16.msrb.mxu1 %v2522_v12 }
 0x1c5   :  { %v1574_v21 = vpop.f32.mrf.mxu2 }
 0x1c6   :  { %v1560_v3 = vpop.f32.mrf.mxu3  ;;  %v1575_v19 = vadd.f32 %v1574_v21, %v4446_v38 }
 0x1c7   :  { %v1561_v56 = vadd.f32 %v1560_v3, %v1522_v28 }
 0x1c8   :  { %v1611_v24 = vpop.f32.mrf.mxu0 }
 0x1c9   :  { %v1612_v15 = vadd.f32 %v1611_v24, %v1573_v45  ;;  %v1650_v5 = vpop.f32.mrf.mxu1  ;;  %v2076_v57 = vpack.c.bf16 %v1561_v56, %v1444_v47  ;;  %v2880_v24 = vld [vmem:[%s4796_s1 + $0x1c] sm:$0xf] }
 0x1ca   :  { %1742 = vmatmul.bf16.gmra.mxu2 %v3483_v9 }
 0x1cb   :  { %v4455_v11 = vadd.f32 %v1650_v5, %v1612_v15  ;;  %2843 = vmatmul.msk.bf16.gmra.mxu0 %vm1051_vm1, %v3355_v16  ;;  %2124 = vst [vmem:[%s4799_s3 + $0x168] sm:$0xff] %v2076_v57  ;;  %1854 = vmatmul.bf16.gmra.mxu3 %v3418_v43  ;;  %v2231_v15 = vld [vmem:[%s4796_s1 + $0x38] sm:$0xf0] }
 0x1cc   :  { %1815 = vmatmul.bf16.gmra.mxu1 %v3416_v42  ;;  %v2234_v5 = vor.u32 %v2880_v24, %v2231_v15 }
 0x1cd   :  { %v1577_v22 = vpop.f32.mrf.mxu2 }
 0x1ce   :  { %v4480_v63 = vpop.f32.mrf.mxu3  ;;  %v1578_v36 = vadd.f32 %v1577_v22, %v4446_v38  ;;  %1921 = vmatpush.bf16.msrb.mxu0 %v2234_v5  ;;  %v2490_v22 = vor.u32 %v2944_v49, %v2487_v40 }
 0x1d0   :  { %v1613_v59 = vpop.f32.mrf.mxu0  ;;  %1960 = vmatpush.bf16.msrb.mxu1 %v2490_v22 }
 0x1d1   :  { %v1614_v29 = vadd.f32 %v1613_v59, %v1575_v19  ;;  %v1652_v32 = vpop.f32.mrf.mxu1 }
 0x1d3   :  { %v4491_v33 = vadd.f32 %v1652_v32, %v1614_v29 }
 0x1d5   :  { %v1579_v2 = vpop.f32.mrf.mxu2 }
 0x1d6   :  { %v4500_v50 = vpop.f32.mrf.mxu3  ;;  %v1580_v30 = vadd.f32 %v1579_v2, %v4446_v38 }
 0x1d8   :  { %v1616_v37 = vpop.f32.mrf.mxu0 }
 0x1d9   :  { %v1617_v14 = vadd.f32 %v1616_v37, %v1578_v36  ;;  %v1655_v58 = vpop.f32.mrf.mxu1 }
 0x1da   :  { %1747 = vmatmul.bf16.gmra.mxu2 %v3524_v27 }
 0x1db   :  { %v4509_v0 = vadd.f32 %v1655_v58, %v1617_v14  ;;  %2844 = vmatmul.msk.bf16.gmra.mxu0 %vm1051_vm1, %v3414_v41  ;;  %1859 = vmatmul.bf16.gmra.mxu3 %v3483_v9 }
 0x1dc   :  { %1820 = vmatmul.bf16.gmra.mxu1 %v3481_v8 }
 0x1dd   :  { %v1582_v45 = vpop.f32.mrf.mxu2 }
 0x1de   :  { %v4516_v21 = vpop.f32.mrf.mxu3  ;;  %v1583_v57 = vadd.f32 %v1582_v45, %v4446_v38 }
 0x1e0   :  { %v1618_v28 = vpop.f32.mrf.mxu0 }
 0x1e1   :  { %v1619_v3 = vadd.f32 %v1618_v28, %v1580_v30  ;;  %v1657_v47 = vpop.f32.mrf.mxu1 }
 0x1e3   :  { %v4518_v56 = vadd.f32 %v1657_v47, %v1619_v3 }
 0x1e5   :  { %v1584_v20 = vpop.f32.mrf.mxu2 }
 0x1e6   :  { %v4533_v19 = vpop.f32.mrf.mxu3  ;;  %v1585_v34 = vadd.f32 %v1584_v20, %v4446_v38 }
 0x1e8   :  { %v1621_v10 = vpop.f32.mrf.mxu0 }
 0x1e9   :  { %v1622_v1 = vadd.f32 %v1621_v10, %v1583_v57  ;;  %v1660_v61 = vpop.f32.mrf.mxu1 }
 0x1ea   :  { %1752 = vmatmul.bf16.gmra.mxu2 %v3571_v54 }
 0x1eb   :  { %v4536_v55 = vadd.f32 %v1660_v61, %v1622_v1  ;;  %2845 = vmatmul.msk.bf16.gmra.mxu0 %vm1051_vm1, %v3479_v7  ;;  %1864 = vmatmul.bf16.gmra.mxu3 %v3524_v27 }
 0x1ec   :  { %1825 = vmatmul.bf16.gmra.mxu1 %v3522_v26 }
 0x1ed   :  { %v1587_v31 = vpop.f32.mrf.mxu2 }
 0x1ee   :  { %v4543_v4 = vpop.f32.mrf.mxu3  ;;  %v1588_v32 = vadd.f32 %v1587_v31, %v4446_v38 }
 0x1f0   :  { %v1623_v59 = vpop.f32.mrf.mxu0 }
 0x1f1   :  { %v1624_v62 = vadd.f32 %v1623_v59, %v1585_v34  ;;  %v1662_v46 = vpop.f32.mrf.mxu1 }
 0x1f3   :  { %v4545_v29 = vadd.f32 %v1662_v46, %v1624_v62 }
 0x1f5   :  { %v1589_v36 = vpop.f32.mrf.mxu2 }
 0x1f6   :  { %v4548_v2 = vpop.f32.mrf.mxu3  ;;  %v1590_v23 = vadd.f32 %v1589_v36, %v4446_v38 }
 0x1f8   :  { %v1626_v13 = vpop.f32.mrf.mxu0 }
 0x1f9   :  { %v1627_v60 = vadd.f32 %v1626_v13, %v1588_v32  ;;  %v1665_v35 = vpop.f32.mrf.mxu1 }
 0x1fa   :  { %2847 = vmatmul.msk.bf16.vlgmr.msrb.gmra.mxu2 %vm1051_vm1, %v3156_v51 }
 0x1fb   :  { %v4552_v37 = vadd.f32 %v1665_v35, %v1627_v60  ;;  %2846 = vmatmul.msk.bf16.gmra.mxu0 %vm1051_vm1, %v3520_v25  ;;  %1869 = vmatmul.bf16.gmra.mxu3 %v3571_v54  ;;  %v4594_v60 = vperm.slane %v4443_v52, 5 }
 0x1fc   :  { %1830 = vmatmul.bf16.gmra.mxu1 %v3569_v53 }
 0x1fd   :  { %v1592_v6 = vpop.f32.mrf.mxu2 }
 0x1fe   :  { %v4559_v14 = vpop.f32.mrf.mxu3  ;;  %v1593_v28 = vadd.f32 %v1592_v6, %v4446_v38 }
 0x200   :  { %v1628_v58 = vpop.f32.mrf.mxu0 }
 0x201   :  { %v1629_v12 = vadd.f32 %v1628_v58, %v1590_v23  ;;  %v1667_v30 = vpop.f32.mrf.mxu1 }
 0x203   :  { %v4561_v45 = vadd.f32 %v1667_v30, %v1629_v12 }
 0x205   :  { %v1594_v3 = vpop.f32.mrf.mxu2 }
 0x206   :  { %v4564_v47 = vpop.f32.mrf.mxu3  ;;  %v1595_v20 = vadd.f32 %v1594_v3, %v4446_v38 }
 0x208   :  { %v1631_v24 = vpop.f32.mrf.mxu0 }
 0x209   :  { %v1632_v15 = vadd.f32 %v1631_v24, %v1593_v28  ;;  %v1670_v5 = vpop.f32.mrf.mxu1 }
 0x20a   :  { %2848 = vmatmul.msk.bf16.gmra.mxu2 %vm1051_vm1, %v3271_v39 }
 0x20b   :  { %v4568_v57 = vadd.f32 %v1670_v5, %v1632_v15  ;;  %1922 = vmatmul.bf16.vlgmr.msrb.gmra.mxu0 %v3279_v44  ;;  %2853 = vmatmul.msk.bf16.vlgmr.msrb.gmra.mxu3 %vm1051_vm1, %v3156_v51 }
 0x20c   :  { %1961 = vmatmul.bf16.vlgmr.msrb.gmra.mxu1 %v3287_v48 }
 0x20d   :  { %v1597_v49 = vpop.f32.mrf.mxu2 }
 0x20e   :  { %v4575_v40 = vpop.f32.mrf.mxu3  ;;  %v1598_v34 = vadd.f32 %v1597_v49, %v4446_v38 }
 0x210   :  { %v1633_v22 = vpop.f32.mrf.mxu0 }
 0x211   :  { %v1634_v10 = vadd.f32 %v1633_v22, %v1595_v20  ;;  %v1672_v1 = vpop.f32.mrf.mxu1 }
 0x213   :  { %v4577_v61 = vadd.f32 %v1672_v1, %v1634_v10 }
 0x215   :  { %v1599_v31 = vpop.f32.mrf.mxu2 }
 0x216   :  { %v4580_v59 = vpop.f32.mrf.mxu3  ;;  %v1600_v46 = vadd.f32 %v1599_v31, %v4446_v38  ;;  %v4603_v38 = vperm.slane %v4443_v52, 6 }
 0x218   :  { %v1636_v44 = vpop.f32.mrf.mxu0 }
 0x219   :  { %v1637_v48 = vadd.f32 %v1636_v44, %v1598_v34  ;;  %v1675_v62 = vpop.f32.mrf.mxu1 }
 0x21a   :  { %2849 = vmatmul.msk.bf16.gmra.mxu2 %vm1051_vm1, %v3355_v16 }
 0x21b   :  { %v4584_v51 = vadd.f32 %v1675_v62, %v1637_v48  ;;  %1927 = vmatmul.bf16.gmra.mxu0 %v3357_v17  ;;  %2854 = vmatmul.msk.bf16.gmra.mxu3 %vm1051_vm1, %v3271_v39  ;;  %v1690_v17 = vadd.f32 %v4480_v63, %v4594_v60  ;;  %v1692_v63 = vadd.f32 %v4500_v50, %v4594_v60 }
 0x21c   :  { %1966 = vmatmul.bf16.gmra.mxu1 %v3359_v18 }
 0x21d   :  { %v1728_v32 = vpop.f32.mrf.mxu2 }
 0x21e   :  { %v4591_v36 = vpop.f32.mrf.mxu3  ;;  %v1729_v58 = vadd.f32 %v1728_v32, %v1690_v17 }
 0x220   :  { %v1638_v13 = vpop.f32.mrf.mxu0 }
 0x221   :  { %v1639_v35 = vadd.f32 %v1638_v13, %v1600_v46  ;;  %v1677_v23 = vpop.f32.mrf.mxu1  ;;  %v1697_v46 = vadd.f32 %v4533_v19, %v4594_v60 }
 0x223   :  { %v4596_v6 = vadd.f32 %v1677_v23, %v1639_v35 }
 0x225   :  { %v1730_v18 = vpop.f32.mrf.mxu2 }
 0x226   :  { %v4600_v12 = vpop.f32.mrf.mxu3  ;;  %v1731_v5 = vadd.f32 %v1730_v18, %v1692_v63  ;;  %v1702_v63 = vadd.f32 %v4548_v2, %v4594_v60 }
 0x228   :  { %v1767_v39 = vpop.f32.mrf.mxu0 }
 0x229   :  { %v1768_v30 = vadd.f32 %v1767_v39, %v1729_v58  ;;  %v1806_v28 = vpop.f32.mrf.mxu1 }
 0x22a   :  { %2850 = vmatmul.msk.bf16.gmra.mxu2 %vm1051_vm1, %v3414_v41  ;;  %v1807_v24 = vadd.f32 %v1806_v28, %v4603_v38 }
 0x22b   :  { %v2033_v3 = vpack.c.bf16 %v1768_v30, %v4455_v11  ;;  %1932 = vmatmul.bf16.gmra.mxu0 %v3416_v42  ;;  %2855 = vmatmul.msk.bf16.gmra.mxu3 %vm1051_vm1, %v3355_v16  ;;  %v1695_v16 = vadd.f32 %v4516_v21, %v4594_v60 }
 0x22c   :  { %1971 = vmatmul.bf16.gmra.mxu1 %v3418_v43 }
 0x22d   :  { %2081 = vst [vmem:[%s4799_s3 + $0x10] sm:$0xff] %v2033_v3  ;;  %v1733_v15 = vpop.f32.mrf.mxu2 }
 0x22e   :  { %v1845_v20 = vpop.f32.mrf.mxu3  ;;  %v1734_v1 = vadd.f32 %v1733_v15, %v1695_v16 }
 0x22f   :  { %v4618_v11 = vadd.f32 %v1845_v20, %v1807_v24 }
 0x230   :  { %v1769_v42 = vpop.f32.mrf.mxu0 }
 0x231   :  { %v1770_v49 = vadd.f32 %v1769_v42, %v1731_v5  ;;  %v1808_v22 = vpop.f32.mrf.mxu1 }
 0x232   :  { %v1809_v10 = vadd.f32 %v1808_v22, %v4603_v38 }
 0x233   :  { %v2037_v43 = vpack.c.bf16 %v1770_v49, %v4491_v33 }
 0x235   :  { %2085 = vst [vmem:[%s4799_s3 + $0x30] sm:$0xff] %v2037_v43  ;;  %v1735_v50 = vpop.f32.mrf.mxu2 }
 0x236   :  { %v1847_v34 = vpop.f32.mrf.mxu3  ;;  %v1736_v13 = vadd.f32 %v1735_v50, %v1697_v46 }
 0x237   :  { %v4627_v31 = vadd.f32 %v1847_v34, %v1809_v10 }
 0x238   :  { %v1772_v44 = vpop.f32.mrf.mxu0 }
 0x239   :  { %v1773_v48 = vadd.f32 %v1772_v44, %v1734_v1  ;;  %v1811_v62 = vpop.f32.mrf.mxu1 }
 0x23a   :  { %2851 = vmatmul.msk.bf16.gmra.mxu2 %vm1051_vm1, %v3479_v7  ;;  %v1812_v21 = vadd.f32 %v1811_v62, %v4603_v38 }
 0x23b   :  { %v2041_v33 = vpack.c.bf16 %v1773_v48, %v4509_v0  ;;  %1937 = vmatmul.bf16.gmra.mxu0 %v3481_v8  ;;  %2856 = vmatmul.msk.bf16.gmra.mxu3 %vm1051_vm1, %v3414_v41  ;;  %v1700_v41 = vadd.f32 %v4543_v4, %v4594_v60 }
 0x23c   :  { %1976 = vmatmul.bf16.gmra.mxu1 %v3483_v9 }
 0x23d   :  { %2089 = vst [vmem:[%s4799_s3 + $0x50] sm:$0xff] %v2041_v33  ;;  %v1738_v32 = vpop.f32.mrf.mxu2 }
 0x23e   :  { %v1850_v35 = vpop.f32.mrf.mxu3  ;;  %v1739_v58 = vadd.f32 %v1738_v32, %v1700_v41 }
 0x23f   :  { %v4642_v0 = vadd.f32 %v1850_v35, %v1812_v21 }
 0x240   :  { %v1774_v8 = vpop.f32.mrf.mxu0 }
 0x241   :  { %v1775_v23 = vadd.f32 %v1774_v8, %v1736_v13  ;;  %v1813_v17 = vpop.f32.mrf.mxu1 }
 0x242   :  { %v1814_v18 = vadd.f32 %v1813_v17, %v4603_v38 }
 0x243   :  { %v2045_v9 = vpack.c.bf16 %v1775_v23, %v4518_v56 }
 0x245   :  { %2093 = vst [vmem:[%s4799_s3 + $0x70] sm:$0xff] %v2045_v9  ;;  %v1740_v19 = vpop.f32.mrf.mxu2 }
 0x246   :  { %v1852_v39 = vpop.f32.mrf.mxu3  ;;  %v1741_v5 = vadd.f32 %v1740_v19, %v1702_v63 }
 0x247   :  { %v4651_v30 = vadd.f32 %v1852_v39, %v1814_v18 }
 0x248   :  { %v1777_v28 = vpop.f32.mrf.mxu0 }
 0x249   :  { %v1778_v3 = vadd.f32 %v1777_v28, %v1739_v58  ;;  %v1816_v24 = vpop.f32.mrf.mxu1 }
 0x24a   :  { %2852 = vmatmul.msk.bf16.gmra.mxu2 %vm1051_vm1, %v3520_v25  ;;  %v1817_v4 = vadd.f32 %v1816_v24, %v4603_v38 }
 0x24b   :  { %v2049_v56 = vpack.c.bf16 %v1778_v3, %v4536_v55  ;;  %1942 = vmatmul.bf16.gmra.mxu0 %v3522_v26  ;;  %2857 = vmatmul.msk.bf16.gmra.mxu3 %vm1051_vm1, %v3479_v7  ;;  %v1705_v7 = vadd.f32 %v4559_v14, %v4594_v60  ;;  %v1707_v14 = vadd.f32 %v4564_v47, %v4594_v60 }
 0x24c   :  { %1981 = vmatmul.bf16.gmra.mxu1 %v3524_v27 }
 0x24d   :  { %2097 = vst [vmem:[%s4799_s3 + $0x90] sm:$0xff] %v2049_v56  ;;  %v1743_v15 = vpop.f32.mrf.mxu2 }
 0x24e   :  { %v1855_v20 = vpop.f32.mrf.mxu3  ;;  %v1744_v43 = vadd.f32 %v1743_v15, %v1705_v7 }
 0x24f   :  { %v4666_v55 = vadd.f32 %v1855_v20, %v1817_v4 }
 0x250   :  { %v1779_v26 = vpop.f32.mrf.mxu0 }
 0x251   :  { %v1780_v42 = vadd.f32 %v1779_v26, %v1741_v5  ;;  %v1818_v49 = vpop.f32.mrf.mxu1 }
 0x252   :  { %v1819_v22 = vadd.f32 %v1818_v49, %v4603_v38 }
 0x253   :  { %v2053_v27 = vpack.c.bf16 %v1780_v42, %v4545_v29 }
 0x255   :  { %2101 = vst [vmem:[%s4799_s3 + $0xb0] sm:$0xff] %v2053_v27  ;;  %v1745_v2 = vpop.f32.mrf.mxu2 }
 0x256   :  { %v1857_v16 = vpop.f32.mrf.mxu3  ;;  %v1746_v62 = vadd.f32 %v1745_v2, %v1707_v14 }
 0x257   :  { %v4675_v50 = vadd.f32 %v1857_v16, %v1819_v22 }
 0x258   :  { %v1782_v10 = vpop.f32.mrf.mxu0 }
 0x259   :  { %v1783_v1 = vadd.f32 %v1782_v10, %v1744_v43  ;;  %v1821_v34 = vpop.f32.mrf.mxu1 }
 0x25a   :  { %v1822_v29 = vadd.f32 %v1821_v34, %v4603_v38 }
 0x25b   :  { %v2057_v44 = vpack.c.bf16 %v1783_v1, %v4552_v37  ;;  %1947 = vmatmul.bf16.gmra.mxu0 %v3569_v53  ;;  %2858 = vmatmul.msk.bf16.gmra.mxu3 %vm1051_vm1, %v3520_v25  ;;  %v1710_v25 = vadd.f32 %v4575_v40, %v4594_v60  ;;  %v1712_v40 = vadd.f32 %v4580_v59, %v4594_v60 }
 0x25c   :  { %1986 = vmatmul.bf16.gmra.mxu1 %v3571_v54 }
 0x25d   :  { %2105 = vst [vmem:[%s4799_s3 + $0xd0] sm:$0xff] %v2057_v44  ;;  %v1748_v48 = vpop.f32.mrf.mxu2 }
 0x25e   :  { %v1860_v33 = vpop.f32.mrf.mxu3  ;;  %v1749_v13 = vadd.f32 %v1748_v48, %v1710_v25 }
 0x25f   :  { %v4688_v37 = vadd.f32 %v1860_v33, %v1822_v29 }
 0x260   :  { %v1784_v53 = vpop.f32.mrf.mxu0 }
 0x261   :  { %v1785_v21 = vadd.f32 %v1784_v53, %v1746_v62  ;;  %v1823_v46 = vpop.f32.mrf.mxu1 }
 0x262   :  { %v1824_v32 = vadd.f32 %v1823_v46, %v4603_v38 }
 0x263   :  { %v2061_v54 = vpack.c.bf16 %v1785_v21, %v4561_v45 }
 0x265   :  { %2109 = vst [vmem:[%s4799_s3 + $0xf0] sm:$0xff] %v2061_v54  ;;  %v1750_v47 = vpop.f32.mrf.mxu2 }
 0x266   :  { %v1862_v35 = vpop.f32.mrf.mxu3  ;;  %v1751_v18 = vadd.f32 %v1750_v47, %v1712_v40 }
 0x267   :  { %v4697_v8 = vadd.f32 %v1862_v35, %v1824_v32 }
 0x268   :  { %v1787_v23 = vpop.f32.mrf.mxu0 }
 0x269   :  { %v1788_v17 = vadd.f32 %v1787_v23, %v1749_v13  ;;  %v1826_v9 = vpop.f32.mrf.mxu1 }
 0x26a   :  { %v1827_v45 = vadd.f32 %v1826_v9, %v4603_v38 }
 0x26b   :  { %v2065_v41 = vpack.c.bf16 %v1788_v17, %v4568_v57  ;;  %v1715_v57 = vadd.f32 %v4591_v36, %v4594_v60  ;;  %v1717_v36 = vadd.f32 %v4600_v12, %v4594_v60  ;;  %v4731_v60 = vperm.slane %v4443_v52, 7 }
 0x26d   :  { %2113 = vst [vmem:[%s4799_s3 + $0x110] sm:$0xff] %v2065_v41  ;;  %v1753_v19 = vpop.f32.mrf.mxu2 }
 0x26e   :  { %v1865_v58 = vpop.f32.mrf.mxu3  ;;  %v1754_v63 = vadd.f32 %v1753_v19, %v1715_v57 }
 0x26f   :  { %v4706_v39 = vadd.f32 %v1865_v58, %v1827_v45 }
 0x270   :  { %v1789_v28 = vpop.f32.mrf.mxu0 }
 0x271   :  { %v1790_v3 = vadd.f32 %v1789_v28, %v1751_v18  ;;  %v1828_v24 = vpop.f32.mrf.mxu1 }
 0x272   :  { %v1829_v4 = vadd.f32 %v1828_v24, %v4603_v38 }
 0x273   :  { %v2069_v56 = vpack.c.bf16 %v1790_v3, %v4577_v61 }
 0x275   :  { %2117 = vst [vmem:[%s4799_s3 + $0x130] sm:$0xff] %v2069_v56  ;;  %v1755_v59 = vpop.f32.mrf.mxu2 }
 0x276   :  { %v1867_v15 = vpop.f32.mrf.mxu3  ;;  %v1756_v7 = vadd.f32 %v1755_v59, %v1717_v36 }
 0x277   :  { %v4715_v5 = vadd.f32 %v1867_v15, %v1829_v4 }
 0x278   :  { %v1792_v20 = vpop.f32.mrf.mxu0 }
 0x279   :  { %v1793_v26 = vadd.f32 %v1792_v20, %v1754_v63  ;;  %v1831_v42 = vpop.f32.mrf.mxu1 }
 0x27a   :  { %v1832_v61 = vadd.f32 %v1831_v42, %v4603_v38 }
 0x27b   :  { %v2073_v49 = vpack.c.bf16 %v1793_v26, %v4584_v51 }
 0x27d   :  { %2121 = vst [vmem:[%s4799_s3 + $0x150] sm:$0xff] %v2073_v49  ;;  %v1884_v27 = vpop.f32.mrf.mxu2 }
 0x27e   :  { %v1870_v2 = vpop.f32.mrf.mxu3  ;;  %v1885_v53 = vadd.f32 %v1884_v27, %v4618_v11 }
 0x27f   :  { %v4724_v22 = vadd.f32 %v1870_v2, %v1832_v61 }
 0x280   :  { %v1794_v43 = vpop.f32.mrf.mxu0 }
 0x281   :  { %v1795_v16 = vadd.f32 %v1794_v43, %v1756_v7  ;;  %v1833_v10 = vpop.f32.mrf.mxu1 }
 0x282   :  { %v1834_v12 = vadd.f32 %v1833_v10, %v4603_v38 }
 0x283   :  { %v2077_v1 = vpack.c.bf16 %v1795_v16, %v4596_v6 }
 0x285   :  { %2125 = vst [vmem:[%s4799_s3 + $0x170] sm:$0xff] %v2077_v1  ;;  %v1886_v51 = vpop.f32.mrf.mxu2 }
 0x286   :  { %v1872_v34 = vpop.f32.mrf.mxu3  ;;  %v1887_v13 = vadd.f32 %v1886_v51, %v4627_v31 }
 0x287   :  { %v4734_v44 = vadd.f32 %v1872_v34, %v1834_v12 }
 0x288   :  { %v1923_v29 = vpop.f32.mrf.mxu0 }
 0x289   :  { %v1924_v14 = vadd.f32 %v1923_v29, %v4731_v60  ;;  %v1962_v48 = vpop.f32.mrf.mxu1 }
 0x28b   :  { %v1963_v62 = vadd.f32 %v1962_v48, %v1924_v14 }
 0x28d   :  { %v1889_v33 = vpop.f32.mrf.mxu2 }
 0x28e   :  { %v2001_v6 = vpop.f32.mrf.mxu3  ;;  %v1890_v19 = vadd.f32 %v1889_v33, %v4642_v0 }
 0x28f   :  { %v2002_v21 = vadd.f32 %v2001_v6, %v1963_v62 }
 0x290   :  { %v1925_v46 = vpop.f32.mrf.mxu0 }
 0x291   :  { %v1964_v54 = vpop.f32.mrf.mxu1  ;;  %v2034_v25 = vpack.c.bf16 %v2002_v21, %v1885_v53  ;;  %v1926_v52 = vadd.f32 %v1925_v46, %v4731_v60 }
 0x293   :  { %2082 = vst [vmem:[%s4799_s3 + $0x18] sm:$0xff] %v2034_v25  ;;  %v1965_v47 = vadd.f32 %v1964_v54, %v1926_v52 }
 0x295   :  { %v1891_v38 = vpop.f32.mrf.mxu2 }
 0x296   :  { %v2003_v32 = vpop.f32.mrf.mxu3  ;;  %v1892_v57 = vadd.f32 %v1891_v38, %v4651_v30 }
 0x297   :  { %v2004_v35 = vadd.f32 %v2003_v32, %v1965_v47 }
 0x298   :  { %v1928_v23 = vpop.f32.mrf.mxu0 }
 0x299   :  { %v1929_v17 = vadd.f32 %v1928_v23, %v4731_v60  ;;  %v1967_v11 = vpop.f32.mrf.mxu1  ;;  %v2038_v9 = vpack.c.bf16 %v2004_v35, %v1887_v13 }
 0x29b   :  { %2086 = vst [vmem:[%s4799_s3 + $0x38] sm:$0xff] %v2038_v9  ;;  %v1968_v41 = vadd.f32 %v1967_v11, %v1929_v17 }
 0x29d   :  { %v1894_v45 = vpop.f32.mrf.mxu2 }
 0x29e   :  { %v2006_v40 = vpop.f32.mrf.mxu3  ;;  %v1895_v49 = vadd.f32 %v1894_v45, %v4666_v55 }
 0x29f   :  { %v2007_v18 = vadd.f32 %v2006_v40, %v1968_v41 }
 0x2a0   :  { %v1930_v58 = vpop.f32.mrf.mxu0 }
 0x2a1   :  { %v1969_v28 = vpop.f32.mrf.mxu1  ;;  %v2042_v3 = vpack.c.bf16 %v2007_v18, %v1890_v19  ;;  %v1931_v31 = vadd.f32 %v1930_v58, %v4731_v60 }
 0x2a3   :  { %2090 = vst [vmem:[%s4799_s3 + $0x58] sm:$0xff] %v2042_v3  ;;  %v1970_v24 = vadd.f32 %v1969_v28, %v1931_v31 }
 0x2a5   :  { %v1896_v63 = vpop.f32.mrf.mxu2 }
 0x2a6   :  { %v2008_v56 = vpop.f32.mrf.mxu3  ;;  %v1897_v10 = vadd.f32 %v1896_v63, %v4675_v50 }
 0x2a7   :  { %v2009_v59 = vadd.f32 %v2008_v56, %v1970_v24 }
 0x2a8   :  { %v1933_v4 = vpop.f32.mrf.mxu0 }
 0x2a9   :  { %v1934_v15 = vadd.f32 %v1933_v4, %v4731_v60  ;;  %v1972_v0 = vpop.f32.mrf.mxu1  ;;  %v2046_v20 = vpack.c.bf16 %v2009_v59, %v1892_v57 }
 0x2ab   :  { %2094 = vst [vmem:[%s4799_s3 + $0x78] sm:$0xff] %v2046_v20  ;;  %v1973_v26 = vadd.f32 %v1972_v0, %v1934_v15 }
 0x2ad   :  { %v1899_v2 = vpop.f32.mrf.mxu2 }
 0x2ae   :  { %v2011_v42 = vpop.f32.mrf.mxu3  ;;  %v1900_v62 = vadd.f32 %v1899_v2, %v4688_v37 }
 0x2af   :  { %v2012_v61 = vadd.f32 %v2011_v42, %v1973_v26 }
 0x2b0   :  { %v1935_v36 = vpop.f32.mrf.mxu0 }
 0x2b1   :  { %v1974_v27 = vpop.f32.mrf.mxu1  ;;  %v2050_v7 = vpack.c.bf16 %v2012_v61, %v1895_v49  ;;  %v1936_v30 = vadd.f32 %v1935_v36, %v4731_v60 }
 0x2b3   :  { %2098 = vst [vmem:[%s4799_s3 + $0x98] sm:$0xff] %v2050_v7  ;;  %v1975_v43 = vadd.f32 %v1974_v27, %v1936_v30 }
 0x2b5   :  { %v1901_v14 = vpop.f32.mrf.mxu2 }
 0x2b6   :  { %v2013_v16 = vpop.f32.mrf.mxu3  ;;  %v1902_v52 = vadd.f32 %v1901_v14, %v4697_v8 }
 0x2b7   :  { %v2014_v1 = vadd.f32 %v2013_v16, %v1975_v43 }
 0x2b8   :  { %v1938_v51 = vpop.f32.mrf.mxu0 }
 0x2b9   :  { %v1939_v12 = vadd.f32 %v1938_v51, %v4731_v60  ;;  %v1977_v55 = vpop.f32.mrf.mxu1  ;;  %v2054_v34 = vpack.c.bf16 %v2014_v1, %v1897_v10 }
 0x2bb   :  { %2102 = vst [vmem:[%s4799_s3 + $0xb8] sm:$0xff] %v2054_v34  ;;  %v1978_v29 = vadd.f32 %v1977_v55, %v1939_v12 }
 0x2bd   :  { %v1904_v54 = vpop.f32.mrf.mxu2 }
 0x2be   :  { %v2016_v48 = vpop.f32.mrf.mxu3  ;;  %v1905_v17 = vadd.f32 %v1904_v54, %v4706_v39 }
 0x2bf   :  { %v2017_v33 = vadd.f32 %v2016_v48, %v1978_v29 }
 0x2c0   :  { %v1940_v6 = vpop.f32.mrf.mxu0 }
 0x2c1   :  { %v1979_v53 = vpop.f32.mrf.mxu1  ;;  %v2058_v21 = vpack.c.bf16 %v2017_v33, %v1900_v62  ;;  %v1941_v50 = vadd.f32 %v1940_v6, %v4731_v60 }
 0x2c3   :  { %2106 = vst [vmem:[%s4799_s3 + $0xd8] sm:$0xff] %v2058_v21  ;;  %v1980_v46 = vadd.f32 %v1979_v53, %v1941_v50 }
 0x2c5   :  { %v1906_v41 = vpop.f32.mrf.mxu2 }
 0x2c6   :  { %v2018_v25 = vpop.f32.mrf.mxu3  ;;  %v1907_v58 = vadd.f32 %v1906_v41, %v4715_v5 }
 0x2c7   :  { %v2019_v38 = vadd.f32 %v2018_v25, %v1980_v46 }
 0x2c8   :  { %v1943_v47 = vpop.f32.mrf.mxu0 }
 0x2c9   :  { %v1944_v32 = vadd.f32 %v1943_v47, %v4731_v60  ;;  %v1982_v37 = vpop.f32.mrf.mxu1  ;;  %v2062_v13 = vpack.c.bf16 %v2019_v38, %v1902_v52 }
 0x2cb   :  { %2110 = vst [vmem:[%s4799_s3 + $0xf8] sm:$0xff] %v2062_v13  ;;  %v1983_v35 = vadd.f32 %v1982_v37, %v1944_v32 }
 0x2cd   :  { %v1909_v24 = vpop.f32.mrf.mxu2 }
 0x2ce   :  { %v2021_v23 = vpop.f32.mrf.mxu3  ;;  %v1910_v4 = vadd.f32 %v1909_v24, %v4724_v22 }
 0x2cf   :  { %v2022_v11 = vadd.f32 %v2021_v23, %v1983_v35 }
 0x2d0   :  { %v1945_v9 = vpop.f32.mrf.mxu0 }
 0x2d1   :  { %v1984_v45 = vpop.f32.mrf.mxu1  ;;  %v2066_v40 = vpack.c.bf16 %v2022_v11, %v1905_v17  ;;  %v1946_v8 = vadd.f32 %v1945_v9, %v4731_v60 }
 0x2d3   :  { %2114 = vst [vmem:[%s4799_s3 + $0x118] sm:$0xff] %v2066_v40  ;;  %v1985_v19 = vadd.f32 %v1984_v45, %v1946_v8 }
 0x2d5   :  { %v1911_v20 = vpop.f32.mrf.mxu2 }
 0x2d6   :  { %v2023_v18 = vpop.f32.mrf.mxu3  ;;  %v1912_v61 = vadd.f32 %v1911_v20, %v4734_v44 }
 0x2d7   :  { %v2024_v28 = vadd.f32 %v2023_v18, %v1985_v19 }
 0x2d8   :  { %v1948_v3 = vpop.f32.mrf.mxu0 }
 0x2d9   :  { %v1949_v31 = vadd.f32 %v1948_v3, %v4731_v60  ;;  %v2070_v39 = vpack.c.bf16 %v2024_v28, %v1907_v58  ;;  %v1987_v56 = vpop.f32.mrf.mxu1 }
 0x2db   :  { %2118 = vst [vmem:[%s4799_s3 + $0x138] sm:$0xff] %v2070_v39  ;;  %v1988_v57 = vadd.f32 %v1987_v56, %v1949_v31 }
 0x2de   :  { %v2026_v59 = vpop.f32.mrf.mxu3 }
 0x2df   :  { %v2027_v63 = vadd.f32 %v2026_v59, %v1988_v57 }
 0x2e0   :  { %v1950_v15 = vpop.f32.mrf.mxu0 }
 0x2e1   :  { %v2074_v0 = vpack.c.bf16 %v2027_v63, %v1910_v4  ;;  %v1951_v5 = vadd.f32 %v1950_v15, %v4731_v60  ;;  %v1989_v26 = vpop.f32.mrf.mxu1 }
 0x2e3   :  { %2122 = vst [vmem:[%s4799_s3 + $0x158] sm:$0xff] %v2074_v0  ;;  %v1990_v42 = vadd.f32 %v1989_v26, %v1951_v5 }
 0x2e6   :  { %v2028_v49 = vpop.f32.mrf.mxu3 }
 0x2e7   :  { %v2029_v36 = vadd.f32 %v2028_v49, %v1990_v42 }
 0x2e9   :  { %v2078_v27 = vpack.c.bf16 %v2029_v36, %v1912_v61 }
 0x2eb   :  { %2126 = vst [vmem:[%s4799_s3 + $0x178] sm:$0xff] %v2078_v27 }

</bundles_post_ra>
